<compile_context>
chip_gen: v7x
topology: tpu7x:2x2x1
jax: 0.10.0
libtpu: 0.0.40
codegen_flags: <defaults>
</compile_context>

<pallas_src>
import math

import jax
import jax.numpy as jnp
from jax.experimental import pallas as pl
from jax.experimental.pallas import tpu as pltpu  # noqa: F401  (kept for parity / future tiling)


# --------------------------------------------------------------------------
# helpers (safe elementwise forms that lower cleanly in Mosaic)
# --------------------------------------------------------------------------
def _silu(x):
    # sigmoid = 1 / (1 + exp(-x)); approx reciprocal runs on the EUP slot.
    return x * pl.reciprocal(1.0 + jnp.exp(-x), approx=True)


def _softplus(x):
    return jnp.maximum(x, 0.0) + jnp.log(1.0 + jnp.exp(-jnp.abs(x)))


def _block_all(shape):
    """Full-array block with a trivial index map (grid=(1,))."""
    nd = len(shape)
    if nd == 2:
        return pl.BlockSpec(shape, lambda i: (0, 0))
    if nd == 3:
        return pl.BlockSpec(shape, lambda i: (0, 0, 0))
    raise ValueError(f"unsupported rank {nd}")


# --------------------------------------------------------------------------
# The single fused kernel:
#   Conv1d(k=3,'same',no bias) + BatchNorm1d(batch stats) + SiLU  (embedding)
#   -> Mamba block (in_proj, causal depthwise conv, SiLU, fused x_proj+dt_proj,
#      softplus, selective scan, D-skip, gate)
#   -> out_proj folded offline with AdaptiveAvgPool1d(2)-over-features + mean
# Small per-channel params are packed into sp_ref rows:
#   0 bn_gamma(:D) | 1 bn_beta(:D) | 2..2+d_conv-1 conv taps | convb | dtb |
#   dparam | wout_pool (out_proj @ pool+mean fold)
# --------------------------------------------------------------------------
def _encoder_kernel(xwin_ref, embw_ref, sp_ref, win_ref, wproj_ref, a_ref, o_ref):
    B, L, KC = xwin_ref.shape
    D = embw_ref.shape[-1]
    d_inner = win_ref.shape[-1] // 2
    n = a_ref.shape[0]
    d_conv = sp_ref.shape[0] - 6

    # ---- embedding: im2col conv (ONE matmul) + batchnorm (batch stats) + SiLU ----
    acc = jnp.dot(xwin_ref[...].reshape(B * L, KC), embw_ref[...],
                  preferred_element_type=jnp.float32)                     # (B*L, D)
    mean = jnp.mean(acc, axis=0, keepdims=True)
    var = jnp.mean((acc - mean) ** 2, axis=0, keepdims=True)
    gamma = sp_ref[0:1, :D]
    beta = sp_ref[1:2, :D]
    h0 = _silu((acc - mean) * jax.lax.rsqrt(var + 1e-5) * gamma + beta)   # (B*L, D)

    # ---- Mamba in_proj: one 128-lane-wide matmul, split into x / z halves ----
    xz = jnp.dot(h0, win_ref[...], preferred_element_type=jnp.float32)    # (B*L, 2*di)
    xi = xz[:, :d_inner].reshape(B, L, d_inner)
    res = xz[:, d_inner:].reshape(B, L, d_inner)

    # ---- depthwise causal conv over L: pad once, static slice per tap ----
    xi_pad = jnp.concatenate(
        [jnp.zeros((B, d_conv - 1, d_inner), jnp.float32), xi], axis=1)   # (B, L+dc-1, di)
    acc2 = jnp.zeros((B, L, d_inner), jnp.float32)
    for k in range(d_conv):
        tap = sp_ref[2 + k:3 + k, :].reshape(1, 1, d_inner)
        acc2 = acc2 + xi_pad[:, k:k + L, :] * tap
    convb = sp_ref[2 + d_conv:3 + d_conv, :].reshape(1, 1, d_inner)
    xc = _silu(acc2 + convb)                                              # (B, L, di)

    # ---- fused [folded dt_proj | x_proj B | x_proj C]: ONE (di, di+2n) matmul ----
    xc2 = xc.reshape(B * L, d_inner)
    proj = jnp.dot(xc2, wproj_ref[...], preferred_element_type=jnp.float32)  # (B*L, di+2n)
    dtb = sp_ref[3 + d_conv:4 + d_conv, :].reshape(1, 1, d_inner)
    delta = _softplus(proj[:, :d_inner].reshape(B, L, d_inner) + dtb)     # (B, L, di)
    Bm = proj[:, d_inner:d_inner + n].reshape(B, L, n)
    Cm = proj[:, d_inner + n:].reshape(B, L, n)

    # ---- selective scan, lane-dense state h: (n, B*d_inner) = (16, 128) ----
    # exp() and dt*B*u are hoisted out of the serial loop (batched work);
    # the per-step body is two FMAs + one sublane reduce, no scratch stores.
    a_nd = a_ref[...]                                                     # (n, di) = (-exp(A_log))^T
    dA_parts, dBu_parts, c_parts = [], [], []
    for b in range(B):
        d_b = delta[b]                                                    # (L, di)
        u_b = xc[b]                                                       # (L, di)
        B_b = Bm[b]                                                       # (L, n)
        C_b = Cm[b]                                                       # (L, n)
        dA_parts.append(jnp.exp(d_b[:, None, :] * a_nd[None, :, :]))      # (L, n, di)
        dBu_parts.append((d_b * u_b)[:, None, :] * B_b[:, :, None])       # (L, n, di)
        c_parts.append(jnp.broadcast_to(C_b[:, :, None], (L, n, d_inner)))
    dA_all = jnp.concatenate(dA_parts, axis=-1)                           # (L, n, B*di)
    dBu_all = jnp.concatenate(dBu_parts, axis=-1)
    c_all = jnp.concatenate(c_parts, axis=-1)

    h = jnp.zeros((n, B * d_inner), jnp.float32)
    ys = []
    for t in range(L):
        h = dA_all[t] * h + dBu_all[t]
        ys.append(jnp.sum(h * c_all[t], axis=0, keepdims=True))           # (1, B*di)
    y_scan = jnp.concatenate(ys, axis=0)                                  # (L, B*di)
    y = jnp.concatenate(
        [y_scan[:, b * d_inner:(b + 1) * d_inner].reshape(1, L, d_inner)
         for b in range(B)], axis=0)                                      # (B, L, di)

    # ---- skip (u * D), gate with SiLU(z); out_proj + AdaptiveAvgPool1d(2)
    # over the FEATURE dim + .mean(dim=-1) are pre-folded into wout_pool, so
    # the epilogue is one FMA + one lane reduce. ----
    dparam = sp_ref[4 + d_conv:5 + d_conv, :].reshape(1, 1, d_inner)
    wpool = sp_ref[5 + d_conv:6 + d_conv, :].reshape(1, 1, d_inner)
    y = (y + xc * dparam) * _silu(res)
    o_ref[...] = jnp.sum(y * wpool, axis=-1)                              # (B, L)


# --------------------------------------------------------------------------
# Parameter construction (deterministic, synthetic, natural module shapes)
# --------------------------------------------------------------------------
def init_params(key, in_channels, encoder_dim, num_layers):
    d_model = encoder_dim
    d_state, d_conv, expand = 16, 4, 2
    d_inner = expand * d_model
    dt_rank = math.ceil(d_model / 16)

    kit = iter(jax.random.split(key, 64))

    def nrm(shape, scale):
        return (scale * jax.random.normal(next(kit), shape)).astype(jnp.float32)

    params = {
        # Conv1d weight (D, C_in, 3) stored per-tap transposed: (3, C_in, D)
        "emb_w": nrm((3, in_channels, d_model), 0.3),
        "bn_gamma": jnp.ones((1, d_model), jnp.float32),
        "bn_beta": jnp.zeros((1, d_model), jnp.float32),
        "layers": [],
    }
    a_row = jnp.log(jnp.arange(1, d_state + 1, dtype=jnp.float32))
    for _ in range(num_layers):
        params["layers"].append({
            "winx_t": nrm((d_model, d_inner), 0.08),
            "winz_t": nrm((d_model, d_inner), 0.08),
            "convw": nrm((d_conv, 1, d_inner), 0.2),
            "convb": nrm((1, 1, d_inner), 0.02),
            "wxdt_t": nrm((d_inner, dt_rank), 0.08),
            "wxb_t": nrm((d_inner, d_state), 0.08),
            "wxc_t": nrm((d_inner, d_state), 0.08),
            "wdt_t": nrm((dt_rank, d_inner), 0.3),
            "dtb": jnp.full((1, 1, d_inner), -2.5, jnp.float32),
            "alog": jnp.tile(a_row[None, :], (d_inner, 1)),   # canonical A_log init
            "dparam": jnp.ones((1, 1, d_inner), jnp.float32),
            "wout_t": nrm((d_inner, d_model), 0.08),
        })
    return params


def pack_params(params):
    """One-time weight prep: concat/fold weights, pack small per-channel vecs."""
    assert len(params["layers"]) == 1, \
        "num_layers > 1 crashes in the reference module (pool over features)"
    lp = params["layers"][0]
    D = params["emb_w"].shape[-1]
    Cin = params["emb_w"].shape[1]
    d_inner = lp["winx_t"].shape[-1]
    d_conv = lp["convw"].shape[0]

    # Fold out_proj with AdaptiveAvgPool1d(2) over features + .mean(dim=-1):
    # result[b,l] = sum_c out[b,l,c] * pool_vec[c] = y[b,l,:] @ (wout @ pool_vec)
    lo, hi = D // 2, -(-D // 2)
    idx = jnp.arange(D)
    pool_vec = 0.5 * (jnp.where(idx < hi, 1.0 / hi, 0.0)
                      + jnp.where(idx >= lo, 1.0 / (D - lo), 0.0)).astype(jnp.float32)
    wout_pool = lp["wout_t"] @ pool_vec                                   # (d_inner,)

    def row(v):
        v = v.reshape(1, -1).astype(jnp.float32)
        return jnp.pad(v, ((0, 0), (0, d_inner - v.shape[1])))

    sp = jnp.concatenate(
        [row(params["bn_gamma"]), row(params["bn_beta"]),
         lp["convw"].reshape(d_conv, d_inner),
         row(lp["convb"]), row(lp["dtb"]), row(lp["dparam"]),
         row(wout_pool)], axis=0)                                         # (6+d_conv, di)

    wdelta = lp["wxdt_t"] @ lp["wdt_t"]                                   # (di, di) folded dt path
    return {
        "D": D,
        "Cin": Cin,
        "embw": params["emb_w"].reshape(3 * Cin, D),                      # im2col conv weight
        "sp": sp,
        "win": jnp.concatenate([lp["winx_t"], lp["winz_t"]], axis=-1),    # (D, 2*di)
        "wproj": jnp.concatenate([wdelta, lp["wxb_t"], lp["wxc_t"]], axis=-1),  # (di, di+2n)
        "a_nd": (-jnp.exp(lp["alog"])).T,                                 # (n, di) = (-exp(A_log))^T
    }


# --------------------------------------------------------------------------
# Forward wrapper (shape handling + padding/im2col glue, one fused pallas_call)
# --------------------------------------------------------------------------
def mamba_encoder_forward(x, packed):
    # mirror the PyTorch shape handling
    if x.ndim == 2:
        x = x[:, None, :]
    if x.ndim == 3 and x.shape[-1] == 1:
        x = jnp.transpose(x, (0, 2, 1))
    x = x.astype(jnp.float32)
    B, _, L = x.shape
    D = packed["D"]
    min_seq_len = 2
    # The pool branch (x.shape[-1] > min_seq_len) is always taken for D > 2
    # and is folded into the out_proj weight (see pack_params).
    assert D > min_seq_len

    # 'same' zero padding for the k=3 embedding conv + NCL->NLC transpose +
    # im2col (layout plumbing kept in the wrapper; kernel sees one matmul).
    xnlc = jnp.transpose(jnp.pad(x, ((0, 0), (0, 0), (1, 1))), (0, 2, 1))  # (B, L+2, Cin)
    xwin = jnp.concatenate([xnlc[:, k:k + L, :] for k in range(3)], axis=-1)  # (B, L, 3*Cin)

    args = (xwin, packed["embw"], packed["sp"], packed["win"],
            packed["wproj"], packed["a_nd"])

    # TODO(synk): for large B / L, grid over batch (or L tiles) with
    # dimension_semantics=("parallel",) to shard across v7x's two TensorCores;
    # at this tiny size a single fused program minimizes launch overhead.
    out = pl.pallas_call(
        _encoder_kernel,
        grid=(1,),
        in_specs=[_block_all(a.shape) for a in args],
        out_specs=_block_all((B, L)),
        out_shape=jax.ShapeDtypeStruct((B, L), jnp.float32),
    )(*args)
    return out  # (B, L)


# --------------------------------------------------------------------------
if __name__ == "__main__":
    B, C_in, L = 2, 4, 16
    encoder_dim = 32
    num_layers = 1

    root = jax.random.PRNGKey(0)
    pkey, xkey = jax.random.split(root)
    params = init_params(pkey, C_in, encoder_dim, num_layers)
    packed = pack_params(params)
    x = jax.random.normal(xkey, (B, C_in, L), dtype=jnp.float32)

    out = mamba_encoder_forward(x, packed)
    out = jax.block_until_ready(out)

    assert out.shape == (B, L), out.shape
    assert bool(jnp.all(jnp.isfinite(out)))
    print("KERNEL_OK")
</pallas_src>

<mosaic_0001>
module attributes {stable_mosaic.version = 11 : i64} {
  func.func @_encoder_kernel(%arg0: i32, %arg1: memref<2x16x12xf32, #tpu.memory_space<vmem>>, %arg2: memref<12x32xf32, #tpu.memory_space<vmem>>, %arg3: memref<10x64xf32, #tpu.memory_space<vmem>>, %arg4: memref<32x128xf32, #tpu.memory_space<vmem>>, %arg5: memref<64x96xf32, #tpu.memory_space<vmem>>, %arg6: memref<16x64xf32, #tpu.memory_space<vmem>>, %arg7: memref<2x16xf32, #tpu.memory_space<vmem>>) attributes {dimension_semantics = [#tpu.dimension_semantics<arbitrary>], iteration_bounds = array<i64: 1>, scalar_prefetch = 0 : i64, scratch_operands = 0 : i64, tpu.core_type = #tpu.core_type<tc>, window_params = [{pipeline_mode = #tpu.pipeline_mode<synchronous>, transform_indices = @transform_0, window_bounds = array<i64: 2, 16, 12>}, {pipeline_mode = #tpu.pipeline_mode<synchronous>, transform_indices = @transform_1, window_bounds = array<i64: 12, 32>}, {pipeline_mode = #tpu.pipeline_mode<synchronous>, transform_indices = @transform_2, window_bounds = array<i64: 10, 64>}, {pipeline_mode = #tpu.pipeline_mode<synchronous>, transform_indices = @transform_3, window_bounds = array<i64: 32, 128>}, {pipeline_mode = #tpu.pipeline_mode<synchronous>, transform_indices = @transform_4, window_bounds = array<i64: 64, 96>}, {pipeline_mode = #tpu.pipeline_mode<synchronous>, transform_indices = @transform_5, window_bounds = array<i64: 16, 64>}, {pipeline_mode = #tpu.pipeline_mode<synchronous>, transform_indices = @transform_6, window_bounds = array<i64: 2, 16>}]} {
    %c0 = arith.constant 0 : index
    %c0_0 = arith.constant 0 : index
    %c0_1 = arith.constant 0 : index
    %0 = vector.load %arg1[%c0, %c0_0, %c0_1] : memref<2x16x12xf32, #tpu.memory_space<vmem>>, vector<2x16x12xf32>
    %1 = vector.shape_cast %0 : vector<2x16x12xf32> to vector<32x12xf32>
    %c0_2 = arith.constant 0 : index
    %c0_3 = arith.constant 0 : index
    %2 = vector.load %arg2[%c0_2, %c0_3] : memref<12x32xf32, #tpu.memory_space<vmem>>, vector<12x32xf32>
    %cst = arith.constant dense<0.000000e+00> : vector<32x32xf32>
    %3 = tpu.matmul %1, %2, %cst {dimension_numbers = #tpu.dot_dimension_numbers<[1], [0], [0], [1], [0, 0, 1, 1], [], []>} : vector<32x12xf32>, vector<12x32xf32>, vector<32x32xf32> -> vector<32x32xf32>
    %cst_4 = arith.constant dense<0.000000e+00> : vector<32xf32>
    %4 = vector.multi_reduction <add>, %3, %cst_4 [0] : vector<32x32xf32> to vector<32xf32>
    %5 = vector.shape_cast %4 : vector<32xf32> to vector<1x32xf32>
    %cst_5 = arith.constant 3.200000e+01 : f32
    %6 = vector.broadcast %cst_5 : f32 to vector<1x32xf32>
    %7 = arith.divf %5, %6 : vector<1x32xf32>
    %8 = vector.broadcast %7 : vector<1x32xf32> to vector<32x32xf32>
    %9 = arith.subf %3, %8 : vector<32x32xf32>
    %10 = arith.mulf %9, %9 : vector<32x32xf32>
    %cst_6 = arith.constant dense<0.000000e+00> : vector<32xf32>
    %11 = vector.multi_reduction <add>, %10, %cst_6 [0] : vector<32x32xf32> to vector<32xf32>
    %12 = vector.shape_cast %11 : vector<32xf32> to vector<1x32xf32>
    %cst_7 = arith.constant 3.200000e+01 : f32
    %13 = vector.broadcast %cst_7 : f32 to vector<1x32xf32>
    %14 = arith.divf %12, %13 : vector<1x32xf32>
    %c0_8 = arith.constant 0 : index
    %c0_9 = arith.constant 0 : index
    %15 = vector.load %arg3[%c0_8, %c0_9] : memref<10x64xf32, #tpu.memory_space<vmem>>, vector<1x32xf32>
    %c1 = arith.constant 1 : index
    %c0_10 = arith.constant 0 : index
    %16 = vector.load %arg3[%c1, %c0_10] : memref<10x64xf32, #tpu.memory_space<vmem>>, vector<1x32xf32>
    %17 = vector.broadcast %7 : vector<1x32xf32> to vector<32x32xf32>
    %18 = arith.subf %3, %17 : vector<32x32xf32>
    %cst_11 = arith.constant 9.99999974E-6 : f32
    %19 = vector.broadcast %cst_11 : f32 to vector<1x32xf32>
    %20 = arith.addf %14, %19 : vector<1x32xf32>
    %21 = math.rsqrt %20 : vector<1x32xf32>
    %22 = vector.broadcast %21 : vector<1x32xf32> to vector<32x32xf32>
    %23 = arith.mulf %18, %22 : vector<32x32xf32>
    %24 = vector.broadcast %15 : vector<1x32xf32> to vector<32x32xf32>
    %25 = arith.mulf %23, %24 : vector<32x32xf32>
    %26 = vector.broadcast %16 : vector<1x32xf32> to vector<32x32xf32>
    %27 = arith.addf %25, %26 : vector<32x32xf32>
    %cst_12 = arith.constant 0.000000e+00 : f32
    %28 = vector.broadcast %cst_12 : f32 to vector<32x32xf32>
    %29 = arith.subf %28, %27 : vector<32x32xf32>
    %30 = math.exp %29 : vector<32x32xf32>
    %cst_13 = arith.constant 1.000000e+00 : f32
    %31 = vector.broadcast %cst_13 : f32 to vector<32x32xf32>
    %32 = arith.addf %31, %30 : vector<32x32xf32>
    %33 = tpu.reciprocal %32 {approx = true} : vector<32x32xf32> -> vector<32x32xf32>
    %34 = arith.mulf %27, %33 : vector<32x32xf32>
    %c0_14 = arith.constant 0 : index
    %c0_15 = arith.constant 0 : index
    %35 = vector.load %arg4[%c0_14, %c0_15] : memref<32x128xf32, #tpu.memory_space<vmem>>, vector<32x128xf32>
    %cst_16 = arith.constant dense<0.000000e+00> : vector<32x128xf32>
    %36 = tpu.matmul %34, %35, %cst_16 {dimension_numbers = #tpu.dot_dimension_numbers<[1], [0], [0], [1], [0, 0, 1, 1], [], []>} : vector<32x32xf32>, vector<32x128xf32>, vector<32x128xf32> -> vector<32x128xf32>
    %37 = vector.extract_strided_slice %36 {offsets = [0, 0], sizes = [32, 64], strides = [1, 1]} : vector<32x128xf32> to vector<32x64xf32>
    %38 = vector.shape_cast %37 : vector<32x64xf32> to vector<2x16x64xf32>
    %39 = vector.extract_strided_slice %36 {offsets = [0, 64], sizes = [32, 64], strides = [1, 1]} : vector<32x128xf32> to vector<32x64xf32>
    %40 = vector.shape_cast %39 : vector<32x64xf32> to vector<2x16x64xf32>
    %cst_17 = arith.constant 0.000000e+00 : f32
    %41 = vector.broadcast %cst_17 : f32 to vector<2x3x64xf32>
    %42 = tpu.concatenate %41, %38 in 1 : vector<2x3x64xf32>, vector<2x16x64xf32> -> vector<2x19x64xf32>
    %cst_18 = arith.constant 0.000000e+00 : f32
    %43 = vector.broadcast %cst_18 : f32 to vector<2x16x64xf32>
    %c2 = arith.constant 2 : index
    %c0_19 = arith.constant 0 : index
    %44 = vector.load %arg3[%c2, %c0_19] : memref<10x64xf32, #tpu.memory_space<vmem>>, vector<1x64xf32>
    %45 = vector.shape_cast %44 : vector<1x64xf32> to vector<1x1x64xf32>
    %46 = vector.extract_strided_slice %42 {offsets = [0, 0, 0], sizes = [2, 16, 64], strides = [1, 1, 1]} : vector<2x19x64xf32> to vector<2x16x64xf32>
    %47 = vector.broadcast %45 : vector<1x1x64xf32> to vector<2x16x64xf32>
    %48 = arith.mulf %46, %47 : vector<2x16x64xf32>
    %49 = arith.addf %43, %48 : vector<2x16x64xf32>
    %c3 = arith.constant 3 : index
    %c0_20 = arith.constant 0 : index
    %50 = vector.load %arg3[%c3, %c0_20] : memref<10x64xf32, #tpu.memory_space<vmem>>, vector<1x64xf32>
    %51 = vector.shape_cast %50 : vector<1x64xf32> to vector<1x1x64xf32>
    %52 = vector.extract_strided_slice %42 {offsets = [0, 1, 0], sizes = [2, 16, 64], strides = [1, 1, 1]} : vector<2x19x64xf32> to vector<2x16x64xf32>
    %53 = vector.broadcast %51 : vector<1x1x64xf32> to vector<2x16x64xf32>
    %54 = arith.mulf %52, %53 : vector<2x16x64xf32>
    %55 = arith.addf %49, %54 : vector<2x16x64xf32>
    %c4 = arith.constant 4 : index
    %c0_21 = arith.constant 0 : index
    %56 = vector.load %arg3[%c4, %c0_21] : memref<10x64xf32, #tpu.memory_space<vmem>>, vector<1x64xf32>
    %57 = vector.shape_cast %56 : vector<1x64xf32> to vector<1x1x64xf32>
    %58 = vector.extract_strided_slice %42 {offsets = [0, 2, 0], sizes = [2, 16, 64], strides = [1, 1, 1]} : vector<2x19x64xf32> to vector<2x16x64xf32>
    %59 = vector.broadcast %57 : vector<1x1x64xf32> to vector<2x16x64xf32>
    %60 = arith.mulf %58, %59 : vector<2x16x64xf32>
    %61 = arith.addf %55, %60 : vector<2x16x64xf32>
    %c5 = arith.constant 5 : index
    %c0_22 = arith.constant 0 : index
    %62 = vector.load %arg3[%c5, %c0_22] : memref<10x64xf32, #tpu.memory_space<vmem>>, vector<1x64xf32>
    %63 = vector.shape_cast %62 : vector<1x64xf32> to vector<1x1x64xf32>
    %64 = vector.extract_strided_slice %42 {offsets = [0, 3, 0], sizes = [2, 16, 64], strides = [1, 1, 1]} : vector<2x19x64xf32> to vector<2x16x64xf32>
    %65 = vector.broadcast %63 : vector<1x1x64xf32> to vector<2x16x64xf32>
    %66 = arith.mulf %64, %65 : vector<2x16x64xf32>
    %67 = arith.addf %61, %66 : vector<2x16x64xf32>
    %c6 = arith.constant 6 : index
    %c0_23 = arith.constant 0 : index
    %68 = vector.load %arg3[%c6, %c0_23] : memref<10x64xf32, #tpu.memory_space<vmem>>, vector<1x64xf32>
    %69 = vector.shape_cast %68 : vector<1x64xf32> to vector<1x1x64xf32>
    %70 = vector.broadcast %69 : vector<1x1x64xf32> to vector<2x16x64xf32>
    %71 = arith.addf %67, %70 : vector<2x16x64xf32>
    %cst_24 = arith.constant 0.000000e+00 : f32
    %72 = vector.broadcast %cst_24 : f32 to vector<2x16x64xf32>
    %73 = arith.subf %72, %71 : vector<2x16x64xf32>
    %74 = math.exp %73 : vector<2x16x64xf32>
    %cst_25 = arith.constant 1.000000e+00 : f32
    %75 = vector.broadcast %cst_25 : f32 to vector<2x16x64xf32>
    %76 = arith.addf %75, %74 : vector<2x16x64xf32>
    %77 = tpu.reciprocal %76 {approx = true} : vector<2x16x64xf32> -> vector<2x16x64xf32>
    %78 = arith.mulf %71, %77 : vector<2x16x64xf32>
    %79 = vector.shape_cast %78 : vector<2x16x64xf32> to vector<32x64xf32>
    %c0_26 = arith.constant 0 : index
    %c0_27 = arith.constant 0 : index
    %80 = vector.load %arg5[%c0_26, %c0_27] : memref<64x96xf32, #tpu.memory_space<vmem>>, vector<64x96xf32>
    %cst_28 = arith.constant dense<0.000000e+00> : vector<32x96xf32>
    %81 = tpu.matmul %79, %80, %cst_28 {dimension_numbers = #tpu.dot_dimension_numbers<[1], [0], [0], [1], [0, 0, 1, 1], [], []>} : vector<32x64xf32>, vector<64x96xf32>, vector<32x96xf32> -> vector<32x96xf32>
    %c7 = arith.constant 7 : index
    %c0_29 = arith.constant 0 : index
    %82 = vector.load %arg3[%c7, %c0_29] : memref<10x64xf32, #tpu.memory_space<vmem>>, vector<1x64xf32>
    %83 = vector.shape_cast %82 : vector<1x64xf32> to vector<1x1x64xf32>
    %84 = vector.extract_strided_slice %81 {offsets = [0, 0], sizes = [32, 64], strides = [1, 1]} : vector<32x96xf32> to vector<32x64xf32>
    %85 = vector.shape_cast %84 : vector<32x64xf32> to vector<2x16x64xf32>
    %86 = vector.broadcast %83 : vector<1x1x64xf32> to vector<2x16x64xf32>
    %87 = arith.addf %85, %86 : vector<2x16x64xf32>
    %cst_30 = arith.constant 0.000000e+00 : f32
    %88 = vector.broadcast %cst_30 : f32 to vector<2x16x64xf32>
    %89 = arith.maximumf %87, %88 : vector<2x16x64xf32>
    %90 = math.absf %87 : vector<2x16x64xf32>
    %cst_31 = arith.constant 0.000000e+00 : f32
    %91 = vector.broadcast %cst_31 : f32 to vector<2x16x64xf32>
    %92 = arith.subf %91, %90 : vector<2x16x64xf32>
    %93 = math.exp %92 : vector<2x16x64xf32>
    %cst_32 = arith.constant 1.000000e+00 : f32
    %94 = vector.broadcast %cst_32 : f32 to vector<2x16x64xf32>
    %95 = arith.addf %94, %93 : vector<2x16x64xf32>
    %96 = math.log %95 : vector<2x16x64xf32>
    %97 = arith.addf %89, %96 : vector<2x16x64xf32>
    %98 = vector.extract_strided_slice %81 {offsets = [0, 64], sizes = [32, 16], strides = [1, 1]} : vector<32x96xf32> to vector<32x16xf32>
    %99 = vector.shape_cast %98 : vector<32x16xf32> to vector<2x16x16xf32>
    %100 = vector.extract_strided_slice %81 {offsets = [0, 80], sizes = [32, 16], strides = [1, 1]} : vector<32x96xf32> to vector<32x16xf32>
    %101 = vector.shape_cast %100 : vector<32x16xf32> to vector<2x16x16xf32>
    %c0_33 = arith.constant 0 : index
    %c0_34 = arith.constant 0 : index
    %102 = vector.load %arg6[%c0_33, %c0_34] : memref<16x64xf32, #tpu.memory_space<vmem>>, vector<16x64xf32>
    %103 = vector.extract_strided_slice %97 {offsets = [0, 0, 0], sizes = [1, 16, 64], strides = [1, 1, 1]} : vector<2x16x64xf32> to vector<1x16x64xf32>
    %104 = vector.shape_cast %103 : vector<1x16x64xf32> to vector<16x64xf32>
    %105 = vector.extract_strided_slice %78 {offsets = [0, 0, 0], sizes = [1, 16, 64], strides = [1, 1, 1]} : vector<2x16x64xf32> to vector<1x16x64xf32>
    %106 = vector.shape_cast %105 : vector<1x16x64xf32> to vector<16x64xf32>
    %107 = vector.extract_strided_slice %99 {offsets = [0, 0, 0], sizes = [1, 16, 16], strides = [1, 1, 1]} : vector<2x16x16xf32> to vector<1x16x16xf32>
    %108 = vector.shape_cast %107 : vector<1x16x16xf32> to vector<16x16xf32>
    %109 = vector.extract_strided_slice %101 {offsets = [0, 0, 0], sizes = [1, 16, 16], strides = [1, 1, 1]} : vector<2x16x16xf32> to vector<1x16x16xf32>
    %110 = vector.shape_cast %109 : vector<1x16x16xf32> to vector<16x16xf32>
    %111 = vector.shape_cast %104 : vector<16x64xf32> to vector<16x1x64xf32>
    %112 = vector.shape_cast %102 : vector<16x64xf32> to vector<1x16x64xf32>
    %113 = vector.broadcast %111 : vector<16x1x64xf32> to vector<16x16x64xf32>
    %114 = vector.broadcast %112 : vector<1x16x64xf32> to vector<16x16x64xf32>
    %115 = arith.mulf %113, %114 : vector<16x16x64xf32>
    %116 = math.exp %115 : vector<16x16x64xf32>
    %117 = arith.mulf %104, %106 : vector<16x64xf32>
    %118 = vector.shape_cast %117 : vector<16x64xf32> to vector<16x1x64xf32>
    %119 = vector.shape_cast %108 : vector<16x16xf32> to vector<16x16x1xf32>
    %120 = vector.broadcast %118 : vector<16x1x64xf32> to vector<16x16x64xf32>
    %121 = vector.broadcast %119 : vector<16x16x1xf32> to vector<16x16x64xf32>
    %122 = arith.mulf %120, %121 : vector<16x16x64xf32>
    %123 = vector.shape_cast %110 : vector<16x16xf32> to vector<16x16x1xf32>
    %124 = vector.shape_cast %123 : vector<16x16x1xf32> to vector<16x16x1xf32>
    %125 = vector.broadcast %124 : vector<16x16x1xf32> to vector<16x16x64xf32>
    %126 = vector.extract_strided_slice %97 {offsets = [1, 0, 0], sizes = [1, 16, 64], strides = [1, 1, 1]} : vector<2x16x64xf32> to vector<1x16x64xf32>
    %127 = vector.shape_cast %126 : vector<1x16x64xf32> to vector<16x64xf32>
    %128 = vector.extract_strided_slice %78 {offsets = [1, 0, 0], sizes = [1, 16, 64], strides = [1, 1, 1]} : vector<2x16x64xf32> to vector<1x16x64xf32>
    %129 = vector.shape_cast %128 : vector<1x16x64xf32> to vector<16x64xf32>
    %130 = vector.extract_strided_slice %99 {offsets = [1, 0, 0], sizes = [1, 16, 16], strides = [1, 1, 1]} : vector<2x16x16xf32> to vector<1x16x16xf32>
    %131 = vector.shape_cast %130 : vector<1x16x16xf32> to vector<16x16xf32>
    %132 = vector.extract_strided_slice %101 {offsets = [1, 0, 0], sizes = [1, 16, 16], strides = [1, 1, 1]} : vector<2x16x16xf32> to vector<1x16x16xf32>
    %133 = vector.shape_cast %132 : vector<1x16x16xf32> to vector<16x16xf32>
    %134 = vector.shape_cast %127 : vector<16x64xf32> to vector<16x1x64xf32>
    %135 = vector.shape_cast %102 : vector<16x64xf32> to vector<1x16x64xf32>
    %136 = vector.broadcast %134 : vector<16x1x64xf32> to vector<16x16x64xf32>
    %137 = vector.broadcast %135 : vector<1x16x64xf32> to vector<16x16x64xf32>
    %138 = arith.mulf %136, %137 : vector<16x16x64xf32>
    %139 = math.exp %138 : vector<16x16x64xf32>
    %140 = arith.mulf %127, %129 : vector<16x64xf32>
    %141 = vector.shape_cast %140 : vector<16x64xf32> to vector<16x1x64xf32>
    %142 = vector.shape_cast %131 : vector<16x16xf32> to vector<16x16x1xf32>
    %143 = vector.broadcast %141 : vector<16x1x64xf32> to vector<16x16x64xf32>
    %144 = vector.broadcast %142 : vector<16x16x1xf32> to vector<16x16x64xf32>
    %145 = arith.mulf %143, %144 : vector<16x16x64xf32>
    %146 = vector.shape_cast %133 : vector<16x16xf32> to vector<16x16x1xf32>
    %147 = vector.shape_cast %146 : vector<16x16x1xf32> to vector<16x16x1xf32>
    %148 = vector.broadcast %147 : vector<16x16x1xf32> to vector<16x16x64xf32>
    %149 = tpu.concatenate %116, %139 in 2 : vector<16x16x64xf32>, vector<16x16x64xf32> -> vector<16x16x128xf32>
    %150 = tpu.concatenate %122, %145 in 2 : vector<16x16x64xf32>, vector<16x16x64xf32> -> vector<16x16x128xf32>
    %151 = tpu.concatenate %125, %148 in 2 : vector<16x16x64xf32>, vector<16x16x64xf32> -> vector<16x16x128xf32>
    %cst_35 = arith.constant 0.000000e+00 : f32
    %152 = vector.broadcast %cst_35 : f32 to vector<16x128xf32>
    %153 = vector.extract_strided_slice %149 {offsets = [0, 0, 0], sizes = [1, 16, 128], strides = [1, 1, 1]} : vector<16x16x128xf32> to vector<1x16x128xf32>
    %154 = vector.shape_cast %153 : vector<1x16x128xf32> to vector<16x128xf32>
    %155 = arith.mulf %154, %152 : vector<16x128xf32>
    %156 = vector.extract_strided_slice %150 {offsets = [0, 0, 0], sizes = [1, 16, 128], strides = [1, 1, 1]} : vector<16x16x128xf32> to vector<1x16x128xf32>
    %157 = vector.shape_cast %156 : vector<1x16x128xf32> to vector<16x128xf32>
    %158 = arith.addf %155, %157 : vector<16x128xf32>
    %159 = vector.extract_strided_slice %151 {offsets = [0, 0, 0], sizes = [1, 16, 128], strides = [1, 1, 1]} : vector<16x16x128xf32> to vector<1x16x128xf32>
    %160 = vector.shape_cast %159 : vector<1x16x128xf32> to vector<16x128xf32>
    %161 = arith.mulf %158, %160 : vector<16x128xf32>
    %cst_36 = arith.constant dense<0.000000e+00> : vector<128xf32>
    %162 = vector.multi_reduction <add>, %161, %cst_36 [0] : vector<16x128xf32> to vector<128xf32>
    %163 = vector.shape_cast %162 : vector<128xf32> to vector<1x128xf32>
    %164 = vector.extract_strided_slice %149 {offsets = [1, 0, 0], sizes = [1, 16, 128], strides = [1, 1, 1]} : vector<16x16x128xf32> to vector<1x16x128xf32>
    %165 = vector.shape_cast %164 : vector<1x16x128xf32> to vector<16x128xf32>
    %166 = arith.mulf %165, %158 : vector<16x128xf32>
    %167 = vector.extract_strided_slice %150 {offsets = [1, 0, 0], sizes = [1, 16, 128], strides = [1, 1, 1]} : vector<16x16x128xf32> to vector<1x16x128xf32>
    %168 = vector.shape_cast %167 : vector<1x16x128xf32> to vector<16x128xf32>
    %169 = arith.addf %166, %168 : vector<16x128xf32>
    %170 = vector.extract_strided_slice %151 {offsets = [1, 0, 0], sizes = [1, 16, 128], strides = [1, 1, 1]} : vector<16x16x128xf32> to vector<1x16x128xf32>
    %171 = vector.shape_cast %170 : vector<1x16x128xf32> to vector<16x128xf32>
    %172 = arith.mulf %169, %171 : vector<16x128xf32>
    %cst_37 = arith.constant dense<0.000000e+00> : vector<128xf32>
    %173 = vector.multi_reduction <add>, %172, %cst_37 [0] : vector<16x128xf32> to vector<128xf32>
    %174 = vector.shape_cast %173 : vector<128xf32> to vector<1x128xf32>
    %175 = vector.extract_strided_slice %149 {offsets = [2, 0, 0], sizes = [1, 16, 128], strides = [1, 1, 1]} : vector<16x16x128xf32> to vector<1x16x128xf32>
    %176 = vector.shape_cast %175 : vector<1x16x128xf32> to vector<16x128xf32>
    %177 = arith.mulf %176, %169 : vector<16x128xf32>
    %178 = vector.extract_strided_slice %150 {offsets = [2, 0, 0], sizes = [1, 16, 128], strides = [1, 1, 1]} : vector<16x16x128xf32> to vector<1x16x128xf32>
    %179 = vector.shape_cast %178 : vector<1x16x128xf32> to vector<16x128xf32>
    %180 = arith.addf %177, %179 : vector<16x128xf32>
    %181 = vector.extract_strided_slice %151 {offsets = [2, 0, 0], sizes = [1, 16, 128], strides = [1, 1, 1]} : vector<16x16x128xf32> to vector<1x16x128xf32>
    %182 = vector.shape_cast %181 : vector<1x16x128xf32> to vector<16x128xf32>
    %183 = arith.mulf %180, %182 : vector<16x128xf32>
    %cst_38 = arith.constant dense<0.000000e+00> : vector<128xf32>
    %184 = vector.multi_reduction <add>, %183, %cst_38 [0] : vector<16x128xf32> to vector<128xf32>
    %185 = vector.shape_cast %184 : vector<128xf32> to vector<1x128xf32>
    %186 = vector.extract_strided_slice %149 {offsets = [3, 0, 0], sizes = [1, 16, 128], strides = [1, 1, 1]} : vector<16x16x128xf32> to vector<1x16x128xf32>
    %187 = vector.shape_cast %186 : vector<1x16x128xf32> to vector<16x128xf32>
    %188 = arith.mulf %187, %180 : vector<16x128xf32>
    %189 = vector.extract_strided_slice %150 {offsets = [3, 0, 0], sizes = [1, 16, 128], strides = [1, 1, 1]} : vector<16x16x128xf32> to vector<1x16x128xf32>
    %190 = vector.shape_cast %189 : vector<1x16x128xf32> to vector<16x128xf32>
    %191 = arith.addf %188, %190 : vector<16x128xf32>
    %192 = vector.extract_strided_slice %151 {offsets = [3, 0, 0], sizes = [1, 16, 128], strides = [1, 1, 1]} : vector<16x16x128xf32> to vector<1x16x128xf32>
    %193 = vector.shape_cast %192 : vector<1x16x128xf32> to vector<16x128xf32>
    %194 = arith.mulf %191, %193 : vector<16x128xf32>
    %cst_39 = arith.constant dense<0.000000e+00> : vector<128xf32>
    %195 = vector.multi_reduction <add>, %194, %cst_39 [0] : vector<16x128xf32> to vector<128xf32>
    %196 = vector.shape_cast %195 : vector<128xf32> to vector<1x128xf32>
    %197 = vector.extract_strided_slice %149 {offsets = [4, 0, 0], sizes = [1, 16, 128], strides = [1, 1, 1]} : vector<16x16x128xf32> to vector<1x16x128xf32>
    %198 = vector.shape_cast %197 : vector<1x16x128xf32> to vector<16x128xf32>
    %199 = arith.mulf %198, %191 : vector<16x128xf32>
    %200 = vector.extract_strided_slice %150 {offsets = [4, 0, 0], sizes = [1, 16, 128], strides = [1, 1, 1]} : vector<16x16x128xf32> to vector<1x16x128xf32>
    %201 = vector.shape_cast %200 : vector<1x16x128xf32> to vector<16x128xf32>
    %202 = arith.addf %199, %201 : vector<16x128xf32>
    %203 = vector.extract_strided_slice %151 {offsets = [4, 0, 0], sizes = [1, 16, 128], strides = [1, 1, 1]} : vector<16x16x128xf32> to vector<1x16x128xf32>
    %204 = vector.shape_cast %203 : vector<1x16x128xf32> to vector<16x128xf32>
    %205 = arith.mulf %202, %204 : vector<16x128xf32>
    %cst_40 = arith.constant dense<0.000000e+00> : vector<128xf32>
    %206 = vector.multi_reduction <add>, %205, %cst_40 [0] : vector<16x128xf32> to vector<128xf32>
    %207 = vector.shape_cast %206 : vector<128xf32> to vector<1x128xf32>
    %208 = vector.extract_strided_slice %149 {offsets = [5, 0, 0], sizes = [1, 16, 128], strides = [1, 1, 1]} : vector<16x16x128xf32> to vector<1x16x128xf32>
    %209 = vector.shape_cast %208 : vector<1x16x128xf32> to vector<16x128xf32>
    %210 = arith.mulf %209, %202 : vector<16x128xf32>
    %211 = vector.extract_strided_slice %150 {offsets = [5, 0, 0], sizes = [1, 16, 128], strides = [1, 1, 1]} : vector<16x16x128xf32> to vector<1x16x128xf32>
    %212 = vector.shape_cast %211 : vector<1x16x128xf32> to vector<16x128xf32>
    %213 = arith.addf %210, %212 : vector<16x128xf32>
    %214 = vector.extract_strided_slice %151 {offsets = [5, 0, 0], sizes = [1, 16, 128], strides = [1, 1, 1]} : vector<16x16x128xf32> to vector<1x16x128xf32>
    %215 = vector.shape_cast %214 : vector<1x16x128xf32> to vector<16x128xf32>
    %216 = arith.mulf %213, %215 : vector<16x128xf32>
    %cst_41 = arith.constant dense<0.000000e+00> : vector<128xf32>
    %217 = vector.multi_reduction <add>, %216, %cst_41 [0] : vector<16x128xf32> to vector<128xf32>
    %218 = vector.shape_cast %217 : vector<128xf32> to vector<1x128xf32>
    %219 = vector.extract_strided_slice %149 {offsets = [6, 0, 0], sizes = [1, 16, 128], strides = [1, 1, 1]} : vector<16x16x128xf32> to vector<1x16x128xf32>
    %220 = vector.shape_cast %219 : vector<1x16x128xf32> to vector<16x128xf32>
    %221 = arith.mulf %220, %213 : vector<16x128xf32>
    %222 = vector.extract_strided_slice %150 {offsets = [6, 0, 0], sizes = [1, 16, 128], strides = [1, 1, 1]} : vector<16x16x128xf32> to vector<1x16x128xf32>
    %223 = vector.shape_cast %222 : vector<1x16x128xf32> to vector<16x128xf32>
    %224 = arith.addf %221, %223 : vector<16x128xf32>
    %225 = vector.extract_strided_slice %151 {offsets = [6, 0, 0], sizes = [1, 16, 128], strides = [1, 1, 1]} : vector<16x16x128xf32> to vector<1x16x128xf32>
    %226 = vector.shape_cast %225 : vector<1x16x128xf32> to vector<16x128xf32>
    %227 = arith.mulf %224, %226 : vector<16x128xf32>
    %cst_42 = arith.constant dense<0.000000e+00> : vector<128xf32>
    %228 = vector.multi_reduction <add>, %227, %cst_42 [0] : vector<16x128xf32> to vector<128xf32>
    %229 = vector.shape_cast %228 : vector<128xf32> to vector<1x128xf32>
    %230 = vector.extract_strided_slice %149 {offsets = [7, 0, 0], sizes = [1, 16, 128], strides = [1, 1, 1]} : vector<16x16x128xf32> to vector<1x16x128xf32>
    %231 = vector.shape_cast %230 : vector<1x16x128xf32> to vector<16x128xf32>
    %232 = arith.mulf %231, %224 : vector<16x128xf32>
    %233 = vector.extract_strided_slice %150 {offsets = [7, 0, 0], sizes = [1, 16, 128], strides = [1, 1, 1]} : vector<16x16x128xf32> to vector<1x16x128xf32>
    %234 = vector.shape_cast %233 : vector<1x16x128xf32> to vector<16x128xf32>
    %235 = arith.addf %232, %234 : vector<16x128xf32>
    %236 = vector.extract_strided_slice %151 {offsets = [7, 0, 0], sizes = [1, 16, 128], strides = [1, 1, 1]} : vector<16x16x128xf32> to vector<1x16x128xf32>
    %237 = vector.shape_cast %236 : vector<1x16x128xf32> to vector<16x128xf32>
    %238 = arith.mulf %235, %237 : vector<16x128xf32>
    %cst_43 = arith.constant dense<0.000000e+00> : vector<128xf32>
    %239 = vector.multi_reduction <add>, %238, %cst_43 [0] : vector<16x128xf32> to vector<128xf32>
    %240 = vector.shape_cast %239 : vector<128xf32> to vector<1x128xf32>
    %241 = vector.extract_strided_slice %149 {offsets = [8, 0, 0], sizes = [1, 16, 128], strides = [1, 1, 1]} : vector<16x16x128xf32> to vector<1x16x128xf32>
    %242 = vector.shape_cast %241 : vector<1x16x128xf32> to vector<16x128xf32>
    %243 = arith.mulf %242, %235 : vector<16x128xf32>
    %244 = vector.extract_strided_slice %150 {offsets = [8, 0, 0], sizes = [1, 16, 128], strides = [1, 1, 1]} : vector<16x16x128xf32> to vector<1x16x128xf32>
    %245 = vector.shape_cast %244 : vector<1x16x128xf32> to vector<16x128xf32>
    %246 = arith.addf %243, %245 : vector<16x128xf32>
    %247 = vector.extract_strided_slice %151 {offsets = [8, 0, 0], sizes = [1, 16, 128], strides = [1, 1, 1]} : vector<16x16x128xf32> to vector<1x16x128xf32>
    %248 = vector.shape_cast %247 : vector<1x16x128xf32> to vector<16x128xf32>
    %249 = arith.mulf %246, %248 : vector<16x128xf32>
    %cst_44 = arith.constant dense<0.000000e+00> : vector<128xf32>
    %250 = vector.multi_reduction <add>, %249, %cst_44 [0] : vector<16x128xf32> to vector<128xf32>
    %251 = vector.shape_cast %250 : vector<128xf32> to vector<1x128xf32>
    %252 = vector.extract_strided_slice %149 {offsets = [9, 0, 0], sizes = [1, 16, 128], strides = [1, 1, 1]} : vector<16x16x128xf32> to vector<1x16x128xf32>
    %253 = vector.shape_cast %252 : vector<1x16x128xf32> to vector<16x128xf32>
    %254 = arith.mulf %253, %246 : vector<16x128xf32>
    %255 = vector.extract_strided_slice %150 {offsets = [9, 0, 0], sizes = [1, 16, 128], strides = [1, 1, 1]} : vector<16x16x128xf32> to vector<1x16x128xf32>
    %256 = vector.shape_cast %255 : vector<1x16x128xf32> to vector<16x128xf32>
    %257 = arith.addf %254, %256 : vector<16x128xf32>
    %258 = vector.extract_strided_slice %151 {offsets = [9, 0, 0], sizes = [1, 16, 128], strides = [1, 1, 1]} : vector<16x16x128xf32> to vector<1x16x128xf32>
    %259 = vector.shape_cast %258 : vector<1x16x128xf32> to vector<16x128xf32>
    %260 = arith.mulf %257, %259 : vector<16x128xf32>
    %cst_45 = arith.constant dense<0.000000e+00> : vector<128xf32>
    %261 = vector.multi_reduction <add>, %260, %cst_45 [0] : vector<16x128xf32> to vector<128xf32>
    %262 = vector.shape_cast %261 : vector<128xf32> to vector<1x128xf32>
    %263 = vector.extract_strided_slice %149 {offsets = [10, 0, 0], sizes = [1, 16, 128], strides = [1, 1, 1]} : vector<16x16x128xf32> to vector<1x16x128xf32>
    %264 = vector.shape_cast %263 : vector<1x16x128xf32> to vector<16x128xf32>
    %265 = arith.mulf %264, %257 : vector<16x128xf32>
    %266 = vector.extract_strided_slice %150 {offsets = [10, 0, 0], sizes = [1, 16, 128], strides = [1, 1, 1]} : vector<16x16x128xf32> to vector<1x16x128xf32>
    %267 = vector.shape_cast %266 : vector<1x16x128xf32> to vector<16x128xf32>
    %268 = arith.addf %265, %267 : vector<16x128xf32>
    %269 = vector.extract_strided_slice %151 {offsets = [10, 0, 0], sizes = [1, 16, 128], strides = [1, 1, 1]} : vector<16x16x128xf32> to vector<1x16x128xf32>
    %270 = vector.shape_cast %269 : vector<1x16x128xf32> to vector<16x128xf32>
    %271 = arith.mulf %268, %270 : vector<16x128xf32>
    %cst_46 = arith.constant dense<0.000000e+00> : vector<128xf32>
    %272 = vector.multi_reduction <add>, %271, %cst_46 [0] : vector<16x128xf32> to vector<128xf32>
    %273 = vector.shape_cast %272 : vector<128xf32> to vector<1x128xf32>
    %274 = vector.extract_strided_slice %149 {offsets = [11, 0, 0], sizes = [1, 16, 128], strides = [1, 1, 1]} : vector<16x16x128xf32> to vector<1x16x128xf32>
    %275 = vector.shape_cast %274 : vector<1x16x128xf32> to vector<16x128xf32>
    %276 = arith.mulf %275, %268 : vector<16x128xf32>
    %277 = vector.extract_strided_slice %150 {offsets = [11, 0, 0], sizes = [1, 16, 128], strides = [1, 1, 1]} : vector<16x16x128xf32> to vector<1x16x128xf32>
    %278 = vector.shape_cast %277 : vector<1x16x128xf32> to vector<16x128xf32>
    %279 = arith.addf %276, %278 : vector<16x128xf32>
    %280 = vector.extract_strided_slice %151 {offsets = [11, 0, 0], sizes = [1, 16, 128], strides = [1, 1, 1]} : vector<16x16x128xf32> to vector<1x16x128xf32>
    %281 = vector.shape_cast %280 : vector<1x16x128xf32> to vector<16x128xf32>
    %282 = arith.mulf %279, %281 : vector<16x128xf32>
    %cst_47 = arith.constant dense<0.000000e+00> : vector<128xf32>
    %283 = vector.multi_reduction <add>, %282, %cst_47 [0] : vector<16x128xf32> to vector<128xf32>
    %284 = vector.shape_cast %283 : vector<128xf32> to vector<1x128xf32>
    %285 = vector.extract_strided_slice %149 {offsets = [12, 0, 0], sizes = [1, 16, 128], strides = [1, 1, 1]} : vector<16x16x128xf32> to vector<1x16x128xf32>
    %286 = vector.shape_cast %285 : vector<1x16x128xf32> to vector<16x128xf32>
    %287 = arith.mulf %286, %279 : vector<16x128xf32>
    %288 = vector.extract_strided_slice %150 {offsets = [12, 0, 0], sizes = [1, 16, 128], strides = [1, 1, 1]} : vector<16x16x128xf32> to vector<1x16x128xf32>
    %289 = vector.shape_cast %288 : vector<1x16x128xf32> to vector<16x128xf32>
    %290 = arith.addf %287, %289 : vector<16x128xf32>
    %291 = vector.extract_strided_slice %151 {offsets = [12, 0, 0], sizes = [1, 16, 128], strides = [1, 1, 1]} : vector<16x16x128xf32> to vector<1x16x128xf32>
    %292 = vector.shape_cast %291 : vector<1x16x128xf32> to vector<16x128xf32>
    %293 = arith.mulf %290, %292 : vector<16x128xf32>
    %cst_48 = arith.constant dense<0.000000e+00> : vector<128xf32>
    %294 = vector.multi_reduction <add>, %293, %cst_48 [0] : vector<16x128xf32> to vector<128xf32>
    %295 = vector.shape_cast %294 : vector<128xf32> to vector<1x128xf32>
    %296 = vector.extract_strided_slice %149 {offsets = [13, 0, 0], sizes = [1, 16, 128], strides = [1, 1, 1]} : vector<16x16x128xf32> to vector<1x16x128xf32>
    %297 = vector.shape_cast %296 : vector<1x16x128xf32> to vector<16x128xf32>
    %298 = arith.mulf %297, %290 : vector<16x128xf32>
    %299 = vector.extract_strided_slice %150 {offsets = [13, 0, 0], sizes = [1, 16, 128], strides = [1, 1, 1]} : vector<16x16x128xf32> to vector<1x16x128xf32>
    %300 = vector.shape_cast %299 : vector<1x16x128xf32> to vector<16x128xf32>
    %301 = arith.addf %298, %300 : vector<16x128xf32>
    %302 = vector.extract_strided_slice %151 {offsets = [13, 0, 0], sizes = [1, 16, 128], strides = [1, 1, 1]} : vector<16x16x128xf32> to vector<1x16x128xf32>
    %303 = vector.shape_cast %302 : vector<1x16x128xf32> to vector<16x128xf32>
    %304 = arith.mulf %301, %303 : vector<16x128xf32>
    %cst_49 = arith.constant dense<0.000000e+00> : vector<128xf32>
    %305 = vector.multi_reduction <add>, %304, %cst_49 [0] : vector<16x128xf32> to vector<128xf32>
    %306 = vector.shape_cast %305 : vector<128xf32> to vector<1x128xf32>
    %307 = vector.extract_strided_slice %149 {offsets = [14, 0, 0], sizes = [1, 16, 128], strides = [1, 1, 1]} : vector<16x16x128xf32> to vector<1x16x128xf32>
    %308 = vector.shape_cast %307 : vector<1x16x128xf32> to vector<16x128xf32>
    %309 = arith.mulf %308, %301 : vector<16x128xf32>
    %310 = vector.extract_strided_slice %150 {offsets = [14, 0, 0], sizes = [1, 16, 128], strides = [1, 1, 1]} : vector<16x16x128xf32> to vector<1x16x128xf32>
    %311 = vector.shape_cast %310 : vector<1x16x128xf32> to vector<16x128xf32>
    %312 = arith.addf %309, %311 : vector<16x128xf32>
    %313 = vector.extract_strided_slice %151 {offsets = [14, 0, 0], sizes = [1, 16, 128], strides = [1, 1, 1]} : vector<16x16x128xf32> to vector<1x16x128xf32>
    %314 = vector.shape_cast %313 : vector<1x16x128xf32> to vector<16x128xf32>
    %315 = arith.mulf %312, %314 : vector<16x128xf32>
    %cst_50 = arith.constant dense<0.000000e+00> : vector<128xf32>
    %316 = vector.multi_reduction <add>, %315, %cst_50 [0] : vector<16x128xf32> to vector<128xf32>
    %317 = vector.shape_cast %316 : vector<128xf32> to vector<1x128xf32>
    %318 = vector.extract_strided_slice %149 {offsets = [15, 0, 0], sizes = [1, 16, 128], strides = [1, 1, 1]} : vector<16x16x128xf32> to vector<1x16x128xf32>
    %319 = vector.shape_cast %318 : vector<1x16x128xf32> to vector<16x128xf32>
    %320 = arith.mulf %319, %312 : vector<16x128xf32>
    %321 = vector.extract_strided_slice %150 {offsets = [15, 0, 0], sizes = [1, 16, 128], strides = [1, 1, 1]} : vector<16x16x128xf32> to vector<1x16x128xf32>
    %322 = vector.shape_cast %321 : vector<1x16x128xf32> to vector<16x128xf32>
    %323 = arith.addf %320, %322 : vector<16x128xf32>
    %324 = vector.extract_strided_slice %151 {offsets = [15, 0, 0], sizes = [1, 16, 128], strides = [1, 1, 1]} : vector<16x16x128xf32> to vector<1x16x128xf32>
    %325 = vector.shape_cast %324 : vector<1x16x128xf32> to vector<16x128xf32>
    %326 = arith.mulf %323, %325 : vector<16x128xf32>
    %cst_51 = arith.constant dense<0.000000e+00> : vector<128xf32>
    %327 = vector.multi_reduction <add>, %326, %cst_51 [0] : vector<16x128xf32> to vector<128xf32>
    %328 = vector.shape_cast %327 : vector<128xf32> to vector<1x128xf32>
    %329 = tpu.concatenate %163, %174, %185, %196, %207, %218, %229, %240, %251, %262, %273, %284, %295, %306, %317, %328 in 0 : vector<1x128xf32>, vector<1x128xf32>, vector<1x128xf32>, vector<1x128xf32>, vector<1x128xf32>, vector<1x128xf32>, vector<1x128xf32>, vector<1x128xf32>, vector<1x128xf32>, vector<1x128xf32>, vector<1x128xf32>, vector<1x128xf32>, vector<1x128xf32>, vector<1x128xf32>, vector<1x128xf32>, vector<1x128xf32> -> vector<16x128xf32>
    %330 = vector.extract_strided_slice %329 {offsets = [0, 0], sizes = [16, 64], strides = [1, 1]} : vector<16x128xf32> to vector<16x64xf32>
    %331 = vector.shape_cast %330 : vector<16x64xf32> to vector<1x16x64xf32>
    %332 = vector.extract_strided_slice %329 {offsets = [0, 64], sizes = [16, 64], strides = [1, 1]} : vector<16x128xf32> to vector<16x64xf32>
    %333 = vector.shape_cast %332 : vector<16x64xf32> to vector<1x16x64xf32>
    %334 = tpu.concatenate %331, %333 in 0 : vector<1x16x64xf32>, vector<1x16x64xf32> -> vector<2x16x64xf32>
    %c8 = arith.constant 8 : index
    %c0_52 = arith.constant 0 : index
    %335 = vector.load %arg3[%c8, %c0_52] : memref<10x64xf32, #tpu.memory_space<vmem>>, vector<1x64xf32>
    %336 = vector.shape_cast %335 : vector<1x64xf32> to vector<1x1x64xf32>
    %c9 = arith.constant 9 : index
    %c0_53 = arith.constant 0 : index
    %337 = vector.load %arg3[%c9, %c0_53] : memref<10x64xf32, #tpu.memory_space<vmem>>, vector<1x64xf32>
    %338 = vector.shape_cast %337 : vector<1x64xf32> to vector<1x1x64xf32>
    %339 = vector.broadcast %336 : vector<1x1x64xf32> to vector<2x16x64xf32>
    %340 = arith.mulf %78, %339 : vector<2x16x64xf32>
    %341 = arith.addf %334, %340 : vector<2x16x64xf32>
    %cst_54 = arith.constant 0.000000e+00 : f32
    %342 = vector.broadcast %cst_54 : f32 to vector<2x16x64xf32>
    %343 = arith.subf %342, %40 : vector<2x16x64xf32>
    %344 = math.exp %343 : vector<2x16x64xf32>
    %cst_55 = arith.constant 1.000000e+00 : f32
    %345 = vector.broadcast %cst_55 : f32 to vector<2x16x64xf32>
    %346 = arith.addf %345, %344 : vector<2x16x64xf32>
    %347 = tpu.reciprocal %346 {approx = true} : vector<2x16x64xf32> -> vector<2x16x64xf32>
    %348 = arith.mulf %40, %347 : vector<2x16x64xf32>
    %349 = arith.mulf %341, %348 : vector<2x16x64xf32>
    %350 = vector.broadcast %338 : vector<1x1x64xf32> to vector<2x16x64xf32>
    %351 = arith.mulf %349, %350 : vector<2x16x64xf32>
    %cst_56 = arith.constant dense<0.000000e+00> : vector<2x16xf32>
    %352 = vector.multi_reduction <add>, %351, %cst_56 [2] : vector<2x16x64xf32> to vector<2x16xf32>
    %c0_57 = arith.constant 0 : index
    %c0_58 = arith.constant 0 : index
    %353 = vector.load %arg7[%c0_57, %c0_58] : memref<2x16xf32, #tpu.memory_space<vmem>>, vector<2x16xf32>
    tpu.vector_store %arg7[%c0_57, %c0_58], %352 {strides = array<i32>} : memref<2x16xf32, #tpu.memory_space<vmem>>, vector<2x16xf32>,
    return
  }
  func.func @transform_0(%arg0: i32) -> (i32, i32, i32) {
    %c0_i32 = arith.constant 0 : i32
    %c0_i32_0 = arith.constant 0 : i32
    %c0_i32_1 = arith.constant 0 : i32
    %c0_i32_2 = arith.constant 0 : i32
    return %c0_i32, %c0_i32_0, %c0_i32_1 : i32, i32, i32
  }
  func.func @transform_1(%arg0: i32) -> (i32, i32) {
    %c0_i32 = arith.constant 0 : i32
    %c0_i32_0 = arith.constant 0 : i32
    %c0_i32_1 = arith.constant 0 : i32
    return %c0_i32, %c0_i32_0 : i32, i32
  }
  func.func @transform_2(%arg0: i32) -> (i32, i32) {
    %c0_i32 = arith.constant 0 : i32
    %c0_i32_0 = arith.constant 0 : i32
    %c0_i32_1 = arith.constant 0 : i32
    return %c0_i32, %c0_i32_0 : i32, i32
  }
  func.func @transform_3(%arg0: i32) -> (i32, i32) {
    %c0_i32 = arith.constant 0 : i32
    %c0_i32_0 = arith.constant 0 : i32
    %c0_i32_1 = arith.constant 0 : i32
    return %c0_i32, %c0_i32_0 : i32, i32
  }
  func.func @transform_4(%arg0: i32) -> (i32, i32) {
    %c0_i32 = arith.constant 0 : i32
    %c0_i32_0 = arith.constant 0 : i32
    %c0_i32_1 = arith.constant 0 : i32
    return %c0_i32, %c0_i32_0 : i32, i32
  }
  func.func @transform_5(%arg0: i32) -> (i32, i32) {
    %c0_i32 = arith.constant 0 : i32
    %c0_i32_0 = arith.constant 0 : i32
    %c0_i32_1 = arith.constant 0 : i32
    return %c0_i32, %c0_i32_0 : i32, i32
  }
  func.func @transform_6(%arg0: i32) -> (i32, i32) {
    %c0_i32 = arith.constant 0 : i32
    %c0_i32_0 = arith.constant 0 : i32
    %c0_i32_1 = arith.constant 0 : i32
    return %c0_i32, %c0_i32_0 : i32, i32
  }
}

</mosaic_0001>

<bundles_post_ra>
// kernel: tpu_custom_call.1
= control target key start
LH: loop header
LB: loop body
LE: loop exit
PB: predicated region body
PF: predicated region fallthrough
CT: control target
= control target key end

     0   :  { %11 = vsyncpa [#allocation3], 0  ;;  %s5022_s0 = inlined_call_operand.vmem [shape: f32[2,16,12], index: 0, kind: input, shape index: {}]   ;;  %s5023_s1 = inlined_call_operand.hbm [shape: f32[12,32], index: 1, kind: input, shape index: {}]   ;;  %s5024_s2 = inlined_call_operand.hbm [shape: f32[10,64], index: 2, kind: input, shape index: {}]   ;;  %s5025_s3 = inlined_call_operand.hbm [shape: f32[32,128], index: 3, kind: input, shape index: {}]   ;;  %s5026_s4 = inlined_call_operand.vmem [shape: f32[64,96], index: 4, kind: input, shape index: {}]   ;;  %s5027_s5 = inlined_call_operand.hbm [shape: f32[16,64], index: 5, kind: input, shape index: {}]   ;;  %s5028_s6 = inlined_call_operand.hbm [shape: f32[2,16], index: 6, kind: output, shape index: {}]  }
   0x1   :  { %12 = vsyncpa [#allocation6], 0 }
   0x2   :  { %13 = vsyncpa [#allocation9], 0 }
   0x3   :  { %14 = vsyncpa [#allocation4], 0  ;;  %s3479_s21 = smov [#allocation5]   ;;  %s3480_s23 = smov [#allocation2]  }
   0x4   :  { %s34_s22 = sshll.u32 %s3479_s21, 4  ;;  %s22_s24 = sshll.u32 %s3480_s23, 4  ;;  %s35_s22 = int_to_ptr.vmem [resolvable:$true] %s34_s22  ;;  %s3524_s24 = int_to_ptr.vmem [resolvable:$true] %s22_s24 }
   0x5   :  { %s3361_s27 = scalar_lea.hbm %s5024_s2, 256 }
   0x6   :  { %p3362_p0 = scmp.ne.s32.totalorder %s5024_s2, %s3361_s27  ;;  %p3365_p1 = scmp.lt.u32.totalorder %s3361_s27, %s5024_s2 }
   0x8   :  { %p3367_p2 = pnand %p3365_p1, %p3362_p0 }
   0xa   :  { %3370 = shalt.err (!%p3367_p2)
}
   0xb   :  { %s3371_s8 = scalar_lea.vmem %s35_s22, 256  ;;  %p3376_p4 = scmp.lt.s32.totalorder %s35_s22, %s35_s22 }
   0xc   :  { %p3372_p3 = scmp.ne.s32.totalorder %s35_s22, %s3371_s8  ;;  %p3377_p5 = scmp.lt.s32.totalorder %s3371_s8, %s3371_s8 }
   0xe   :  { %p3378_p6 = por %p3377_p5, %p3376_p4 }
  0x10   :  { %p3379_p7 = pnand %p3378_p6, %p3372_p3 }
  0x12   :  { %3382 = shalt.err (!%p3379_p7)
}
  0x13   :  { %s3481_s9 = smov 128   ;;  %s3482_s10 = smov 8  }
  0x14   :  { %40 = dma.hbm_to_vmem [thread:$0]  %s5024_s2, 256, %s35_s22, [#allocation6], %s3481_s9, %s3481_s9, %s3482_s10  }
  0x15   :  { %s3383_s15 = scalar_lea.hbm %s5023_s1, 256 }
  0x16   :  { %p3384_p8 = scmp.ne.s32.totalorder %s5023_s1, %s3383_s15  ;;  %p3387_p9 = scmp.lt.u32.totalorder %s3383_s15, %s5023_s1 }
  0x18   :  { %p3389_p10 = pnand %p3387_p9, %p3384_p8 }
  0x1a   :  { %3392 = shalt.err (!%p3389_p10)
}
  0x1b   :  { %s3393_s20 = scalar_lea.vmem %s3524_s24, 256  ;;  %p3398_p12 = scmp.lt.s32.totalorder %s3524_s24, %s3524_s24 }
  0x1c   :  { %p3394_p11 = scmp.ne.s32.totalorder %s3524_s24, %s3393_s20  ;;  %p3399_p13 = scmp.lt.s32.totalorder %s3393_s20, %s3393_s20 }
  0x1e   :  { %p3400_p0 = por %p3399_p13, %p3398_p12 }
  0x20   :  { %p3401_p1 = pnand %p3400_p0, %p3394_p11 }
  0x22   :  { %3404 = shalt.err (!%p3401_p1)
}
  0x23   :  { %28 = dma.hbm_to_vmem [thread:$0]  %s5023_s1, 256, %s3524_s24, [#allocation3], %s3481_s9, %s3481_s9, %s3482_s10  }
  0x24   :  { %s3483_s22 = smov [#allocation7]   ;;  %s3484_s25 = smov [#allocation8]  }
  0x25   :  { %s46_s23 = sshll.u32 %s3483_s22, 4  ;;  %s60_s26 = sshll.u32 %s3484_s25, 4  ;;  %s47_s23 = int_to_ptr.vmem [resolvable:$true] %s46_s23  ;;  %s3561_s26 = int_to_ptr.vmem [resolvable:$true] %s60_s26 }
  0x26   :  { %s3405_s29 = scalar_lea.hbm %s5025_s3, 512 }
  0x27   :  { %p3406_p2 = scmp.ne.s32.totalorder %s5025_s3, %s3405_s29  ;;  %p3409_p3 = scmp.lt.u32.totalorder %s3405_s29, %s5025_s3 }
  0x29   :  { %p3411_p4 = pnand %p3409_p3, %p3406_p2 }
  0x2b   :  { %3414 = shalt.err (!%p3411_p4)
}
  0x2c   :  { %s3415_s1 = scalar_lea.vmem %s47_s23, 512  ;;  %p3420_p6 = scmp.lt.s32.totalorder %s47_s23, %s47_s23 }
  0x2d   :  { %p3416_p5 = scmp.ne.s32.totalorder %s47_s23, %s3415_s1  ;;  %p3421_p7 = scmp.lt.s32.totalorder %s3415_s1, %s3415_s1 }
  0x2f   :  { %p3422_p8 = por %p3421_p7, %p3420_p6 }
  0x31   :  { %p3423_p9 = pnand %p3422_p8, %p3416_p5 }
  0x33   :  { %3426 = shalt.err (!%p3423_p9)
}
  0x34   :  { %52 = dma.hbm_to_vmem [thread:$0]  %s5025_s3, 512, %s47_s23, [#allocation6], %s3481_s9, %s3481_s9, %s3482_s10  }
  0x35   :  { %s3427_s15 = scalar_lea.hbm %s5027_s5, 256 }
  0x36   :  { %p3428_p10 = scmp.ne.s32.totalorder %s5027_s5, %s3427_s15  ;;  %p3431_p11 = scmp.lt.u32.totalorder %s3427_s15, %s5027_s5 }
  0x38   :  { %p3433_p12 = pnand %p3431_p11, %p3428_p10 }
  0x3a   :  { %3436 = shalt.err (!%p3433_p12)
}
  0x3b   :  { %s3437_s20 = scalar_lea.vmem %s3561_s26, 256  ;;  %p3442_p0 = scmp.lt.s32.totalorder %s3561_s26, %s3561_s26 }
  0x3c   :  { %p3438_p13 = scmp.ne.s32.totalorder %s3561_s26, %s3437_s20  ;;  %p3443_p1 = scmp.lt.s32.totalorder %s3437_s20, %s3437_s20 }
  0x3e   :  { %p3444_p2 = por %p3443_p1, %p3442_p0 }
  0x40   :  { %p3445_p3 = pnand %p3444_p2, %p3438_p13 }
  0x42   :  { %3448 = shalt.err (!%p3445_p3)
}
  0x43   :  { %66 = dma.hbm_to_vmem [thread:$0]  %s5027_s5, 256, %s3561_s26, [#allocation9], %s3481_s9, %s3481_s9, %s3482_s10  }
  0x44   :  { %3471 = dma.done.wait [#allocation3], 256  }
  0x45   :  { %3472 = vsyncadd [#allocation3], 4294967040 }
  0x46   :  { %3473 = dma.done.wait [#allocation6], 768  }
  0x47   :  { %3474 = vsyncadd [#allocation6], 4294966528 }
  0x48   :  { %3475 = dma.done.wait [#allocation9], 256  }
  0x49   :  { %3476 = vsyncadd [#allocation9], 4294967040  ;;  %vm98_vm0 = vcmask 1043456   ;;  %vm85_vm1 = vcmask 97280   ;;  %vm3485_vm2 = vmmov 1   ;;  %v83_v0 = vld [vmem:[#allocation2] sm:$0xff] }
  0x4a   :  { %vm3126_vm3 = vmpackc.low %vm98_vm0, %vm3485_vm2  ;;  %v84_v1 = vld [vmem:[#allocation2 + $0x8] sm:$0xf]  ;;  %v79_v2 = vld [vmem:[%s5022_s0] sm:$0xff]  ;;  %vm187_vm4 = vcmask 261120   ;;  %vm378_vm5 = vcmask 1042432   ;;  %vm423_vm6 = vcmask 1046528  }
  0x4b   :  { %v3125_v3 = vpack.c.bf16 %v84_v1, %v83_v0  ;;  %3083 = vmatprep.mubr.msk.f32.mxu1 %vm85_vm1, %v79_v2  ;;  %v80_v4 = vld [vmem:[%s5022_s0 + $0x8] sm:$0xff]  ;;  %v81_v5 = vld [vmem:[%s5022_s0 + $0x10] sm:$0xff]  ;;  %v82_v6 = vld [vmem:[%s5022_s0 + $0x18] sm:$0xff]  ;;  %vm459_vm7 = vcmask 1045504   ;;  %vm495_vm8 = vcmask 1044480   ;;  %vm555_vm9 = vcmask 523264  }
  0x4c   :  { %v273_v7 = vld [vmem:[#allocation7] sm:$0xff]  ;;  %v274_v8 = vld [vmem:[#allocation7 + $0x8] sm:$0xff]  ;;  %v275_v9 = vld [vmem:[#allocation7 + $0x10] sm:$0xff]  ;;  %vm2880_vm10 = vcmask 1040384   ;;  %vm2882_vm11 = vcmask 1041408   ;;  %vm2997_vm12 = vcmask 130112  }
  0x4d   :  { %3127 = vmatprep.subr.msk.bf16.mxu1 %vm3126_vm3, %v3125_v3  ;;  %v3131_v10 = vpack.c.bf16 %v274_v8, %v273_v7  ;;  %v276_v11 = vld [vmem:[#allocation7 + $0x18] sm:$0xff]  ;;  %v3035_v55 = vld [vmem:[#allocation5] ss:$0 sm:$0xff]  ;;  %v3036_v60 = vld [vmem:[#allocation5 + $0x1] ss:$0 sm:$0xff]  ;;  %s3488_s18 = smov [#allocation10]  }
  0x4e   :  { %3130 = vmatpush3.bf16.msk.msra.mxu1 %vm3126_vm3, %v3125_v3  ;;  %v3135_v12 = vpack.c.bf16 %v276_v11, %v275_v9  ;;  %s3019_s19 = sshll.u32 %s3488_s18, 4  ;;  %vm3008_vm13 = vcmask 1041409   ;;  %vm3011_vm14 = vcmask 123904   ;;  %s3020_s19 = int_to_ptr.vmem [resolvable:$true] %s3019_s19 }
  0x4f   :  { %3132 = vmatprep.subr.bf16.mxu1 %v3131_v10  ;;  %s3449_s20 = scalar_lea.vmem %s3020_s19, 32  ;;  %p3454_p5 = scmp.lt.s32.totalorder %s3020_s19, %s3020_s19 }
  0x50   :  { %p3450_p4 = scmp.ne.s32.totalorder %s3020_s19, %s3449_s20  ;;  %p3455_p6 = scmp.lt.s32.totalorder %s3449_s20, %s3449_s20 }
  0x51   :  { %3084 = vmatmul.mubr.msk.f32.vlgmr.msra.gmra.mrb[0].mxu1 %vm85_vm1, %v80_v4 }
  0x52   :  { %3086 = vmatprep.mubr.msk.f32.mxu1 %vm85_vm1, %v81_v5  ;;  %3134 = vmatpush3.bf16.msra.mxu1 %v3131_v10  ;;  %p3456_p7 = por %p3455_p6, %p3454_p5 }
  0x53   :  { %3136 = vmatprep.subr.bf16.mxu1 %v3135_v12 }
  0x54   :  { %p3457_p8 = pnand %p3456_p7, %p3450_p4 }
  0x55   :  { %3087 = vmatmul.mubr.msk.f32.gmra.mrb[2].mxu1 %vm85_vm1, %v82_v6 }
  0x56   :  { %3138 = vmatpush3.bf16.msra.mxu1 %v3135_v12 }
 0x124   :  { %v3085_v13 = vpop.f32.mrb[0].mxu1 }
 0x125   :  { %v189_v14 = vsel %vm187_vm4, %v3085_v13, 0.0  ;;  %v168_v15 = vpop.f32.mrb[1].mxu1 }
 0x126   :  { %v188_v16 = vsel %vm187_vm4, %v168_v15, 0.0 }
 0x127   :  { %v190_v17 = vadd.f32 %v189_v14, %v188_v16 }
 0x128   :  { %v3088_v18 = vpop.f32.mrb[2].mxu1 }
 0x129   :  { %v178_v19 = vpop.f32.mrb[3].mxu1  ;;  %v193_v22 = vsel %vm187_vm4, %v3088_v18, 0.0 }
 0x12a   :  { %v191_v20 = vsel %vm187_vm4, %v178_v19, 0.0 }
 0x12b   :  { %v192_v21 = vadd.f32 %v191_v20, %v190_v17 }
 0x12d   :  { %v194_v23 = vadd.f32 %v193_v22, %v192_v21 }
 0x12f   :  { %v195_v24 = vrot.slane %v194_v23, 4 }
 0x131   :  { %v196_v25 = vadd.f32 %v195_v24, %v194_v23 }
 0x133   :  { %v197_v26 = vrot.slane %v196_v25, 2 }
 0x135   :  { %v198_v27 = vadd.f32 %v197_v26, %v196_v25 }
 0x137   :  { %v199_v28 = vrot.slane %v198_v27, 1 }
 0x139   :  { %v200_v29 = vadd.f32 %v199_v28, %v198_v27 }
 0x13b   :  { %v202_v30 = vmul.f32 0.03125, %v200_v29  ;;  %v547_v29 = vld [vmem:[%s5026_s4] sm:$0xff] }
 0x13d   :  { %v203_v31 = vsub.f32 %v168_v15, %v202_v30  ;;  %v204_v32 = vsub.f32 %v3085_v13, %v202_v30  ;;  %v205_v33 = vsub.f32 %v178_v19, %v202_v30  ;;  %v206_v34 = vsub.f32 %v3088_v18, %v202_v30  ;;  %v548_v30 = vld [vmem:[%s5026_s4 + $0x8] sm:$0xff] }
 0x13f   :  { %v207_v35 = vmul.f32 %v203_v31, %v203_v31  ;;  %v208_v36 = vmul.f32 %v204_v32, %v204_v32  ;;  %v209_v37 = vmul.f32 %v205_v33, %v205_v33  ;;  %v210_v38 = vmul.f32 %v206_v34, %v206_v34 }
 0x141   :  { %v211_v39 = vsel %vm187_vm4, %v207_v35, 0.0  ;;  %v212_v40 = vsel %vm187_vm4, %v208_v36, 0.0  ;;  %v214_v42 = vsel %vm187_vm4, %v209_v37, 0.0  ;;  %v216_v44 = vsel %vm187_vm4, %v210_v38, 0.0  ;;  %v552_v36 = vld [vmem:[%s5026_s4 + $0x28] sm:$0xff]  ;;  %v553_v38 = vld [vmem:[%s5026_s4 + $0x30] sm:$0xff] }
 0x142   :  { %v213_v41 = vadd.f32 %v212_v40, %v211_v39  ;;  %v554_v39 = vld [vmem:[%s5026_s4 + $0x38] sm:$0xff] }
 0x143   :  { %v3151_v40 = vpack.c.bf16 %v554_v39, %v553_v38 }
 0x144   :  { %v215_v43 = vadd.f32 %v214_v42, %v213_v41  ;;  %v3042_v42 = vld [vmem:[#allocation5 + $0x3] ss:$0 sm:$0xff] }
 0x146   :  { %v217_v45 = vadd.f32 %v216_v44, %v215_v43 }
 0x148   :  { %v218_v46 = vrot.slane %v217_v45, 4 }
 0x14a   :  { %v219_v47 = vadd.f32 %v218_v46, %v217_v45 }
 0x14c   :  { %v220_v48 = vrot.slane %v219_v47, 2 }
 0x14e   :  { %v221_v49 = vadd.f32 %v220_v48, %v219_v47  ;;  %v3041_v47 = vld [vmem:[#allocation5 + $0x2] ss:$0 sm:$0xff] }
 0x150   :  { %v222_v50 = vrot.slane %v221_v49, 1 }
 0x152   :  { %v223_v51 = vadd.f32 %v222_v50, %v221_v49 }
 0x154   :  { %v224_v52 = vmul.f32 0.03125, %v223_v51 }
 0x156   :  { %v227_v53 = vadd.f32 1e-05, %v224_v52 }
 0x158   :  { %3165 = vrsqrt.f32 %v227_v53  ;;  %v3043_v53 = vld [vmem:[#allocation5 + $0x4] ss:$0 sm:$0xff] }
 0x162   :  { %v3166_v54 = vpop.eup %3165 }
 0x163   :  { %v230_v56 = vmul.f32 %v3166_v54, %v204_v32  ;;  %v231_v57 = vmul.f32 %v3166_v54, %v205_v33  ;;  %v229_v58 = vmul.f32 %v3166_v54, %v203_v31  ;;  %v232_v59 = vmul.f32 %v3166_v54, %v206_v34  ;;  %v549_v32 = vld [vmem:[%s5026_s4 + $0x10] sm:$0xff]  ;;  %v550_v33 = vld [vmem:[%s5026_s4 + $0x18] sm:$0xff]  ;;  %v551_v34 = vld [vmem:[%s5026_s4 + $0x20] sm:$0xff]  ;;  %s3487_s4 = smov 64  }
 0x164   :  { %v3139_v31 = vpack.c.bf16 %v548_v30, %v547_v29  ;;  %v3143_v35 = vpack.c.bf16 %v550_v33, %v549_v32  ;;  %v3147_v37 = vpack.c.bf16 %v552_v36, %v551_v34  ;;  %v3044_v54 = vld [vmem:[#allocation5 + $0x5] ss:$0 sm:$0xff]  ;;  %v3045_v36 = vld [vmem:[#allocation5 + $0x6] ss:$0 sm:$0xff] }
 0x165   :  { %v238_v61 = vmul.f32 %v3035_v55, %v230_v56  ;;  %v239_v62 = vmul.f32 %v3035_v55, %v231_v57  ;;  %v237_v63 = vmul.f32 %v3035_v55, %v229_v58  ;;  %v240_v0 = vmul.f32 %v3035_v55, %v232_v59 }
 0x166   :  { %3140 = vmatprep.subr.bf16.mxu0 %v3139_v31 }
 0x167   :  { %v246_v1 = vadd.f32 %v3036_v60, %v238_v61  ;;  %v247_v2 = vadd.f32 %v3036_v60, %v239_v62  ;;  %v245_v3 = vadd.f32 %v3036_v60, %v237_v63  ;;  %v248_v4 = vadd.f32 %v3036_v60, %v240_v0  ;;  %3142 = vmatpush3.bf16.msra.mxu0 %v3139_v31 }
 0x168   :  { %3144 = vmatprep.subr.bf16.mxu0 %v3143_v35 }
 0x169   :  { %v250_v5 = vsub.f32 0.0, %v246_v1  ;;  %v251_v6 = vsub.f32 0.0, %v247_v2  ;;  %v249_v7 = vsub.f32 0.0, %v245_v3  ;;  %v252_v8 = vsub.f32 0.0, %v248_v4 }
 0x16b   :  { %v255_v9 = vmul.f32 1.442695, %v250_v5  ;;  %v257_v10 = vmul.f32 1.442695, %v251_v6  ;;  %v253_v11 = vmul.f32 1.442695, %v249_v7  ;;  %3146 = vmatpush3.bf16.msra.mxu0 %v3143_v35 }
 0x16c   :  { %v259_v12 = vmul.f32 1.442695, %v252_v8  ;;  %3148 = vmatprep.subr.bf16.mxu0 %v3147_v37 }
 0x16d   :  { %3167 = vpow2.f32 %v255_v9 }
 0x16e   :  { %3169 = vpow2.f32 %v257_v10 }
 0x16f   :  { %3171 = vpow2.f32 %v253_v11  ;;  %3150 = vmatpush3.bf16.msra.mxu0 %v3147_v37 }
 0x170   :  { %3173 = vpow2.f32 %v259_v12  ;;  %3152 = vmatprep.subr.bf16.mxu0 %v3151_v40 }
 0x173   :  { %3154 = vmatpush3.bf16.msra.mxu0 %v3151_v40 }
 0x177   :  { %v3168_v13 = vpop.eup %3167 }
 0x178   :  { %v3170_v14 = vpop.eup %3169  ;;  %v262_v15 = vadd.f32 1.0, %v3168_v13 }
 0x179   :  { %v3172_v16 = vpop.eup %3171  ;;  %v263_v17 = vadd.f32 1.0, %v3170_v14 }
 0x17a   :  { %v3174_v18 = vpop.eup %3173  ;;  %3175 = vrcp.f32 %v262_v15  ;;  %v261_v19 = vadd.f32 1.0, %v3172_v16 }
 0x17b   :  { %3177 = vrcp.f32 %v263_v17  ;;  %v264_v20 = vadd.f32 1.0, %v3174_v18 }
 0x17c   :  { %3179 = vrcp.f32 %v261_v19 }
 0x17d   :  { %3181 = vrcp.f32 %v264_v20 }
 0x184   :  { %v3176_v21 = vpop.eup %3175 }
 0x185   :  { %v3178_v22 = vpop.eup %3177  ;;  %v270_v24 = vmul.f32 %v3176_v21, %v246_v1 }
 0x186   :  { %v3180_v23 = vpop.eup %3179  ;;  %v271_v27 = vmul.f32 %v3178_v22, %v247_v2 }
 0x187   :  { %v269_v25 = vmul.f32 %v3180_v23, %v245_v3  ;;  %v3182_v26 = vpop.eup %3181 }
 0x188   :  { %v272_v28 = vmul.f32 %v3182_v26, %v248_v4 }
 0x189   :  { %3097 = vmatprep.mubr.msk.f32.mxu1 %vm187_vm4, %v269_v25 }
 0x18a   :  { %3098 = vmatmul.mubr.msk.f32.vlgmr.msra.gmra.mrb[4].mxu1 %vm187_vm4, %v270_v24 }
 0x18b   :  { %3100 = vmatprep.mubr.msk.f32.mxu1 %vm187_vm4, %v271_v27 }
 0x18e   :  { %3101 = vmatmul.mubr.msk.f32.gmra.mrb[6].mxu1 %vm187_vm4, %v272_v28 }
 0x25d   :  { %v3647_v41 = vpop.f32.mrb[4].mxu1 }
 0x25e   :  { %v380_v43 = vrot.slane %v3647_v41, 5  ;;  %v3650_v44 = vpop.f32.mrb[5].mxu1 }
 0x25f   :  { %v379_v45 = vrot.slane %v3650_v44, 5 }
 0x260   :  { %v413_v46 = vmul.f32 %v3042_v42, %v380_v43  ;;  %v449_v8 = vmul.f32 %v3043_v53, %v380_v43  ;;  %v485_v9 = vmul.f32 %v3044_v54, %v380_v43 }
 0x261   :  { %v381_v48 = vsel %vm378_vm5, %v379_v45, %v380_v43  ;;  %v391_v49 = vsel %vm378_vm5, 0.0, %v379_v45  ;;  %v3655_v50 = vpop.f32.mrb[6].mxu1 }
 0x262   :  { %5038 = vst [vmem:[#allocation15_spill] sm:$0xff] %v3655_v50  ;;  %v3657_v51 = vpop.f32.mrb[7].mxu1  ;;  %v427_v52 = vrot.slane %v413_v46, 1  ;;  %v398_v55 = vmul.f32 %v3041_v47, %v391_v49  ;;  %v411_v56 = vmul.f32 %v3042_v42, %v391_v49  ;;  %v412_v57 = vmul.f32 %v3042_v42, %v381_v48 }
 0x263   :  { %5039 = vst [vmem:[#allocation16_spill] sm:$0xff] %v3657_v51  ;;  %v447_v58 = vmul.f32 %v3043_v53, %v391_v49  ;;  %v448_v59 = vmul.f32 %v3043_v53, %v381_v48  ;;  %v483_v60 = vmul.f32 %v3044_v54, %v391_v49  ;;  %v484_v61 = vmul.f32 %v3044_v54, %v381_v48 }
 0x264   :  { %v399_v62 = vmul.f32 %v3041_v47, %v381_v48  ;;  %v424_v63 = vrot.slane %v411_v56, 1  ;;  %v425_v0 = vrot.slane %v412_v57, 1  ;;  %v383_v1 = vrot.slane %v3655_v50, 5 }
 0x265   :  { %v460_v2 = vrot.slane %v447_v58, 2  ;;  %v461_v3 = vrot.slane %v448_v59, 2  ;;  %v496_v4 = vrot.slane %v483_v60, 3  ;;  %v497_v5 = vrot.slane %v484_v61, 3 }
 0x266   :  { %v426_v6 = vsel %vm423_vm6, %v424_v63, %v425_v0  ;;  %v428_v7 = vsel %vm423_vm6, %v425_v0, %v427_v52  ;;  %v416_v12 = vmul.f32 %v3042_v42, %v383_v1  ;;  %v382_v13 = vrot.slane %v3657_v51, 5 }
 0x267   :  { %v438_v10 = vadd.f32 %v426_v6, %v398_v55  ;;  %v439_v11 = vadd.f32 %v428_v7, %v399_v62  ;;  %v452_v14 = vmul.f32 %v3043_v53, %v383_v1  ;;  %v462_v15 = vsel %vm459_vm7, %v460_v2, %v461_v3 }
 0x268   :  { %v498_v16 = vsel %vm495_vm8, %v496_v4, %v497_v5  ;;  %v384_v17 = vsel %vm378_vm5, %v382_v13, %v383_v1  ;;  %v392_v18 = vsel %vm378_vm5, 0.0, %v382_v13  ;;  %v463_v20 = vrot.slane %v449_v8, 2 }
 0x269   :  { %v474_v19 = vadd.f32 %v462_v15, %v438_v10  ;;  %v499_v21 = vrot.slane %v485_v9, 3  ;;  %v488_v22 = vmul.f32 %v3044_v54, %v383_v1  ;;  %v414_v23 = vmul.f32 %v3042_v42, %v392_v18 }
 0x26a   :  { %v432_v24 = vrot.slane %v416_v12, 1  ;;  %v415_v25 = vmul.f32 %v3042_v42, %v384_v17  ;;  %v450_v26 = vmul.f32 %v3043_v53, %v392_v18  ;;  %v451_v27 = vmul.f32 %v3043_v53, %v384_v17 }
 0x26b   :  { %v468_v28 = vrot.slane %v452_v14, 2  ;;  %v429_v29 = vrot.slane %v414_v23, 1  ;;  %v486_v30 = vmul.f32 %v3044_v54, %v392_v18  ;;  %v487_v31 = vmul.f32 %v3044_v54, %v384_v17 }
 0x26c   :  { %v400_v32 = vmul.f32 %v3041_v47, %v392_v18  ;;  %v430_v33 = vrot.slane %v415_v25, 1  ;;  %v465_v34 = vrot.slane %v450_v26, 2  ;;  %v466_v35 = vrot.slane %v451_v27, 2 }
 0x26d   :  { %v401_v37 = vmul.f32 %v3041_v47, %v384_v17  ;;  %v501_v38 = vrot.slane %v486_v30, 3  ;;  %v502_v39 = vrot.slane %v487_v31, 3  ;;  %v510_v40 = vadd.f32 %v498_v16, %v474_v19 }
 0x26e   :  { %v431_v43 = vsel %vm423_vm6, %v429_v29, %v430_v33  ;;  %v433_v45 = vsel %vm423_vm6, %v430_v33, %v432_v24  ;;  %v467_v42 = vsel %vm459_vm7, %v465_v34, %v466_v35  ;;  %v464_v46 = vsel %vm459_vm7, %v461_v3, %v463_v20  ;;  %v3697_v29 = vld [vmem:[#allocation5 + $0x7] ss:$0 sm:$0xff] }
 0x26f   :  { %v504_v48 = vrot.slane %v488_v22, 3  ;;  %v440_v49 = vadd.f32 %v431_v43, %v400_v32  ;;  %v441_v52 = vadd.f32 %v433_v45, %v401_v37  ;;  %v519_v53 = vadd.f32 %v3045_v36, %v510_v40 }
 0x270   :  { %v475_v54 = vadd.f32 %v464_v46, %v439_v11  ;;  %v500_v55 = vsel %vm495_vm8, %v497_v5, %v499_v21  ;;  %v503_v47 = vsel %vm495_vm8, %v501_v38, %v502_v39  ;;  %v469_v56 = vsel %vm459_vm7, %v466_v35, %v468_v28 }
 0x271   :  { %v476_v57 = vadd.f32 %v467_v42, %v440_v49  ;;  %v523_v58 = vsub.f32 0.0, %v519_v53  ;;  %v477_v59 = vadd.f32 %v469_v56, %v441_v52  ;;  %v505_v60 = vsel %vm495_vm8, %v502_v39, %v504_v48 }
 0x272   :  { %v511_v61 = vadd.f32 %v500_v55, %v475_v54  ;;  %v5029_v26 = vlaneseq }
 0x273   :  { %v527_v62 = vmul.f32 1.442695, %v523_v58  ;;  %v512_v63 = vadd.f32 %v503_v47, %v476_v57  ;;  %v513_v0 = vadd.f32 %v505_v60, %v477_v59 }
 0x274   :  { %v520_v1 = vadd.f32 %v3045_v36, %v511_v61  ;;  %v3692_v27 = vshrl.u32 %v5029_v26, 7 }
 0x275   :  { %3183 = vpow2.f32 %v527_v62  ;;  %v521_v2 = vadd.f32 %v3045_v36, %v512_v63  ;;  %v522_v3 = vadd.f32 %v3045_v36, %v513_v0 }
 0x276   :  { %v524_v4 = vsub.f32 0.0, %v520_v1  ;;  %5044 = vst [vmem:[#allocation21_spill] sm:$0xff] %v3692_v27  ;;  %v3695_v28 = vsub.s32 0, %v3692_v27  ;;  %v1092_v34 = vsub.s32 1, %v3692_v27  ;;  %v1104_v39 = vsub.s32 2, %v3692_v27 }
 0x277   :  { %v525_v6 = vsub.f32 0.0, %v521_v2  ;;  %v526_v5 = vsub.f32 0.0, %v522_v3  ;;  %v1116_v40 = vsub.s32 3, %v3692_v27  ;;  %v1128_v43 = vsub.s32 4, %v3692_v27 }
 0x278   :  { %v529_v7 = vmul.f32 1.442695, %v524_v4  ;;  %v1140_v42 = vsub.s32 5, %v3692_v27  ;;  %v1152_v46 = vsub.s32 6, %v3692_v27  ;;  %v3723_v49 = vsub.s32 7, %v3692_v27 }
 0x279   :  { %v531_v8 = vmul.f32 1.442695, %v525_v6  ;;  %v533_v9 = vmul.f32 1.442695, %v526_v5 }
 0x27a   :  { %3185 = vpow2.f32 %v529_v7 }
 0x27b   :  { %3187 = vpow2.f32 %v531_v8 }
 0x27c   :  { %3189 = vpow2.f32 %v533_v9 }
 0x27f   :  { %v3184_v10 = vpop.eup %3183 }
 0x280   :  { %v535_v11 = vadd.f32 1.0, %v3184_v10 }
 0x282   :  { %3191 = vrcp.f32 %v535_v11 }
 0x284   :  { %v3186_v12 = vpop.eup %3185 }
 0x285   :  { %v3188_v13 = vpop.eup %3187  ;;  %v536_v14 = vadd.f32 1.0, %v3186_v12 }
 0x286   :  { %v3190_v15 = vpop.eup %3189  ;;  %v537_v16 = vadd.f32 1.0, %v3188_v13 }
 0x287   :  { %3193 = vrcp.f32 %v536_v14  ;;  %v538_v17 = vadd.f32 1.0, %v3190_v15 }
 0x288   :  { %3195 = vrcp.f32 %v537_v16 }
 0x289   :  { %3197 = vrcp.f32 %v538_v17 }
 0x28c   :  { %v3192_v18 = vpop.eup %3191 }
 0x28d   :  { %v3675_v19 = vmul.f32 %v3192_v18, %v519_v53 }
 0x28f   :  { %5040 = vst [vmem:[#allocation17_spill] sm:$0xff] %v3675_v19  ;;  %3119 = vmatprep.mubr.msk.f32.mxu0 %vm555_vm9, %v3675_v19 }
 0x291   :  { %v3194_v20 = vpop.eup %3193 }
 0x292   :  { %v3196_v21 = vpop.eup %3195  ;;  %v3679_v22 = vmul.f32 %v3194_v20, %v520_v1 }
 0x293   :  { %v3198_v23 = vpop.eup %3197  ;;  %v3681_v24 = vmul.f32 %v3196_v21, %v521_v2 }
 0x294   :  { %5041 = vst [vmem:[#allocation18_spill] sm:$0xff] %v3679_v22  ;;  %3120 = vmatmul.mubr.msk.f32.vlgmr.msra.gmra.mrb[0].mxu0 %vm555_vm9, %v3679_v22  ;;  %v3685_v25 = vmul.f32 %v3198_v23, %v522_v3 }
 0x295   :  { %5042 = vst [vmem:[#allocation19_spill] sm:$0xff] %v3681_v24  ;;  %3122 = vmatprep.mubr.msk.f32.mxu0 %vm555_vm9, %v3681_v24 }
 0x296   :  { %5043 = vst [vmem:[#allocation20_spill] sm:$0xff] %v3685_v25 }
 0x298   :  { %3123 = vmatmul.mubr.msk.f32.gmra.mrb[2].mxu0 %vm555_vm9, %v3685_v25 }
 0x367   :  { %v3121_v30 = vpop.f32.mrb[0].mxu0 }
 0x368   :  { %v3700_v31 = vadd.f32 %v3121_v30, %v3697_v29  ;;  %v3702_v32 = vpop.f32.mrb[1].mxu0  ;;  %v1177_v33 = vrot.slane %v3121_v30, %v3695_v28  ;;  %v1189_v38 = vrot.slane %v3121_v30, %v1092_v34  ;;  %v1201_v45 = vrot.slane %v3121_v30, %v1104_v39 }
 0x369   :  { %v3708_v35 = vadd.f32 %v3697_v29, %v3702_v32  ;;  %v1213_v58 = vrot.slane %v3121_v30, %v1116_v40  ;;  %v1225_v1 = vrot.slane %v3121_v30, %v1128_v43  ;;  %v1237_v2 = vrot.slane %v3121_v30, %v1140_v42 }
 0x36a   :  { %1184 = vbcast.lane.b32.xlu1 %v1177_v33, 328  ;;  %1180 = vbcast.lane.b32.xlu0 %v1177_v33, 320  ;;  %v3766_v3 = vrot.slane %v3121_v30, %v1152_v46  ;;  %v3771_v4 = vrot.slane %v3121_v30, %v3723_v49  ;;  %v1093_v6 = vrot.slane %v3702_v32, %v1092_v34 }
 0x36b   :  { %v3710_v36 = vpop.f32.mrb[2].mxu0  ;;  %v1081_v5 = vrot.slane %v3702_v32, %v3695_v28  ;;  %v1105_v7 = vrot.slane %v3702_v32, %v1104_v39  ;;  %v1117_v8 = vrot.slane %v3702_v32, %v1116_v40  ;;  %v1129_v9 = vrot.slane %v3702_v32, %v1128_v43 }
 0x36c   :  { %v3712_v37 = vpop.f32.mrb[3].mxu0  ;;  %v3720_v48 = vrot.slane %v3710_v36, %v1092_v34  ;;  %v3726_v52 = vrot.slane %v3710_v36, %v1104_v39  ;;  %v3729_v53 = vrot.slane %v3710_v36, %v1116_v40  ;;  %v3732_v54 = vrot.slane %v3710_v36, %v1128_v43 }
 0x36d   :  { %v3735_v55 = vrot.slane %v3710_v36, %v1140_v42  ;;  %v3738_v47 = vrot.slane %v3710_v36, %v1152_v46  ;;  %v3742_v56 = vrot.slane %v3710_v36, %v3723_v49  ;;  %v3745_v57 = vrot.slane %v3712_v37, %v1092_v34 }
 0x36e   :  { %1196 = vbcast.lane.b32.xlu1 %v1189_v38, 328  ;;  %1192 = vbcast.lane.b32.xlu0 %v1189_v38, 320  ;;  %v3748_v59 = vrot.slane %v3712_v37, %v1104_v39  ;;  %v3751_v60 = vrot.slane %v3712_v37, %v1116_v40  ;;  %v3754_v61 = vrot.slane %v3712_v37, %v1128_v43 }
 0x36f   :  { %v3757_v62 = vrot.slane %v3712_v37, %v1140_v42  ;;  %v3760_v63 = vrot.slane %v3712_v37, %v1152_v46  ;;  %v3764_v0 = vrot.slane %v3712_v37, %v3723_v49  ;;  %v1141_v10 = vrot.slane %v3702_v32, %v1140_v42 }
 0x370   :  { %v3783_v11 = vrot.slane %v3702_v32, %v1152_v46  ;;  %v3788_v12 = vrot.slane %v3702_v32, %v3723_v49  ;;  %v1987_v13 = vrot.slane %v3710_v36, %v3695_v28  ;;  %v3838_v43 = vadd.f32 %v3710_v36, %v3697_v29 }
 0x371   :  { %v3849_v49 = vadd.f32 %v3697_v29, %v3712_v37 }
 0x372   :  { %1208 = vbcast.lane.b32.xlu1 %v1201_v45, 328  ;;  %1204 = vbcast.lane.b32.xlu0 %v1201_v45, 320  ;;  %v669_v46 = vand.u32 2147483647, %v3838_v43 }
 0x376   :  { %1220 = vbcast.lane.b32.xlu1 %v1213_v58, 328  ;;  %1216 = vbcast.lane.b32.xlu0 %v1213_v58, 320 }
 0x37a   :  { %1232 = vbcast.lane.b32.xlu1 %v1225_v1, 328  ;;  %1228 = vbcast.lane.b32.xlu0 %v1225_v1, 320 }
 0x37e   :  { %1244 = vbcast.lane.b32.xlu1 %v1237_v2, 328  ;;  %1240 = vbcast.lane.b32.xlu0 %v1237_v2, 320 }
 0x382   :  { %1256 = vbcast.lane.b32.xlu1 %v3766_v3, 328  ;;  %1252 = vbcast.lane.b32.xlu0 %v3766_v3, 320 }
 0x386   :  { %1268 = vbcast.lane.b32.xlu1 %v3771_v4, 328  ;;  %1264 = vbcast.lane.b32.xlu0 %v3771_v4, 320 }
 0x38a   :  { %1448 = vbcast.lane.b32.xlu1 %v1177_v33, 336  ;;  %1452 = vbcast.lane.b32.xlu0 %v1177_v33, 344 }
 0x38e   :  { %1456 = vbcast.lane.b32.xlu1 %v1189_v38, 336  ;;  %1460 = vbcast.lane.b32.xlu0 %v1189_v38, 344 }
 0x392   :  { %1464 = vbcast.lane.b32.xlu1 %v1201_v45, 336  ;;  %1468 = vbcast.lane.b32.xlu0 %v1201_v45, 344 }
 0x396   :  { %1476 = vbcast.lane.b32.xlu1 %v1213_v58, 344  ;;  %1472 = vbcast.lane.b32.xlu0 %v1213_v58, 336 }
 0x39a   :  { %1484 = vbcast.lane.b32.xlu1 %v1225_v1, 344  ;;  %1480 = vbcast.lane.b32.xlu0 %v1225_v1, 336  ;;  %v673_v1 = vsub.f32 0.0, %v669_v46 }
 0x39e   :  { %1492 = vbcast.lane.b32.xlu1 %v1237_v2, 344  ;;  %1488 = vbcast.lane.b32.xlu0 %v1237_v2, 336  ;;  %v668_v2 = vand.u32 2147483647, %v3849_v49 }
 0x3a0   :  { %v672_v29 = vsub.f32 0.0, %v668_v2 }
 0x3a2   :  { %1096 = vbcast.lane.b32.xlu1 %v1093_v6, 320  ;;  %1084 = vbcast.lane.b32.xlu0 %v1081_v5, 320 }
 0x3a6   :  { %1100 = vbcast.lane.b32.xlu1 %v1093_v6, 328  ;;  %1088 = vbcast.lane.b32.xlu0 %v1081_v5, 328 }
 0x3aa   :  { %1112 = vbcast.lane.b32.xlu1 %v1105_v7, 328  ;;  %1108 = vbcast.lane.b32.xlu0 %v1105_v7, 320 }
 0x3ae   :  { %1124 = vbcast.lane.b32.xlu1 %v1117_v8, 328  ;;  %1120 = vbcast.lane.b32.xlu0 %v1117_v8, 320 }
 0x3b2   :  { %1136 = vbcast.lane.b32.xlu1 %v1129_v9, 328  ;;  %1132 = vbcast.lane.b32.xlu0 %v1129_v9, 320 }
 0x3b6   :  { %1148 = vbcast.lane.b32.xlu1 %v1141_v10, 328  ;;  %1144 = vbcast.lane.b32.xlu0 %v1141_v10, 320 }
 0x3ba   :  { %1160 = vbcast.lane.b32.xlu1 %v3783_v11, 328  ;;  %1156 = vbcast.lane.b32.xlu0 %v3783_v11, 320 }
 0x3be   :  { %1172 = vbcast.lane.b32.xlu1 %v3788_v12, 328  ;;  %1168 = vbcast.lane.b32.xlu0 %v3788_v12, 320 }
 0x3c2   :  { %1388 = vbcast.lane.b32.xlu1 %v1081_v5, 344  ;;  %1384 = vbcast.lane.b32.xlu0 %v1081_v5, 336 }
 0x3c6   :  { %1396 = vbcast.lane.b32.xlu1 %v1093_v6, 344  ;;  %1392 = vbcast.lane.b32.xlu0 %v1093_v6, 336 }
 0x3ca   :  { %1404 = vbcast.lane.b32.xlu1 %v1105_v7, 344  ;;  %1400 = vbcast.lane.b32.xlu0 %v1105_v7, 336  ;;  %v680_v7 = vmul.f32 1.442695, %v673_v1 }
 0x3cc   :  { %3199 = vpow2.f32 %v680_v7 }
 0x3ce   :  { %1412 = vbcast.lane.b32.xlu1 %v1117_v8, 344  ;;  %1408 = vbcast.lane.b32.xlu0 %v1117_v8, 336 }
 0x3d2   :  { %1420 = vbcast.lane.b32.xlu1 %v1129_v9, 344  ;;  %1416 = vbcast.lane.b32.xlu0 %v1129_v9, 336 }
 0x3d6   :  { %1428 = vbcast.lane.b32.xlu1 %v1141_v10, 344  ;;  %1424 = vbcast.lane.b32.xlu0 %v1141_v10, 336  ;;  %v678_v10 = vmul.f32 1.442695, %v672_v29  ;;  %v3200_v2 = vpop.eup %3199 }
 0x3d7   :  { %v685_v29 = vadd.f32 1.0, %v3200_v2 }
 0x3d8   :  { %3201 = vpow2.f32 %v678_v10 }
 0x3d9   :  { %3203 = vlog2.f32 %v685_v29 }
 0x3da   :  { %1990 = vbcast.lane.b32.xlu1 %v1987_v13, 320  ;;  %1994 = vbcast.lane.b32.xlu0 %v1987_v13, 328 }
 0x3dc   :  { %v3795_v14 = vpop.permute.xlu1 %1184  ;;  %v3797_v15 = vpop.permute.xlu0 %1180 }
 0x3de   :  { %2002 = vbcast.lane.b32.xlu1 %v3720_v48, 320  ;;  %2006 = vbcast.lane.b32.xlu0 %v3720_v48, 328 }
 0x3e0   :  { %v3799_v16 = vpop.permute.xlu1 %1196  ;;  %v3801_v17 = vpop.permute.xlu0 %1192 }
 0x3e1   :  { %5045 = vst [vmem:[#allocation22_spill] sm:$0xff] %v3801_v17 }
 0x3e2   :  { %2014 = vbcast.lane.b32.xlu1 %v3726_v52, 320  ;;  %2018 = vbcast.lane.b32.xlu0 %v3726_v52, 328  ;;  %v3202_v10 = vpop.eup %3201 }
 0x3e3   :  { %v684_v26 = vadd.f32 1.0, %v3202_v10  ;;  %v3204_v2 = vpop.eup %3203 }
 0x3e4   :  { %v3804_v18 = vpop.permute.xlu1 %1208  ;;  %v3806_v20 = vpop.permute.xlu0 %1204 }
 0x3e5   :  { %5046 = vst [vmem:[#allocation23_spill] sm:$0xff] %v3804_v18  ;;  %5047 = vst [vmem:[#allocation24_spill] sm:$0xff] %v3806_v20  ;;  %3205 = vlog2.f32 %v684_v26  ;;  %v693_v26 = vmul.f32 0.6931472, %v3204_v2 }
 0x3e6   :  { %2026 = vbcast.lane.b32.xlu1 %v3729_v53, 320  ;;  %2030 = vbcast.lane.b32.xlu0 %v3729_v53, 328 }
 0x3e8   :  { %v3810_v21 = vpop.permute.xlu1 %1220  ;;  %v3812_v23 = vpop.permute.xlu0 %1216 }
 0x3e9   :  { %5048 = vst [vmem:[#allocation25_spill] sm:$0xff] %v3810_v21  ;;  %5049 = vst [vmem:[#allocation26_spill] sm:$0xff] %v3812_v23 }
 0x3ea   :  { %2038 = vbcast.lane.b32.xlu1 %v3732_v54, 320  ;;  %2042 = vbcast.lane.b32.xlu0 %v3732_v54, 328 }
 0x3ec   :  { %v3816_v30 = vpop.permute.xlu1 %1232  ;;  %v3818_v32 = vpop.permute.xlu0 %1228 }
 0x3ed   :  { %5050 = vst [vmem:[#allocation27_spill] sm:$0xff] %v3816_v30  ;;  %5051 = vst [vmem:[#allocation28_spill] sm:$0xff] %v3818_v32 }
 0x3ee   :  { %2050 = vbcast.lane.b32.xlu1 %v3735_v55, 320  ;;  %2054 = vbcast.lane.b32.xlu0 %v3735_v55, 328 }
 0x3f0   :  { %v3822_v33 = vpop.permute.xlu1 %1244  ;;  %v3824_v34 = vpop.permute.xlu0 %1240 }
 0x3f1   :  { %5052 = vst [vmem:[#allocation29_spill] sm:$0xff] %v3822_v33  ;;  %5053 = vst [vmem:[#allocation30_spill] sm:$0xff] %v3824_v34 }
 0x3f2   :  { %2062 = vbcast.lane.b32.xlu1 %v3738_v47, 320  ;;  %2066 = vbcast.lane.b32.xlu0 %v3738_v47, 328 }
 0x3f4   :  { %v3828_v38 = vpop.permute.xlu1 %1256  ;;  %v3830_v39 = vpop.permute.xlu0 %1252 }
 0x3f5   :  { %5054 = vst [vmem:[#allocation31_spill] sm:$0xff] %v3828_v38  ;;  %5055 = vst [vmem:[#allocation32_spill] sm:$0xff] %v3830_v39 }
 0x3f6   :  { %2074 = vbcast.lane.b32.xlu1 %v3742_v56, 320  ;;  %2078 = vbcast.lane.b32.xlu0 %v3742_v56, 328 }
 0x3f8   :  { %v3834_v40 = vpop.permute.xlu1 %1268  ;;  %v3840_v45 = vpop.permute.xlu0 %1264 }
 0x3f9   :  { %5056 = vst [vmem:[#allocation33_spill] sm:$0xff] %v3834_v40  ;;  %5057 = vst [vmem:[#allocation34_spill] sm:$0xff] %v3840_v45 }
 0x3fa   :  { %2258 = vbcast.lane.b32.xlu1 %v1987_v13, 336  ;;  %2262 = vbcast.lane.b32.xlu0 %v1987_v13, 344 }
 0x3fc   :  { %v3844_v42 = vpop.permute.xlu1 %1448  ;;  %v3851_v58 = vpop.permute.xlu0 %1452 }
 0x3fd   :  { %5058 = vst [vmem:[#allocation35_spill] sm:$0xff] %v3844_v42  ;;  %5059 = vst [vmem:[#allocation36_spill] sm:$0xff] %v3851_v58  ;;  %v664_v42 = vmax.f32 %v3849_v49, 0.0 }
 0x3fe   :  { %2266 = vbcast.lane.b32.xlu1 %v3720_v48, 336  ;;  %2270 = vbcast.lane.b32.xlu0 %v3720_v48, 344 }
 0x400   :  { %v3854_v36 = vpop.permute.xlu1 %1456  ;;  %v3857_v6 = vpop.permute.xlu0 %1460 }
 0x401   :  { %5060 = vst [vmem:[#allocation37_spill] sm:$0xff] %v3854_v36  ;;  %5061 = vst [vmem:[#allocation38_spill] sm:$0xff] %v3857_v6 }
 0x402   :  { %2274 = vbcast.lane.b32.xlu1 %v3726_v52, 336  ;;  %2278 = vbcast.lane.b32.xlu0 %v3726_v52, 344  ;;  %v1891_v52 = vrot.slane %v3712_v37, %v3695_v28 }
 0x404   :  { %v3860_v5 = vpop.permute.xlu1 %1464  ;;  %v3862_v8 = vpop.permute.xlu0 %1468 }
 0x405   :  { %5062 = vst [vmem:[#allocation39_spill] sm:$0xff] %v3860_v5  ;;  %5063 = vst [vmem:[#allocation40_spill] sm:$0xff] %v3862_v8  ;;  %v665_v5 = vmax.f32 %v3838_v43, 0.0 }
 0x406   :  { %2286 = vbcast.lane.b32.xlu1 %v3729_v53, 344  ;;  %2282 = vbcast.lane.b32.xlu0 %v3729_v53, 336 }
 0x407   :  { %v3915_v36 = vadd.f32 %v693_v26, %v665_v5 }
 0x408   :  { %v3866_v9 = vpop.permute.xlu1 %1476  ;;  %v3868_v46 = vpop.permute.xlu0 %1472 }
 0x409   :  { %5064 = vst [vmem:[#allocation41_spill] sm:$0xff] %v3866_v9  ;;  %5065 = vst [vmem:[#allocation42_spill] sm:$0xff] %v3868_v46 }
 0x40a   :  { %2294 = vbcast.lane.b32.xlu1 %v3732_v54, 344  ;;  %2290 = vbcast.lane.b32.xlu0 %v3732_v54, 336 }
 0x40c   :  { %v3872_v13 = vpop.permute.xlu1 %1484  ;;  %v3876_v48 = vpop.permute.xlu0 %1480 }
 0x40d   :  { %5066 = vst [vmem:[#allocation43_spill] sm:$0xff] %v3872_v13  ;;  %5067 = vst [vmem:[#allocation44_spill] sm:$0xff] %v3876_v48  ;;  %v3206_v13 = vpop.eup %3205 }
 0x40e   :  { %2302 = vbcast.lane.b32.xlu1 %v3735_v55, 344  ;;  %2298 = vbcast.lane.b32.xlu0 %v3735_v55, 336 }
 0x410   :  { %v3880_v1 = vpop.permute.xlu1 %1492  ;;  %v3882_v7 = vpop.permute.xlu0 %1488 }
 0x411   :  { %5068 = vst [vmem:[#allocation45_spill] sm:$0xff] %v3880_v1  ;;  %5069 = vst [vmem:[#allocation46_spill] sm:$0xff] %v3882_v7  ;;  %v3486_v7 = vmov 1966171168  }
 0x412   :  { %1894 = vbcast.lane.b32.xlu1 %v1891_v52, 320  ;;  %1898 = vbcast.lane.b32.xlu0 %v1891_v52, 328  ;;  %v704_v48 = vunpack.c.l.s4 %v3486_v7  ;;  %v691_v7 = vmul.f32 0.6931472, %v3206_v13 }
 0x414   :  { %v3887_v53 = vpop.permute.xlu1 %1096  ;;  %v3889_v54 = vpop.permute.xlu0 %1084  ;;  %v705_v8 = vunpack.c.0.s8 %v704_v48  ;;  %v3929_v48 = vadd.f32 %v691_v7, %v664_v42 }
 0x415   :  { %5070 = vst [vmem:[#allocation47_spill] sm:$0xff] %v3887_v53  ;;  %5071 = vst [vmem:[#allocation48_spill] sm:$0xff] %v3889_v54 }
 0x416   :  { %1906 = vbcast.lane.b32.xlu1 %v3745_v57, 320  ;;  %1910 = vbcast.lane.b32.xlu0 %v3745_v57, 328  ;;  %v3922_v2 = vsub.s32 %v705_v8, %v3692_v27  ;;  %v1512_v45 = vcombine.high %v3929_v48, %v3929_v48 }
 0x418   :  { %v3892_v1 = vpop.permute.xlu1 %1100  ;;  %v3896_v37 = vpop.permute.xlu0 %1088  ;;  %v1568_v43 = vrot.slane %v3915_v36, %v3922_v2  ;;  %v1519_v49 = vrot.slane %v3929_v48, %v3922_v2 }
 0x419   :  { %5072 = vst [vmem:[#allocation49_spill] sm:$0xff] %v3892_v1  ;;  %5073 = vst [vmem:[#allocation50_spill] sm:$0xff] %v3896_v37 }
 0x41a   :  { %1918 = vbcast.lane.b32.xlu1 %v3748_v59, 320  ;;  %1922 = vbcast.lane.b32.xlu0 %v3748_v59, 328  ;;  %v1584_v8 = vrot.slane %v1568_v43, %v3922_v2  ;;  %v3947_v7 = vrot.slane %v1519_v49, %v3922_v2 }
 0x41c   :  { %v3898_v55 = vpop.permute.xlu1 %1112  ;;  %v3902_v29 = vpop.permute.xlu0 %1108  ;;  %v1645_v42 = vrot.slane %v1584_v8, %v3695_v28 }
 0x41d   :  { %5074 = vst [vmem:[#allocation51_spill] sm:$0xff] %v3898_v55  ;;  %5075 = vst [vmem:[#allocation52_spill] sm:$0xff] %v3902_v29  ;;  %v1606_v29 = vcombine.high %v1584_v8, %v1584_v8 }
 0x41e   :  { %1930 = vbcast.lane.b32.xlu1 %v3751_v60, 320  ;;  %1934 = vbcast.lane.b32.xlu0 %v3751_v60, 328 }
 0x420   :  { %v3904_v10 = vpop.permute.xlu1 %1124  ;;  %v3908_v46 = vpop.permute.xlu0 %1120 }
 0x421   :  { %5076 = vst [vmem:[#allocation53_spill] sm:$0xff] %v3904_v10  ;;  %5077 = vst [vmem:[#allocation54_spill] sm:$0xff] %v3908_v46 }
 0x422   :  { %1942 = vbcast.lane.b32.xlu1 %v3754_v61, 320  ;;  %1946 = vbcast.lane.b32.xlu0 %v3754_v61, 328 }
 0x424   :  { %v3910_v9 = vpop.permute.xlu1 %1136  ;;  %v3917_v6 = vpop.permute.xlu0 %1132 }
 0x425   :  { %5078 = vst [vmem:[#allocation55_spill] sm:$0xff] %v3910_v9  ;;  %5079 = vst [vmem:[#allocation56_spill] sm:$0xff] %v3917_v6  ;;  %v3953_v6 = vld [vmem:[#allocation8] sm:$0xff]  ;;  %v1613_v9 = vrot.slane %v3947_v7, %v3695_v28 }
 0x426   :  { %1954 = vbcast.lane.b32.xlu1 %v3757_v62, 320  ;;  %1958 = vbcast.lane.b32.xlu0 %v3757_v62, 328 }
 0x428   :  { %v3919_v58 = vpop.permute.xlu1 %1148  ;;  %v3931_v5 = vpop.permute.xlu0 %1144 }
 0x429   :  { %5080 = vst [vmem:[#allocation57_spill] sm:$0xff] %v3919_v58  ;;  %5081 = vst [vmem:[#allocation58_spill] sm:$0xff] %v3931_v5  ;;  %v1576_v58 = vcombine.high %v1568_v43, %v1568_v43  ;;  %v1706_v43 = vmul.f32 %v1645_v42, %v3953_v6 }
 0x42a   :  { %1966 = vbcast.lane.b32.xlu1 %v3760_v63, 320  ;;  %1970 = vbcast.lane.b32.xlu0 %v3760_v63, 328 }
 0x42b   :  { %v1754_v55 = vmul.f32 1.442695, %v1706_v43 }
 0x42c   :  { %v3933_v13 = vpop.permute.xlu1 %1160  ;;  %v3940_v26 = vpop.permute.xlu0 %1156 }
 0x42d   :  { %5082 = vst [vmem:[#allocation59_spill] sm:$0xff] %v3933_v13  ;;  %5083 = vst [vmem:[#allocation60_spill] sm:$0xff] %v3940_v26  ;;  %v1561_v26 = vcombine.high %v3915_v36, %v3915_v36  ;;  %3207 = vpow2.f32 %v1754_v55 }
 0x42e   :  { %1978 = vbcast.lane.b32.xlu1 %v3764_v0, 320  ;;  %1982 = vbcast.lane.b32.xlu0 %v3764_v0, 328 }
 0x42f   :  { %v3971_v10 = vrot.slane %v1561_v26, %v3922_v2 }
 0x430   :  { %v3942_v27 = vpop.permute.xlu1 %1172  ;;  %v3949_v13 = vpop.permute.xlu0 %1168 }
 0x431   :  { %5084 = vst [vmem:[#allocation61_spill] sm:$0xff] %v3942_v27  ;;  %5085 = vst [vmem:[#allocation62_spill] sm:$0xff] %v3949_v13  ;;  %v3958_v27 = vrot.slane %v1576_v58, %v3922_v2  ;;  %v3985_v26 = vrot.slane %v3971_v10, %v3922_v2 }
 0x432   :  { %2194 = vbcast.lane.b32.xlu1 %v1891_v52, 336  ;;  %2198 = vbcast.lane.b32.xlu0 %v1891_v52, 344 }
 0x433   :  { %v1649_v58 = vrot.slane %v3958_v27, %v3695_v28 }
 0x434   :  { %v3951_v5 = vpop.permute.xlu1 %1388  ;;  %v3964_v46 = vpop.permute.xlu0 %1384 }
 0x435   :  { %5086 = vst [vmem:[#allocation63_spill] sm:$0xff] %v3951_v5  ;;  %5087 = vst [vmem:[#allocation64_spill] sm:$0xff] %v3964_v46  ;;  %v3968_v5 = vld [vmem:[#allocation8 + $0x8] sm:$0xff]  ;;  %v1690_v46 = vmul.f32 %v1613_v9, %v3953_v6  ;;  %v1708_v1 = vmul.f32 %v1649_v58, %v3953_v6 }
 0x436   :  { %2202 = vbcast.lane.b32.xlu1 %v3745_v57, 336  ;;  %v1707_v52 = vmul.f32 %v1645_v42, %v3968_v5  ;;  %2206 = vbcast.lane.b32.xlu0 %v3745_v57, 344  ;;  %v1527_v42 = vcombine.high %v1519_v49, %v1519_v49  ;;  %v1653_v57 = vrot.slane %v1606_v29, %v3695_v28 }
 0x437   :  { %v1691_v8 = vmul.f32 %v1613_v9, %v3968_v5  ;;  %v1722_v43 = vmul.f32 1.442695, %v1690_v46  ;;  %v1661_v49 = vrot.slane %v3985_v26, %v3695_v28 }
 0x438   :  { %v3966_v13 = vpop.permute.xlu1 %1396  ;;  %v3979_v37 = vpop.permute.xlu0 %1392  ;;  %v1756_v53 = vmul.f32 1.442695, %v1707_v52  ;;  %v1758_v52 = vmul.f32 1.442695, %v1708_v1  ;;  %v1710_v9 = vmul.f32 %v1653_v57, %v3953_v6  ;;  %v4005_v46 = vrot.slane %v1527_v42, %v3922_v2 }
 0x439   :  { %5088 = vst [vmem:[#allocation65_spill] sm:$0xff] %v3966_v13  ;;  %5089 = vst [vmem:[#allocation66_spill] sm:$0xff] %v3979_v37  ;;  %v1724_v55 = vmul.f32 1.442695, %v1691_v8  ;;  %v1711_v1 = vmul.f32 %v1653_v57, %v3968_v5  ;;  %v1557_v42 = vcombine.high %v3947_v7, %v3947_v7  ;;  %v3208_v57 = vpop.eup %3207 }
 0x43a   :  { %2210 = vbcast.lane.b32.xlu1 %v3748_v59, 336  ;;  %2214 = vbcast.lane.b32.xlu0 %v3748_v59, 344  ;;  %v1709_v59 = vmul.f32 %v1649_v58, %v3968_v5  ;;  %3209 = vpow2.f32 %v1756_v53  ;;  %v1762_v58 = vmul.f32 1.442695, %v1710_v9  ;;  %v1617_v8 = vrot.slane %v4005_v46, %v3695_v28 }
 0x43b   :  { %3211 = vpow2.f32 %v1722_v43  ;;  %v1621_v9 = vrot.slane %v1557_v42, %v3695_v28 }
 0x43c   :  { %v3981_v13 = vpop.permute.xlu1 %1404  ;;  %v3992_v37 = vpop.permute.xlu0 %1400  ;;  %3213 = vpow2.f32 %v1758_v52  ;;  %v1760_v53 = vmul.f32 1.442695, %v1709_v59  ;;  %v1715_v52 = vmul.f32 %v1661_v49, %v3968_v5  ;;  %v1764_v59 = vmul.f32 1.442695, %v1711_v1 }
 0x43d   :  { %5090 = vst [vmem:[#allocation67_spill] sm:$0xff] %v3981_v13  ;;  %5091 = vst [vmem:[#allocation68_spill] sm:$0xff] %v3992_v37  ;;  %v4012_v37 = vrot.slane %v1512_v45, %v3922_v2  ;;  %3215 = vpow2.f32 %v1724_v55  ;;  %v1692_v55 = vmul.f32 %v1617_v8, %v3953_v6  ;;  %v1694_v42 = vmul.f32 %v1621_v9, %v3953_v6 }
 0x43e   :  { %2222 = vbcast.lane.b32.xlu1 %v3751_v60, 344  ;;  %2218 = vbcast.lane.b32.xlu0 %v3751_v60, 336  ;;  %v1714_v60 = vmul.f32 %v1661_v49, %v3953_v6  ;;  %3217 = vpow2.f32 %v1760_v53  ;;  %v1577_v53 = vcombine.high %v3971_v10, %v3971_v10 }
 0x43f   :  { %3219 = vpow2.f32 %v1762_v58 }
 0x440   :  { %v3994_v13 = vpop.permute.xlu1 %1412  ;;  %v4007_v29 = vpop.permute.xlu0 %1408  ;;  %v1770_v7 = vmul.f32 1.442695, %v1714_v60  ;;  %3221 = vpow2.f32 %v1764_v59  ;;  %v1693_v60 = vmul.f32 %v1617_v8, %v3968_v5  ;;  %v1695_v8 = vmul.f32 %v1621_v9, %v3968_v5 }
 0x441   :  { %5092 = vst [vmem:[#allocation69_spill] sm:$0xff] %v3994_v13  ;;  %5093 = vst [vmem:[#allocation70_spill] sm:$0xff] %v4007_v29  ;;  %v1607_v9 = vcombine.high %v3985_v26, %v3985_v26 }
 0x442   :  { %2230 = vbcast.lane.b32.xlu1 %v3754_v61, 344  ;;  %2226 = vbcast.lane.b32.xlu0 %v3754_v61, 336  ;;  %v4029_v61 = vrot.slane %v4012_v37, %v3922_v2  ;;  %3223 = vpow2.f32 %v1770_v7 }
 0x444   :  { %v4009_v13 = vpop.permute.xlu1 %1420  ;;  %v4022_v45 = vpop.permute.xlu0 %1416  ;;  %v1629_v58 = vrot.slane %v4029_v61, %v3695_v28 }
 0x445   :  { %5094 = vst [vmem:[#allocation71_spill] sm:$0xff] %v4009_v13  ;;  %5095 = vst [vmem:[#allocation72_spill] sm:$0xff] %v4022_v45 }
 0x446   :  { %2238 = vbcast.lane.b32.xlu1 %v3757_v62, 344  ;;  %2234 = vbcast.lane.b32.xlu0 %v3757_v62, 336  ;;  %v1608_v62 = vcombine.high %v3958_v27, %v3958_v27  ;;  %v1698_v7 = vmul.f32 %v1629_v58, %v3953_v6 }
 0x448   :  { %v4024_v43 = vpop.permute.xlu1 %1428  ;;  %v4035_v13 = vpop.permute.xlu0 %1424  ;;  %v1657_v59 = vrot.slane %v1608_v62, %v3695_v28  ;;  %v1738_v62 = vmul.f32 1.442695, %v1698_v7  ;;  %v1669_v7 = vrot.slane %v1607_v9, %v3695_v28 }
 0x449   :  { %5096 = vst [vmem:[#allocation73_spill] sm:$0xff] %v4024_v43  ;;  %v3210_v43 = vpop.eup %3209  ;;  %5097 = vst [vmem:[#allocation74_spill] sm:$0xff] %v4035_v13  ;;  %v1726_v13 = vmul.f32 1.442695, %v1692_v55  ;;  %v1730_v55 = vmul.f32 1.442695, %v1694_v42 }
 0x44a   :  { %2384 = vrot.lane.b32.xlu1 %v3208_v57, %s3487_s4  ;;  %v3212_v1 = vpop.eup %3211  ;;  %v1772_v57 = vmul.f32 1.442695, %v1715_v52  ;;  %2386 = vrot.lane.b32.xlu0 %v3210_v43, %s3487_s4  ;;  %v4054_v52 = vrot.slane %v1577_v53, %v3922_v2  ;;  %v1728_v43 = vmul.f32 1.442695, %v1693_v60  ;;  %v1732_v60 = vmul.f32 1.442695, %v1695_v8 }
 0x44b   :  { %v3214_v45 = vpop.eup %3213  ;;  %v1713_v8 = vmul.f32 %v1657_v59, %v3968_v5  ;;  %v1718_v9 = vmul.f32 %v1669_v7, %v3953_v6 }
 0x44c   :  { %v4037_v49 = vpop.permute.xlu1 %1990  ;;  %v4049_v10 = vpop.permute.xlu0 %1994  ;;  %3225 = vpow2.f32 %v1772_v57  ;;  %v1699_v57 = vmul.f32 %v1629_v58, %v3968_v5  ;;  %v1528_v58 = vcombine.high %v4012_v37, %v4012_v37 }
 0x44d   :  { %v3216_v27 = vpop.eup %3215  ;;  %3227 = vpow2.f32 %v1726_v13  ;;  %v1665_v13 = vrot.slane %v4054_v52, %v3695_v28 }
 0x44e   :  { %2352 = vrot.lane.b32.xlu1 %v3212_v1, %s3487_s4  ;;  %2354 = vrot.lane.b32.xlu0 %v3216_v27, %s3487_s4  ;;  %v3218_v1 = vpop.eup %3217  ;;  %3229 = vpow2.f32 %v1728_v43  ;;  %v1559_v43 = vcombine.high %v4005_v46, %v4005_v46 }
 0x44f   :  { %v3220_v53 = vpop.eup %3219  ;;  %3231 = vpow2.f32 %v1730_v55  ;;  %v1716_v55 = vmul.f32 %v1665_v13, %v3953_v6  ;;  %v1717_v46 = vmul.f32 %v1665_v13, %v3968_v5 }
 0x450   :  { %v4051_v29 = vpop.permute.xlu1 %2002  ;;  %v4061_v40 = vpop.permute.xlu0 %2006  ;;  %3233 = vpow2.f32 %v1732_v60  ;;  %v1768_v60 = vmul.f32 1.442695, %v1713_v8  ;;  %v1719_v8 = vmul.f32 %v1669_v7, %v3968_v5 }
 0x451   :  { %v3222_v42 = vpop.eup %3221  ;;  %3235 = vpow2.f32 %v1738_v62  ;;  %v1556_v62 = vrot.slane %v1528_v58, %v3922_v2  ;;  %v1558_v58 = vcombine.high %v4029_v61, %v4029_v61 }
 0x452   :  { %2388 = vrot.lane.b32.xlu1 %v3214_v45, %s3487_s4  ;;  %2390 = vrot.lane.b32.xlu0 %v3218_v1, %s3487_s4  ;;  %v1712_v45 = vmul.f32 %v1657_v59, %v3953_v6  ;;  %v3224_v26 = vpop.eup %3223  ;;  %v1740_v1 = vmul.f32 1.442695, %v1699_v57  ;;  %v1625_v57 = vrot.slane %v1559_v43, %v3695_v28  ;;  %v1776_v43 = vmul.f32 1.442695, %v1717_v46 }
 0x453   :  { %v1609_v46 = vcombine.high %v4054_v52, %v4054_v52  ;;  %v1780_v61 = vmul.f32 1.442695, %v1719_v8 }
 0x454   :  { %v4063_v39 = vpop.permute.xlu1 %2014  ;;  %v4073_v27 = vpop.permute.xlu0 %2018  ;;  %3237 = vpow2.f32 %v1740_v1  ;;  %v1696_v1 = vmul.f32 %v1625_v57, %v3953_v6 }
 0x455   :  { %v1673_v8 = vrot.slane %v1609_v46, %v3695_v28 }
 0x456   :  { %2392 = vrot.lane.b32.xlu1 %v3220_v53, %s3487_s4  ;;  %2394 = vrot.lane.b32.xlu0 %v3222_v42, %s3487_s4  ;;  %v1766_v53 = vmul.f32 1.442695, %v1712_v45  ;;  %v3226_v34 = vpop.eup %3225  ;;  %v1774_v45 = vmul.f32 1.442695, %v1716_v55  ;;  %v1633_v55 = vrot.slane %v1556_v62, %v3695_v28 }
 0x457   :  { %v3228_v59 = vpop.eup %3227 }
 0x458   :  { %v4075_v38 = vpop.permute.xlu1 %2026  ;;  %v4086_v33 = vpop.permute.xlu0 %2030  ;;  %3239 = vpow2.f32 %v1766_v53 }
 0x459   :  { %v3230_v42 = vpop.eup %3229  ;;  %3241 = vpow2.f32 %v1768_v60  ;;  %v1637_v60 = vrot.slane %v1558_v58, %v3695_v28 }
 0x45a   :  { %2400 = vrot.lane.b32.xlu1 %v3224_v26, %s3487_s4  ;;  %2402 = vrot.lane.b32.xlu0 %v3226_v34, %s3487_s4  ;;  %v3232_v13 = vpop.eup %3231  ;;  %v1778_v34 = vmul.f32 1.442695, %v1718_v9  ;;  %3243 = vpow2.f32 %v1774_v45  ;;  %v1700_v9 = vmul.f32 %v1633_v55, %v3953_v6 }
 0x45b   :  { %v3234_v53 = vpop.eup %3233  ;;  %3245 = vpow2.f32 %v1776_v43  ;;  %v1702_v43 = vmul.f32 %v1637_v60, %v3953_v6 }
 0x45c   :  { %v4088_v37 = vpop.permute.xlu1 %2038  ;;  %v4096_v26 = vpop.permute.xlu0 %2042  ;;  %3247 = vpow2.f32 %v1778_v34  ;;  %v1742_v34 = vmul.f32 1.442695, %v1700_v9 }
 0x45d   :  { %v3236_v7 = vpop.eup %3235  ;;  %v1746_v46 = vmul.f32 1.442695, %v1702_v43 }
 0x45e   :  { %2356 = vrot.lane.b32.xlu1 %v3228_v59, %s3487_s4  ;;  %2358 = vrot.lane.b32.xlu0 %v3230_v42, %s3487_s4  ;;  %v1697_v42 = vmul.f32 %v1625_v57, %v3968_v5  ;;  %v3238_v45 = vpop.eup %3237  ;;  %v667_v57 = vand.u32 2147483647, %v3700_v31 }
 0x460   :  { %v4098_v32 = vpop.permute.xlu1 %2050  ;;  %v4107_v59 = vpop.permute.xlu0 %2054  ;;  %v671_v18 = vsub.f32 0.0, %v667_v57 }
 0x462   :  { %2360 = vrot.lane.b32.xlu1 %v3232_v13, %s3487_s4  ;;  %v1734_v13 = vmul.f32 1.442695, %v1696_v1  ;;  %2362 = vrot.lane.b32.xlu0 %v3234_v53, %s3487_s4  ;;  %v3240_v52 = vpop.eup %3239  ;;  %v1560_v1 = vcombine.high %v1556_v62, %v1556_v62  ;;  %v1701_v53 = vmul.f32 %v1633_v55, %v3968_v5  ;;  %v666_v55 = vand.u32 2147483647, %v3708_v35 }
 0x463   :  { %v3242_v58 = vpop.eup %3241  ;;  %v676_v17 = vmul.f32 1.442695, %v671_v18 }
 0x464   :  { %v4109_v54 = vpop.permute.xlu1 %2062  ;;  %v4118_v30 = vpop.permute.xlu0 %2066  ;;  %3249 = vpow2.f32 %v1734_v13  ;;  %v1703_v13 = vmul.f32 %v1637_v60, %v3968_v5 }
 0x465   :  { %3251 = vpow2.f32 %v1780_v61  ;;  %v3244_v62 = vpop.eup %3243  ;;  %v1721_v61 = vmul.f32 %v1673_v8, %v3968_v5 }
 0x466   :  { %2368 = vrot.lane.b32.xlu1 %v3236_v7, %s3487_s4  ;;  %v1736_v7 = vmul.f32 1.442695, %v1697_v42  ;;  %2370 = vrot.lane.b32.xlu0 %v3238_v45, %s3487_s4  ;;  %v1641_v42 = vrot.slane %v1560_v1, %v3695_v28  ;;  %v1744_v45 = vmul.f32 1.442695, %v1701_v53  ;;  %v3246_v9 = vpop.eup %3245  ;;  %v670_v1 = vsub.f32 0.0, %v666_v55 }
 0x467   :  { %v1748_v53 = vmul.f32 1.442695, %v1703_v13  ;;  %v1784_v43 = vmul.f32 1.442695, %v1721_v61 }
 0x468   :  { %v4120_v23 = vpop.permute.xlu1 %2074  ;;  %v4128_v21 = vpop.permute.xlu0 %2078  ;;  %3253 = vpow2.f32 %v1736_v7  ;;  %v1704_v60 = vmul.f32 %v1641_v42, %v3953_v6  ;;  %v1720_v7 = vmul.f32 %v1673_v8, %v3953_v6  ;;  %v674_v18 = vmul.f32 1.442695, %v670_v1 }
 0x469   :  { %3255 = vpow2.f32 %v1742_v34 }
 0x46a   :  { %2396 = vrot.lane.b32.xlu1 %v3240_v52, %s3487_s4  ;;  %2398 = vrot.lane.b32.xlu0 %v3242_v58, %s3487_s4  ;;  %3257 = vpow2.f32 %v1744_v45  ;;  %v1750_v55 = vmul.f32 1.442695, %v1704_v60  ;;  %v1782_v13 = vmul.f32 1.442695, %v1720_v7 }
 0x46b   :  { %3259 = vpow2.f32 %v1746_v46 }
 0x46c   :  { %v4130_v20 = vpop.permute.xlu1 %2258  ;;  %v4138_v52 = vpop.permute.xlu0 %2262  ;;  %3261 = vpow2.f32 %v676_v17  ;;  %v1787_v17 = vmul.f32 %v3915_v36, %v3685_v25 }
 0x46d   :  { %5098 = vst [vmem:[#allocation75_spill] sm:$0xff] %v4130_v20  ;;  %5099 = vst [vmem:[#allocation76_spill] sm:$0xff] %v4138_v52  ;;  %v3248_v20 = vpop.eup %3247  ;;  %3263 = vpow2.f32 %v1748_v53 }
 0x46e   :  { %2404 = vrot.lane.b32.xlu1 %v3244_v62, %s3487_s4  ;;  %2406 = vrot.lane.b32.xlu0 %v3246_v9, %s3487_s4  ;;  %v3250_v34 = vpop.eup %3249  ;;  %3265 = vpow2.f32 %v1784_v43  ;;  %v1846_v53 = vrot.slane %v1787_v17, %v3922_v2 }
 0x46f   :  { %3267 = vpow2.f32 %v674_v18 }
 0x470   :  { %v4140_v57 = vpop.permute.xlu1 %2266  ;;  %v4146_v58 = vpop.permute.xlu0 %2270  ;;  %3269 = vpow2.f32 %v1750_v55  ;;  %v1862_v55 = vrot.slane %v1846_v53, %v3922_v2 }
 0x471   :  { %5100 = vst [vmem:[#allocation77_spill] sm:$0xff] %v4140_v57  ;;  %5101 = vst [vmem:[#allocation78_spill] sm:$0xff] %v4146_v58  ;;  %v3252_v57 = vpop.eup %3251  ;;  %3271 = vpow2.f32 %v1782_v13 }
 0x472   :  { %2408 = vrot.lane.b32.xlu1 %v3248_v20, %s3487_s4  ;;  %2410 = vrot.lane.b32.xlu0 %v3252_v57, %s3487_s4  ;;  %v1705_v20 = vmul.f32 %v1641_v42, %v3968_v5  ;;  %v3254_v8 = vpop.eup %3253  ;;  %v2115_v25 = vrot.slane %v1862_v55, %v3695_v28 }
 0x473   :  { %v3256_v61 = vpop.eup %3255 }
 0x474   :  { %v4148_v62 = vpop.permute.xlu1 %2274  ;;  %v4153_v45 = vpop.permute.xlu0 %2278  ;;  %v1752_v9 = vmul.f32 1.442695, %v1705_v20  ;;  %v1854_v20 = vcombine.high %v1846_v53, %v1846_v53 }
 0x475   :  { %5102 = vst [vmem:[#allocation79_spill] sm:$0xff] %v4148_v62  ;;  %5103 = vst [vmem:[#allocation80_spill] sm:$0xff] %v4153_v45  ;;  %v3258_v42 = vpop.eup %3257 }
 0x476   :  { %2364 = vrot.lane.b32.xlu1 %v3250_v34, %s3487_s4  ;;  %2366 = vrot.lane.b32.xlu0 %v3254_v8, %s3487_s4  ;;  %v3260_v60 = vpop.eup %3259  ;;  %3273 = vpow2.f32 %v1752_v9 }
 0x477   :  { %v3262_v7 = vpop.eup %3261 }
 0x478   :  { %v4155_v46 = vpop.permute.xlu1 %2286  ;;  %v4161_v57 = vpop.permute.xlu0 %2282 }
 0x479   :  { %5104 = vst [vmem:[#allocation81_spill] sm:$0xff] %v4155_v46  ;;  %5105 = vst [vmem:[#allocation82_spill] sm:$0xff] %v4161_v57  ;;  %v3264_v36 = vpop.eup %3263  ;;  %v1839_v57 = vcombine.high %v1787_v17, %v1787_v17 }
 0x47a   :  { %2372 = vrot.lane.b32.xlu1 %v3256_v61, %s3487_s4  ;;  %2374 = vrot.lane.b32.xlu0 %v3258_v42, %s3487_s4  ;;  %v3266_v18 = vpop.eup %3265  ;;  %v683_v61 = vadd.f32 1.0, %v3262_v7 }
 0x47b   :  { %v3268_v13 = vpop.eup %3267  ;;  %v1853_v46 = vrot.slane %v1839_v57, %v3922_v2 }
 0x47c   :  { %v4163_v1 = vpop.permute.xlu1 %2294  ;;  %v4168_v43 = vpop.permute.xlu0 %2290  ;;  %3275 = vlog2.f32 %v683_v61  ;;  %v682_v53 = vadd.f32 1.0, %v3268_v13 }
 0x47d   :  { %5106 = vst [vmem:[#allocation83_spill] sm:$0xff] %v4163_v1  ;;  %5107 = vst [vmem:[#allocation84_spill] sm:$0xff] %v4168_v43  ;;  %v3270_v8 = vpop.eup %3269  ;;  %v1884_v1 = vcombine.high %v1862_v55, %v1862_v55 }
 0x47e   :  { %2376 = vrot.lane.b32.xlu1 %v3260_v60, %s3487_s4  ;;  %2378 = vrot.lane.b32.xlu0 %v3264_v36, %s3487_s4  ;;  %v3272_v9 = vpop.eup %3271  ;;  %v2176_v36 = vmul.f32 %v2115_v25, %v4037_v49  ;;  %3277 = vlog2.f32 %v682_v53 }
 0x47f   :  { %v2123_v61 = vrot.slane %v1884_v1, %v3695_v28  ;;  %v1869_v1 = vrot.slane %v1853_v46, %v3922_v2 }
 0x480   :  { %v4170_v34 = vpop.permute.xlu1 %2302  ;;  %v4175_v42 = vpop.permute.xlu0 %2298 }
 0x481   :  { %5108 = vst [vmem:[#allocation85_spill] sm:$0xff] %v4170_v34  ;;  %5109 = vst [vmem:[#allocation86_spill] sm:$0xff] %v4175_v42  ;;  %v1876_v34 = vrot.slane %v1854_v20, %v3922_v2  ;;  %v3274_v42 = vpop.eup %3273  ;;  %v2177_v20 = vmul.f32 %v2115_v25, %v4049_v10  ;;  %v2180_v55 = vmul.f32 %v2123_v61, %v4063_v39 }
 0x482   :  { %2414 = vrot.lane.b32.xlu1 %v3266_v18, %s3487_s4  ;;  %2412 = vrot.lane.b32.xlu0 %v3272_v9, %s3487_s4  ;;  %v2181_v57 = vmul.f32 %v2123_v61, %v4073_v27 }
 0x483   :  { %v2119_v43 = vrot.slane %v1876_v34, %v3695_v28  ;;  %v1886_v9 = vcombine.high %v1876_v34, %v1876_v34  ;;  %v1855_v34 = vcombine.high %v1853_v46, %v1853_v46  ;;  %v1786_v46 = vmul.f32 %v3929_v48, %v3681_v24 }
 0x484   :  { %v4177_v60 = vpop.permute.xlu1 %1894  ;;  %v4184_v18 = vpop.permute.xlu0 %1898 }
 0x485   :  { %v2178_v13 = vmul.f32 %v2119_v43, %v4051_v29  ;;  %v2179_v17 = vmul.f32 %v2119_v43, %v4061_v40 }
 0x486   :  { %2380 = vrot.lane.b32.xlu1 %v3270_v8, %s3487_s4  ;;  %2382 = vrot.lane.b32.xlu0 %v3274_v42, %s3487_s4  ;;  %v3276_v10 = vpop.eup %3275  ;;  %v2127_v42 = vrot.slane %v1886_v9, %v3695_v28 }
 0x487   :  { %v689_v53 = vmul.f32 0.6931472, %v3276_v10 }
 0x488   :  { %v4186_v7 = vpop.permute.xlu1 %1906  ;;  %v4193_v8 = vpop.permute.xlu0 %1910  ;;  %v2182_v40 = vmul.f32 %v2127_v42, %v4075_v38  ;;  %v663_v38 = vmax.f32 %v3700_v31, 0.0  ;;  %v2183_v27 = vmul.f32 %v2127_v42, %v4086_v33  ;;  %v662_v31 = vmax.f32 %v3708_v35, 0.0 }
 0x48a   :  { %2544 = vrot.lane.b32.xlu1 %v2176_v36, %s3487_s4  ;;  %2546 = vrot.lane.b32.xlu0 %v2177_v20, %s3487_s4  ;;  %v3278_v36 = vpop.eup %3277  ;;  %v2131_v20 = vrot.slane %v1869_v1, %v3695_v28 }
 0x48b   :  { %v687_v10 = vmul.f32 0.6931472, %v3278_v36 }
 0x48c   :  { %v4195_v49 = vpop.permute.xlu1 %1918  ;;  %v4203_v25 = vpop.permute.xlu0 %1922  ;;  %v2184_v61 = vmul.f32 %v2131_v20, %v4088_v37  ;;  %v2185_v33 = vmul.f32 %v2131_v20, %v4096_v26 }
 0x48e   :  { %2548 = vrot.lane.b32.xlu1 %v2178_v13, %s3487_s4  ;;  %2550 = vrot.lane.b32.xlu0 %v2179_v17, %s3487_s4  ;;  %v4219_v13 = vrot.slane %v1855_v34, %v3922_v2  ;;  %v1885_v34 = vcombine.high %v1869_v1, %v1869_v1  ;;  %v4248_v1 = vadd.f32 %v687_v10, %v662_v31 }
 0x490   :  { %v4205_v29 = vpop.permute.xlu1 %1930  ;;  %v4213_v43 = vpop.permute.xlu0 %1934  ;;  %v2135_v48 = vrot.slane %v4219_v13, %v3695_v28  ;;  %v2139_v36 = vrot.slane %v1885_v34, %v3695_v28 }
 0x492   :  { %2552 = vrot.lane.b32.xlu1 %v2180_v55, %s3487_s4  ;;  %2554 = vrot.lane.b32.xlu0 %v2181_v57, %s3487_s4  ;;  %v4232_v55 = vadd.f32 %v689_v53, %v663_v38  ;;  %v1797_v57 = vrot.slane %v1786_v46, %v3922_v2  ;;  %v2186_v37 = vmul.f32 %v2135_v48, %v4098_v32 }
 0x493   :  { %v2187_v35 = vmul.f32 %v2135_v48, %v4107_v59  ;;  %v2188_v32 = vmul.f32 %v2139_v36, %v4109_v54  ;;  %v2189_v54 = vmul.f32 %v2139_v36, %v4118_v30 }
 0x494   :  { %v4215_v39 = vpop.permute.xlu1 %1942  ;;  %v4228_v9 = vpop.permute.xlu0 %1946  ;;  %v758_v53 = vrot.slane %v4232_v55, %v3922_v2  ;;  %v1813_v38 = vrot.slane %v1797_v57, %v3922_v2  ;;  %v751_v45 = vcombine.high %v4232_v55, %v4232_v55 }
 0x496   :  { %2556 = vrot.lane.b32.xlu1 %v2182_v40, %s3487_s4  ;;  %2558 = vrot.lane.b32.xlu0 %v2183_v27, %s3487_s4  ;;  %v1805_v27 = vcombine.high %v1797_v57, %v1797_v57  ;;  %v774_v10 = vrot.slane %v758_v53, %v3922_v2  ;;  %v2083_v34 = vrot.slane %v1813_v38, %v3695_v28 }
 0x497   :  { %v766_v30 = vcombine.high %v758_v53, %v758_v53 }
 0x498   :  { %v4230_v17 = vpop.permute.xlu1 %1954  ;;  %v4242_v42 = vpop.permute.xlu0 %1958  ;;  %v1827_v57 = vrot.slane %v1805_v27, %v3922_v2  ;;  %v2160_v59 = vmul.f32 %v2083_v34, %v4177_v60  ;;  %v2161_v60 = vmul.f32 %v2083_v34, %v4184_v18 }
 0x49a   :  { %2560 = vrot.lane.b32.xlu1 %v2184_v61, %s3487_s4  ;;  %2562 = vrot.lane.b32.xlu0 %v2185_v33, %s3487_s4  ;;  %v4262_v61 = vrot.slane %v4248_v1, %v3922_v2  ;;  %v1790_v33 = vcombine.high %v1786_v46, %v1786_v46  ;;  %v2087_v27 = vrot.slane %v1827_v57, %v3695_v28 }
 0x49b   :  { %v1837_v62 = vcombine.high %v1827_v57, %v1827_v57 }
 0x49c   :  { %v4244_v40 = vpop.permute.xlu1 %1966  ;;  %v4256_v26 = vpop.permute.xlu0 %1970  ;;  %v4278_v24 = vrot.slane %v4262_v61, %v3922_v2  ;;  %v2162_v36 = vmul.f32 %v2087_v27, %v4186_v7  ;;  %v1804_v58 = vrot.slane %v1790_v33, %v3922_v2  ;;  %v4299_v7 = vrot.slane %v766_v30, %v3922_v2 }
 0x49d   :  { %v2163_v53 = vmul.f32 %v2087_v27, %v4193_v8  ;;  %v796_v27 = vcombine.high %v774_v10, %v774_v10  ;;  %v4316_v30 = vrot.slane %v751_v45, %v3922_v2  ;;  %v717_v45 = vcombine.high %v4262_v61, %v4262_v61 }
 0x49e   :  { %2564 = vrot.lane.b32.xlu1 %v2186_v37, %s3487_s4  ;;  %2566 = vrot.lane.b32.xlu0 %v2187_v35, %s3487_s4  ;;  %v835_v37 = vrot.slane %v774_v10, %v3695_v28  ;;  %v1835_v35 = vcombine.high %v1813_v38, %v1813_v38  ;;  %v803_v38 = vrot.slane %v4278_v24, %v3695_v28 }
 0x49f   :  { %v4335_v10 = vrot.slane %v4316_v30, %v3922_v2 }
 0x4a0   :  { %v4258_v20 = vpop.permute.xlu1 %1978  ;;  %v4271_v48 = vpop.permute.xlu0 %1982  ;;  %v896_v18 = vmul.f32 %v835_v37, %v3953_v6  ;;  %v897_v33 = vmul.f32 %v835_v37, %v3968_v5  ;;  %v880_v52 = vmul.f32 %v803_v38, %v3953_v6 }
 0x4a2   :  { %2568 = vrot.lane.b32.xlu1 %v2188_v32, %s3487_s4  ;;  %2570 = vrot.lane.b32.xlu0 %v2189_v54, %s3487_s4  ;;  %v2091_v54 = vrot.slane %v1835_v35, %v3695_v28  ;;  %v2095_v35 = vrot.slane %v1837_v62, %v3695_v28  ;;  %v944_v8 = vmul.f32 1.442695, %v896_v18 }
 0x4a4   :  { %v4273_v31 = vpop.permute.xlu1 %2194  ;;  %v4285_v32 = vpop.permute.xlu0 %2198  ;;  %v2164_v34 = vmul.f32 %v2091_v54, %v4195_v49  ;;  %v839_v49 = vrot.slane %v4299_v7, %v3695_v28  ;;  %v2165_v37 = vmul.f32 %v2091_v54, %v4203_v25  ;;  %v2166_v62 = vmul.f32 %v2095_v35, %v4205_v29 }
 0x4a5   :  { %3279 = vpow2.f32 %v944_v8  ;;  %v843_v29 = vrot.slane %v796_v27, %v3695_v28  ;;  %v2167_v54 = vmul.f32 %v2095_v35, %v4213_v43  ;;  %v4353_v35 = vrot.slane %v717_v45, %v3922_v2 }
 0x4a6   :  { %2512 = vrot.lane.b32.xlu1 %v2160_v59, %s3487_s4  ;;  %2514 = vrot.lane.b32.xlu0 %v2161_v60, %s3487_s4  ;;  %v1820_v60 = vrot.slane %v1804_v58, %v3922_v2  ;;  %v898_v25 = vmul.f32 %v839_v49, %v3953_v6 }
 0x4a7   :  { %v900_v43 = vmul.f32 %v843_v29, %v3953_v6 }
 0x4a8   :  { %v4287_v46 = vpop.permute.xlu1 %2202  ;;  %v4303_v57 = vpop.permute.xlu0 %2206  ;;  %v2099_v18 = vrot.slane %v1820_v60, %v3695_v28 }
 0x4a9   :  { %5110 = vst [vmem:[#allocation87_spill] sm:$0xff] %v4287_v46  ;;  %5111 = vst [vmem:[#allocation88_spill] sm:$0xff] %v4303_v57  ;;  %v946_v57 = vmul.f32 1.442695, %v897_v33  ;;  %v912_v46 = vmul.f32 1.442695, %v880_v52  ;;  %v702_v52 = vcombine.high %v4248_v1, %v4248_v1 }
 0x4aa   :  { %2516 = vrot.lane.b32.xlu1 %v2162_v36, %s3487_s4  ;;  %v1806_v36 = vcombine.high %v1804_v58, %v1804_v58  ;;  %2518 = vrot.lane.b32.xlu0 %v2163_v53, %s3487_s4  ;;  %v881_v53 = vmul.f32 %v803_v38, %v3968_v5  ;;  %v1836_v38 = vcombine.high %v1820_v60, %v1820_v60  ;;  %v948_v60 = vmul.f32 1.442695, %v898_v25 }
 0x4ab   :  { %v2168_v61 = vmul.f32 %v2099_v18, %v4215_v39  ;;  %3281 = vpow2.f32 %v946_v57  ;;  %v851_v39 = vrot.slane %v4335_v10, %v3695_v28  ;;  %v901_v25 = vmul.f32 %v843_v29, %v3968_v5 }
 0x4ac   :  { %v4305_v59 = vpop.permute.xlu1 %2210  ;;  %v914_v27 = vmul.f32 1.442695, %v881_v53  ;;  %3283 = vpow2.f32 %v912_v46  ;;  %v2107_v57 = vrot.slane %v1836_v38, %v3695_v28  ;;  %v4366_v45 = vrot.slane %v702_v52, %v3922_v2 }
 0x4ad   :  { %5112 = vst [vmem:[#allocation89_spill] sm:$0xff] %v4305_v59  ;;  %v4320_v59 = vpop.permute.xlu0 %2214 }
 0x4ae   :  { %2520 = vrot.lane.b32.xlu1 %v2164_v34, %s3487_s4  ;;  %v1834_v34 = vrot.slane %v1806_v36, %v3922_v2  ;;  %2522 = vrot.lane.b32.xlu0 %v2165_v37, %s3487_s4  ;;  %v899_v37 = vmul.f32 %v839_v49, %v3968_v5  ;;  %3285 = vpow2.f32 %v914_v27  ;;  %v2172_v38 = vmul.f32 %v2107_v57, %v4244_v40 }
 0x4af   :  { %3287 = vpow2.f32 %v948_v60  ;;  %v3280_v29 = vpop.eup %3279  ;;  %v954_v60 = vmul.f32 1.442695, %v901_v25  ;;  %v2919_v25 = vsub.f32 0.0, %v3647_v41 }
 0x4b0   :  { %v4322_v58 = vpop.permute.xlu1 %2222  ;;  %v2103_v8 = vrot.slane %v1834_v34, %v3695_v28  ;;  %v1838_v49 = vcombine.high %v1834_v34, %v1834_v34  ;;  %v1887_v34 = vcombine.high %v4219_v13, %v4219_v13 }
 0x4b1   :  { %v4341_v33 = vpop.permute.xlu0 %2218 }
 0x4b2   :  { %2524 = vrot.lane.b32.xlu1 %v2166_v62, %s3487_s4  ;;  %2526 = vrot.lane.b32.xlu0 %v2167_v54, %s3487_s4  ;;  %v2169_v62 = vmul.f32 %v2099_v18, %v4228_v9  ;;  %v2170_v46 = vmul.f32 %v2103_v8, %v4230_v17  ;;  %v952_v9 = vmul.f32 1.442695, %v900_v43  ;;  %v904_v17 = vmul.f32 %v851_v39, %v3953_v6 }
 0x4b3   :  { %v807_v18 = vrot.slane %v4353_v35, %v3695_v28  ;;  %v2111_v52 = vrot.slane %v1838_v49, %v3695_v28 }
 0x4b4   :  { %v4343_v36 = vpop.permute.xlu1 %2230 }
 0x4b5   :  { %5113 = vst [vmem:[#allocation90_spill] sm:$0xff] %v4343_v36  ;;  %v4358_v53 = vpop.permute.xlu0 %2226  ;;  %v747_v36 = vcombine.high %v4278_v24, %v4278_v24  ;;  %v2171_v24 = vmul.f32 %v2103_v8, %v4242_v42  ;;  %v3282_v13 = vpop.eup %3281  ;;  %v960_v42 = vmul.f32 1.442695, %v904_v17  ;;  %v882_v40 = vmul.f32 %v807_v18, %v3953_v6 }
 0x4b6   :  { %2528 = vrot.lane.b32.xlu1 %v2168_v61, %s3487_s4  ;;  %v950_v61 = vmul.f32 1.442695, %v899_v37  ;;  %2530 = vrot.lane.b32.xlu0 %v2169_v62, %s3487_s4  ;;  %v905_v62 = vmul.f32 %v851_v39, %v3968_v5  ;;  %v4390_v8 = vrot.slane %v4366_v45, %v3922_v2  ;;  %v3284_v49 = vpop.eup %3283  ;;  %v2143_v39 = vrot.slane %v1887_v34, %v3695_v28 }
 0x4b8   :  { %v4360_v54 = vpop.permute.xlu1 %2238  ;;  %3289 = vpow2.f32 %v950_v61  ;;  %v2173_v61 = vmul.f32 %v2107_v57, %v4256_v26  ;;  %v916_v26 = vmul.f32 1.442695, %v882_v40  ;;  %v3286_v57 = vpop.eup %3285 }
 0x4b9   :  { %v4378_v27 = vpop.permute.xlu0 %2234  ;;  %3291 = vpow2.f32 %v952_v9 }
 0x4ba   :  { %2532 = vrot.lane.b32.xlu1 %v2170_v46, %s3487_s4  ;;  %v811_v46 = vrot.slane %v747_v36, %v3695_v28  ;;  %2534 = vrot.lane.b32.xlu0 %v2171_v24, %s3487_s4  ;;  %v798_v36 = vcombine.high %v4299_v7, %v4299_v7  ;;  %3293 = vpow2.f32 %v954_v60  ;;  %v883_v24 = vmul.f32 %v807_v18, %v3968_v5 }
 0x4bb   :  { %3295 = vpow2.f32 %v960_v42  ;;  %v767_v7 = vcombine.high %v4316_v30, %v4316_v30  ;;  %v2924_v18 = vmul.f32 1.442695, %v2919_v25  ;;  %v2918_v60 = vsub.f32 0.0, %v3650_v44 }
 0x4bc   :  { %v2385_v37 = vpop.permute.xlu1 %2384  ;;  %v884_v34 = vmul.f32 %v811_v46, %v3953_v6  ;;  %v885_v42 = vmul.f32 %v811_v46, %v3968_v5 }
 0x4bd   :  { %v4381_v43 = vsel %vm555_vm9, %v3280_v29, %v2385_v37  ;;  %v2174_v29 = vmul.f32 %v2111_v52, %v4258_v20  ;;  %v2387_v9 = vpop.permute.xlu0 %2386  ;;  %v819_v20 = vrot.slane %v4390_v8, %v3695_v28  ;;  %v2922_v25 = vmul.f32 1.442695, %v2918_v60 }
 0x4be   :  { %5114 = vst [vmem:[#allocation91_spill] sm:$0xff] %v4381_v43  ;;  %2536 = vrot.lane.b32.xlu1 %v2172_v38, %s3487_s4  ;;  %v4400_v38 = vsel %vm555_vm9, %v3282_v13, %v2387_v9  ;;  %v962_v43 = vmul.f32 1.442695, %v905_v62  ;;  %2538 = vrot.lane.b32.xlu0 %v2173_v61, %s3487_s4  ;;  %v3288_v13 = vpop.eup %3287  ;;  %v2191_v62 = vmul.f32 %v2143_v39, %v4128_v21  ;;  %v920_v30 = vmul.f32 1.442695, %v884_v34 }
 0x4bf   :  { %v888_v21 = vmul.f32 %v819_v20, %v3953_v6 }
 0x4c0   :  { %v2353_v17 = vpop.permute.xlu1 %2352  ;;  %3297 = vpow2.f32 %v962_v43 }
 0x4c1   :  { %v4403_v37 = vsel %vm555_vm9, %v3284_v49, %v2353_v17  ;;  %v2175_v49 = vmul.f32 %v2111_v52, %v4271_v48  ;;  %v2355_v61 = vpop.permute.xlu0 %2354  ;;  %3299 = vpow2.f32 %v916_v26  ;;  %v847_v48 = vrot.slane %v798_v36, %v3695_v28 }
 0x4c2   :  { %2540 = vrot.lane.b32.xlu1 %v2174_v29, %s3487_s4  ;;  %v918_v29 = vmul.f32 1.442695, %v883_v24  ;;  %v4417_v40 = vsel %vm555_vm9, %v3286_v57, %v2355_v61  ;;  %v4427_v52 = vrot.slane %v767_v7, %v3922_v2  ;;  %v3290_v46 = vpop.eup %3289  ;;  %3301 = vpow2.f32 %v2924_v18 }
 0x4c3   :  { %2542 = vrot.lane.b32.xlu0 %v2175_v49, %s3487_s4  ;;  %v3292_v24 = vpop.eup %3291  ;;  %v2190_v57 = vmul.f32 %v2143_v39, %v4120_v23  ;;  %v889_v7 = vmul.f32 %v819_v20, %v3968_v5  ;;  %v928_v23 = vmul.f32 1.442695, %v888_v21  ;;  %v902_v39 = vmul.f32 %v847_v48, %v3953_v6  ;;  %v4454_v21 = vld [vmem:[#allocation8] sm:$0xff] }
 0x4c4   :  { %v2389_v9 = vpop.permute.xlu1 %2388  ;;  %3303 = vpow2.f32 %v918_v29  ;;  %v3294_v60 = vpop.eup %3293 }
 0x4c5   :  { %v4420_v17 = vsel %vm555_vm9, %v3288_v13, %v2389_v9  ;;  %v2391_v43 = vpop.permute.xlu0 %2390  ;;  %v922_v13 = vmul.f32 1.442695, %v885_v42  ;;  %3305 = vpow2.f32 %v920_v30  ;;  %v3296_v18 = vpop.eup %3295  ;;  %v903_v9 = vmul.f32 %v847_v48, %v3968_v5 }
 0x4c6   :  { %5115 = vst [vmem:[#allocation92_spill] sm:$0xff] %v4420_v17  ;;  %2574 = vrot.lane.b32.xlu1 %v2191_v62, %s3487_s4  ;;  %v797_v62 = vcombine.high %v4335_v10, %v4335_v10  ;;  %v4433_v26 = vsel %vm555_vm9, %v3290_v46, %v2391_v43  ;;  %v855_v10 = vrot.slane %v4427_v52, %v3695_v28  ;;  %3307 = vpow2.f32 %v2922_v25 }
 0x4c7   :  { %5116 = vst [vmem:[#allocation93_spill] sm:$0xff] %v4433_v26  ;;  %2572 = vrot.lane.b32.xlu0 %v2190_v57, %s3487_s4  ;;  %3309 = vpow2.f32 %v922_v13  ;;  %v930_v30 = vmul.f32 1.442695, %v889_v7  ;;  %v956_v6 = vmul.f32 1.442695, %v902_v39  ;;  %v718_v48 = vcombine.high %v4366_v45, %v4366_v45  ;;  %v4465_v13 = vld [vmem:[#allocation8 + $0x8] sm:$0xff] }
 0x4c8   :  { %v2393_v34 = vpop.permute.xlu1 %2392  ;;  %v859_v20 = vrot.slane %v797_v62, %v3695_v28  ;;  %3311 = vpow2.f32 %v928_v23  ;;  %v906_v5 = vmul.f32 %v4454_v21, %v855_v10  ;;  %v958_v43 = vmul.f32 1.442695, %v903_v9 }
 0x4c9   :  { %v4436_v36 = vsel %vm555_vm9, %v3292_v24, %v2393_v34  ;;  %v2395_v49 = vpop.permute.xlu0 %2394  ;;  %3313 = vpow2.f32 %v930_v30  ;;  %v907_v62 = vmul.f32 %v4465_v13, %v855_v10  ;;  %v4472_v23 = vrot.slane %v718_v48, %v3922_v2 }
 0x4ca   :  { %5117 = vst [vmem:[#allocation94_spill] sm:$0xff] %v4436_v36  ;;  %1436 = vbcast.lane.b32.xlu1 %v3783_v11, 344  ;;  %v4447_v29 = vsel %vm555_vm9, %v3294_v60, %v2395_v49  ;;  %v3298_v46 = vpop.eup %3297  ;;  %3315 = vpow2.f32 %v956_v6  ;;  %v964_v45 = vmul.f32 1.442695, %v906_v5  ;;  %v908_v60 = vmul.f32 %v4454_v21, %v859_v20 }
 0x4cb   :  { %5118 = vst [vmem:[#allocation95_spill] sm:$0xff] %v4447_v29  ;;  %1432 = vbcast.lane.b32.xlu0 %v3783_v11, 336  ;;  %v3300_v25 = vpop.eup %3299  ;;  %v909_v9 = vmul.f32 %v4465_v13, %v859_v20  ;;  %3317 = vpow2.f32 %v958_v43  ;;  %v966_v30 = vmul.f32 1.442695, %v907_v62  ;;  %v823_v48 = vrot.slane %v4472_v23, %v3695_v28 }
 0x4cc   :  { %v2401_v61 = vpop.permute.xlu1 %2400  ;;  %v3302_v7 = vpop.eup %3301  ;;  %3319 = vpow2.f32 %v964_v45  ;;  %v968_v5 = vmul.f32 1.442695, %v908_v60  ;;  %v748_v20 = vcombine.high %v4390_v8, %v4390_v8  ;;  %v799_v45 = vcombine.high %v4427_v52, %v4427_v52 }
 0x4cd   :  { %v4450_v42 = vsel %vm555_vm9, %v3296_v18, %v2401_v61  ;;  %v2403_v24 = vpop.permute.xlu0 %2402  ;;  %3321 = vpow2.f32 %v966_v30  ;;  %v970_v62 = vmul.f32 1.442695, %v909_v9  ;;  %v890_v8 = vmul.f32 %v4454_v21, %v823_v48 }
 0x4ce   :  { %5119 = vst [vmem:[#allocation96_spill] sm:$0xff] %v4450_v42  ;;  %1500 = vbcast.lane.b32.xlu1 %v3766_v3, 344  ;;  %v4460_v34 = vsel %vm555_vm9, %v3298_v46, %v2403_v24  ;;  %v3304_v39 = vpop.eup %3303  ;;  %3323 = vpow2.f32 %v968_v5  ;;  %v891_v30 = vmul.f32 %v4465_v13, %v823_v48 }
 0x4cf   :  { %5120 = vst [vmem:[#allocation97_spill] sm:$0xff] %v4460_v34  ;;  %1496 = vbcast.lane.b32.xlu0 %v3766_v3, 336  ;;  %v3306_v18 = vpop.eup %3305  ;;  %v932_v52 = vmul.f32 1.442695, %v890_v8 }
 0x4d0   :  { %v2357_v57 = vpop.permute.xlu1 %2356  ;;  %v3308_v6 = vpop.eup %3307 }
 0x4d1   :  { %v4463_v11 = vsel %vm555_vm9, %v3300_v25, %v2357_v57  ;;  %v2359_v49 = vpop.permute.xlu0 %2358  ;;  %v3310_v46 = vpop.eup %3309  ;;  %v2931_v25 = vadd.f32 1.0, %v3302_v7  ;;  %v827_v7 = vrot.slane %v748_v20, %v3695_v28 }
 0x4d2   :  { %2246 = vbcast.lane.b32.xlu1 %v3760_v63, 344  ;;  %v4476_v10 = vsel %vm555_vm9, %v3304_v39, %v2359_v49  ;;  %v3312_v24 = vpop.eup %3311 }
 0x4d3   :  { %2242 = vbcast.lane.b32.xlu0 %v3760_v63, 336  ;;  %v3314_v60 = vpop.eup %3313  ;;  %3325 = vrcp.f32 %v2931_v25  ;;  %v892_v5 = vmul.f32 %v4454_v21, %v827_v7 }
 0x4d4   :  { %v2361_v61 = vpop.permute.xlu1 %2360  ;;  %v3316_v49 = vpop.eup %3315  ;;  %3327 = vpow2.f32 %v970_v62 }
 0x4d5   :  { %v4479_v3 = vsel %vm555_vm9, %v3306_v18, %v2361_v61  ;;  %v2363_v57 = vpop.permute.xlu0 %2362  ;;  %v2930_v18 = vadd.f32 1.0, %v3308_v6  ;;  %v863_v6 = vrot.slane %v799_v45, %v3695_v28  ;;  %v3318_v20 = vpop.eup %3317  ;;  %v936_v62 = vmul.f32 1.442695, %v892_v5 }
 0x4d6   :  { %2310 = vbcast.lane.b32.xlu1 %v3738_v47, 344  ;;  %v4488_v43 = vsel %vm555_vm9, %v3310_v46, %v2363_v57  ;;  %v3320_v25 = vpop.eup %3319 }
 0x4d7   :  { %2306 = vbcast.lane.b32.xlu0 %v3738_v47, 336  ;;  %3329 = vrcp.f32 %v2930_v18  ;;  %v911_v8 = vmul.f32 %v4465_v13, %v863_v6  ;;  %v3322_v45 = vpop.eup %3321 }
 0x4d8   :  { %v2369_v39 = vpop.permute.xlu1 %2368  ;;  %3331 = vpow2.f32 %v932_v52  ;;  %v3324_v18 = vpop.eup %3323 }
 0x4d9   :  { %v4491_v63 = vsel %vm555_vm9, %v3312_v24, %v2369_v39  ;;  %v2371_v61 = vpop.permute.xlu0 %2370  ;;  %v974_v52 = vmul.f32 1.442695, %v911_v8 }
 0x4da   :  { %1444 = vbcast.lane.b32.xlu1 %v3788_v12, 344  ;;  %v4500_v9 = vsel %vm555_vm9, %v3314_v60, %v2371_v61  ;;  %v893_v60 = vmul.f32 %v4465_v13, %v827_v7 }
 0x4db   :  { %1440 = vbcast.lane.b32.xlu0 %v3788_v12, 336  ;;  %v934_v12 = vmul.f32 1.442695, %v891_v30 }
 0x4dc   :  { %v2397_v46 = vpop.permute.xlu1 %2396  ;;  %v938_v7 = vmul.f32 1.442695, %v893_v60 }
 0x4dd   :  { %v4503_v47 = vsel %vm555_vm9, %v3316_v49, %v2397_v46  ;;  %v2399_v24 = vpop.permute.xlu0 %2398  ;;  %v3326_v46 = vpop.eup %3325  ;;  %3333 = vpow2.f32 %v934_v12 }
 0x4de   :  { %5121 = vst [vmem:[#allocation98_spill] sm:$0xff] %v4503_v47  ;;  %1508 = vbcast.lane.b32.xlu1 %v3771_v4, 344  ;;  %v4511_v39 = vsel %vm555_vm9, %v3318_v20, %v2399_v24  ;;  %3335 = vpow2.f32 %v936_v62  ;;  %v3328_v5 = vpop.eup %3327 }
 0x4df   :  { %5122 = vst [vmem:[#allocation99_spill] sm:$0xff] %v4511_v39  ;;  %1504 = vbcast.lane.b32.xlu0 %v3771_v4, 336  ;;  %v910_v4 = vmul.f32 %v4454_v21, %v863_v6  ;;  %3337 = vpow2.f32 %v938_v7 }
 0x4e0   :  { %v2405_v57 = vpop.permute.xlu1 %2404  ;;  %3339 = vpow2.f32 %v974_v52 }
 0x4e1   :  { %v4514_v48 = vsel %vm555_vm9, %v3320_v25, %v2405_v57  ;;  %v2407_v49 = vpop.permute.xlu0 %2406  ;;  %v2939_v25 = vmul.f32 %v3326_v46, %v3647_v41 }
 0x4e2   :  { %5123 = vst [vmem:[#allocation100_spill] sm:$0xff] %v4514_v48  ;;  %2254 = vbcast.lane.b32.xlu1 %v3764_v0, 344  ;;  %v4521_v20 = vsel %vm555_vm9, %v3322_v45, %v2407_v49  ;;  %v3330_v45 = vpop.eup %3329 }
 0x4e3   :  { %5124 = vst [vmem:[#allocation101_spill] sm:$0xff] %v4521_v20  ;;  %2250 = vbcast.lane.b32.xlu0 %v3764_v0, 336  ;;  %v972_v0 = vmul.f32 1.442695, %v910_v4  ;;  %v3332_v12 = vpop.eup %3331  ;;  %v2938_v6 = vmul.f32 %v3330_v45, %v3650_v44 }
 0x4e4   :  { %v2409_v61 = vpop.permute.xlu1 %2408 }
 0x4e5   :  { %v4524_v30 = vsel %vm555_vm9, %v3324_v18, %v2409_v61  ;;  %v2411_v24 = vpop.permute.xlu0 %2410  ;;  %3341 = vpow2.f32 %v972_v0  ;;  %v2920_v0 = vsub.f32 0.0, %v3657_v51 }
 0x4e6   :  { %5125 = vst [vmem:[#allocation102_spill] sm:$0xff] %v4524_v30  ;;  %2318 = vbcast.lane.b32.xlu1 %v3742_v56, 344  ;;  %v4533_v18 = vsel %vm555_vm9, %v3328_v5, %v2411_v24 }
 0x4e7   :  { %5126 = vst [vmem:[#allocation103_spill] sm:$0xff] %v4533_v18  ;;  %2314 = vbcast.lane.b32.xlu0 %v3742_v56, 336  ;;  %v3334_v8 = vpop.eup %3333 }
 0x4e8   :  { %v4530_v57 = vpop.permute.xlu1 %2364  ;;  %v3336_v49 = vpop.eup %3335 }
 0x4e9   :  { %v4538_v60 = vpop.permute.xlu0 %2366  ;;  %v3338_v44 = vpop.eup %3337 }
 0x4ea   :  { %2948 = vrot.lane.b32.xlu1 %v2939_v25, %s3487_s4  ;;  %v3340_v4 = vpop.eup %3339 }
 0x4eb   :  { %2946 = vrot.lane.b32.xlu0 %v2938_v6, %s3487_s4 }
 0x4ec   :  { %v2373_v41 = vpop.permute.xlu1 %2372 }
 0x4ed   :  { %v4541_v62 = vsel %vm555_vm9, %v3332_v12, %v2373_v41  ;;  %v2375_v61 = vpop.permute.xlu0 %2374 }
 0x4ee   :  { %v4545_v46 = vsel %vm555_vm9, %v3334_v8, %v2375_v61  ;;  %v977_v8 = vmul.f32 %v4232_v55, %v3679_v22  ;;  %v976_v61 = vmul.f32 %v4248_v1, %v3675_v19 }
 0x4ef   :  { %v3342_v45 = vpop.eup %3341 }
 0x4f0   :  { %v2377_v56 = vpop.permute.xlu1 %2376  ;;  %v987_v55 = vrot.slane %v976_v61, %v3922_v2 }
 0x4f1   :  { %v4548_v7 = vsel %vm555_vm9, %v3336_v49, %v2377_v56  ;;  %v2379_v52 = vpop.permute.xlu0 %2378  ;;  %v2926_v49 = vmul.f32 1.442695, %v2920_v0  ;;  %v2921_v0 = vsub.f32 0.0, %v3655_v50 }
 0x4f2   :  { %v4551_v25 = vsel %vm555_vm9, %v3338_v44, %v2379_v52  ;;  %v1036_v52 = vrot.slane %v977_v8, %v3922_v2  ;;  %v995_v18 = vcombine.high %v987_v55, %v987_v55 }
 0x4f3   :  { %3343 = vpow2.f32 %v2926_v49 }
 0x4f4   :  { %v2415_v5 = vpop.permute.xlu1 %2414  ;;  %v1044_v1 = vcombine.high %v1036_v52, %v1036_v52 }
 0x4f5   :  { %v4554_v24 = vsel %vm555_vm9, %v3340_v4, %v2415_v5  ;;  %v2413_v12 = vpop.permute.xlu0 %2412  ;;  %v1029_v4 = vcombine.high %v977_v8, %v977_v8  ;;  %v980_v5 = vcombine.high %v976_v61, %v976_v61  ;;  %v749_v8 = vcombine.high %v4353_v35, %v4353_v35 }
 0x4f6   :  { %5127 = vst [vmem:[#allocation104_spill] sm:$0xff] %v4554_v24  ;;  %v4560_v41 = vsel %vm555_vm9, %v3342_v45, %v2413_v12  ;;  %v2928_v61 = vmul.f32 1.442695, %v2921_v0  ;;  %v1066_v50 = vrot.slane %v1044_v1, %v3922_v2 }
 0x4f7   :  { %5128 = vst [vmem:[#allocation105_spill] sm:$0xff] %v4560_v41  ;;  %v1043_v12 = vrot.slane %v1029_v4, %v3922_v2  ;;  %v994_v22 = vrot.slane %v980_v5, %v3922_v2  ;;  %v1052_v41 = vrot.slane %v1036_v52, %v3922_v2  ;;  %v750_v4 = vcombine.high %v4472_v23, %v4472_v23 }
 0x4f8   :  { %v4557_v6 = vpop.permute.xlu1 %2380  ;;  %v815_v48 = vrot.slane %v749_v8, %v3695_v28  ;;  %v1003_v52 = vrot.slane %v987_v55, %v3922_v2  ;;  %v1017_v23 = vrot.slane %v995_v18, %v3922_v2  ;;  %3345 = vpow2.f32 %v2928_v61 }
 0x4f9   :  { %v4566_v56 = vpop.permute.xlu0 %2382  ;;  %v1045_v49 = vcombine.high %v1043_v12, %v1043_v12  ;;  %v996_v30 = vcombine.high %v994_v22, %v994_v22  ;;  %v1059_v35 = vrot.slane %v1043_v12, %v3922_v2  ;;  %v1074_v39 = vcombine.high %v1052_v41, %v1052_v41 }
 0x4fa   :  { %v1010_v0 = vrot.slane %v994_v22, %v3922_v2  ;;  %v831_v1 = vrot.slane %v750_v4, %v3695_v28  ;;  %v1076_v47 = vcombine.high %v1066_v50, %v1066_v50  ;;  %v1309_v55 = vrot.slane %v1066_v50, %v3695_v28 }
 0x4fb   :  { %v1073_v42 = vrot.slane %v1045_v49, %v3922_v2  ;;  %v1024_v29 = vrot.slane %v996_v30, %v3922_v2  ;;  %v1305_v49 = vrot.slane %v1052_v41, %v3695_v28  ;;  %v887_v18 = vmul.f32 %v4465_v13, %v815_v48 }
 0x4fc   :  { %v4568_v44 = vpop.permute.xlu1 %2544  ;;  %v886_v4 = vmul.f32 %v4454_v21, %v815_v48  ;;  %v1313_v61 = vrot.slane %v1074_v39, %v3695_v28  ;;  %v1027_v2 = vcombine.high %v1017_v23, %v1017_v23  ;;  %v1026_v30 = vcombine.high %v1010_v0, %v1010_v0 }
 0x4fd   :  { %v4571_v51 = vpop.permute.xlu0 %2546  ;;  %v3344_v34 = vpop.eup %3343  ;;  %v1077_v22 = vcombine.high %v1073_v42, %v1073_v42  ;;  %v1028_v41 = vcombine.high %v1024_v29, %v1024_v29  ;;  %v894_v50 = vmul.f32 %v4454_v21, %v831_v1  ;;  %v1277_v48 = vrot.slane %v1017_v23, %v3695_v28 }
 0x4fe   :  { %v4605_v12 = vadd.f32 1.0, %v3344_v34  ;;  %v1317_v34 = vrot.slane %v1076_v47, %v3695_v28  ;;  %v1273_v39 = vrot.slane %v1003_v52, %v3695_v28  ;;  %v926_v26 = vmul.f32 1.442695, %v887_v18 }
 0x4ff   :  { %v1333_v47 = vrot.slane %v1077_v22, %v3695_v28  ;;  %v924_v17 = vmul.f32 1.442695, %v886_v4  ;;  %v1285_v21 = vrot.slane %v1027_v2, %v3695_v28  ;;  %v4632_v23 = vmul.f32 %v1305_v49, %v3795_v14 }
 0x500   :  { %v4573_v45 = vpop.permute.xlu1 %2548  ;;  %5135 = vst [vmem:[#allocation112_spill] sm:$0xff] %v4605_v12  ;;  %v1321_v12 = vrot.slane %v1059_v35, %v3695_v28  ;;  %v940_v18 = vmul.f32 1.442695, %v894_v50  ;;  %v4643_v4 = vmul.f32 %v1305_v49, %v3797_v15  ;;  %3347 = vpow2.f32 %v926_v26  ;;  %v5144_v50 = vld [vmem:[#allocation25_spill] sm:$0xff]  ;;  %v5145_v15 = vld [vmem:[#allocation26_spill] sm:$0xff] }
 0x501   :  { %v4579_v19 = vpop.permute.xlu0 %2550  ;;  %3349 = vpow2.f32 %v924_v17  ;;  %v4663_v49 = vmul.f32 %v1317_v34, %v5145_v15  ;;  %v5157_v15 = vld [vmem:[#allocation31_spill] sm:$0xff] }
 0x502   :  { %5129 = vst [vmem:[#allocation106_spill] sm:$0xff] %v4579_v19  ;;  %v1325_v19 = vrot.slane %v1073_v42, %v3695_v28  ;;  %v4651_v14 = vpop.eup %3345 }
 0x504   :  { %v4581_v24 = vpop.permute.xlu1 %2552 }
 0x505   :  { %5130 = vst [vmem:[#allocation107_spill] sm:$0xff] %v4581_v24  ;;  %v4589_v20 = vpop.permute.xlu0 %2554 }
 0x506   :  { %5131 = vst [vmem:[#allocation108_spill] sm:$0xff] %v4589_v20  ;;  %v1025_v20 = vcombine.high %v1003_v52, %v1003_v52  ;;  %v1293_v52 = vrot.slane %v1024_v29, %v3695_v28  ;;  %v5142_v29 = vld [vmem:[#allocation23_spill] sm:$0xff] }
 0x507   :  { %5146 = vst [vmem:[#allocation23_spill] sm:$0xff] %v4663_v49  ;;  %v5169_v49 = vld [vmem:[#allocation52_spill] sm:$0xff] }
 0x508   :  { %v4591_v5 = vpop.permute.xlu1 %2556 }
 0x509   :  { %5132 = vst [vmem:[#allocation109_spill] sm:$0xff] %v4591_v5  ;;  %v4601_v36 = vpop.permute.xlu0 %2558  ;;  %v1075_v5 = vcombine.high %v1059_v35, %v1059_v35  ;;  %v1281_v35 = vrot.slane %v1025_v20, %v3695_v28 }
 0x50a   :  { %5133 = vst [vmem:[#allocation110_spill] sm:$0xff] %v4601_v36  ;;  %v895_v36 = vmul.f32 %v4465_v13, %v831_v1  ;;  %v1289_v1 = vrot.slane %v1010_v0, %v3695_v28  ;;  %v4646_v0 = vmul.f32 %v1309_v55, %v3799_v16  ;;  %v5147_v16 = vld [vmem:[#allocation27_spill] sm:$0xff] }
 0x50b   :  { %v1329_v13 = vrot.slane %v1075_v5, %v3695_v28  ;;  %v4636_v5 = vrot.slane %v1028_v41, %v3695_v28 }
 0x50c   :  { %v4603_v8 = vpop.permute.xlu1 %2560  ;;  %v942_v42 = vmul.f32 1.442695, %v895_v36  ;;  %v5140_v36 = vld [vmem:[#allocation22_spill] sm:$0xff] }
 0x50d   :  { %5134 = vst [vmem:[#allocation111_spill] sm:$0xff] %v4603_v8  ;;  %v4616_v8 = vpop.permute.xlu0 %2562  ;;  %v4649_v2 = vmul.f32 %v1309_v55, %v5140_v36  ;;  %5141 = vst [vmem:[#allocation22_spill] sm:$0xff] %v4651_v14  ;;  %v5149_v55 = vld [vmem:[#allocation48_spill] sm:$0xff] }
 0x50e   :  { %5136 = vst [vmem:[#allocation113_spill] sm:$0xff] %v4616_v8  ;;  %v1350_v26 = vmul.f32 %v1273_v39, %v5149_v55  ;;  %3351 = vpow2.f32 %v942_v42  ;;  %v5150_v36 = vld [vmem:[#allocation28_spill] sm:$0xff] }
 0x50f   :  { %v4670_v14 = vmul.f32 %v1321_v12, %v5150_v36  ;;  %3353 = vpow2.f32 %v940_v18  ;;  %v5159_v55 = vld [vmem:[#allocation32_spill] sm:$0xff]  ;;  %v5161_v36 = vld [vmem:[#allocation33_spill] sm:$0xff]  ;;  %v5165_v18 = vld [vmem:[#allocation47_spill] sm:$0xff] }
 0x510   :  { %v4618_v24 = vpop.permute.xlu1 %2564  ;;  %v4685_v42 = vmul.f32 %v1329_v13, %v5159_v55  ;;  %v5170_v55 = vld [vmem:[#allocation53_spill] sm:$0xff] }
 0x511   :  { %5137 = vst [vmem:[#allocation114_spill] sm:$0xff] %v4618_v24  ;;  %v4629_v24 = vrot.slane %v1026_v30, %v3695_v28  ;;  %v4638_v22 = vpop.permute.xlu0 %2566  ;;  %v4654_v28 = vmul.f32 %v1313_v61, %v5142_v29  ;;  %v5143_v30 = vld [vmem:[#allocation24_spill] sm:$0xff]  ;;  %5151 = vst [vmem:[#allocation25_spill] sm:$0xff] %v4670_v14  ;;  %v5152_v29 = vld [vmem:[#allocation29_spill] sm:$0xff] }
 0x512   :  { %5138 = vst [vmem:[#allocation115_spill] sm:$0xff] %v4638_v22  ;;  %v4657_v41 = vmul.f32 %v1313_v61, %v5143_v30  ;;  %v4666_v22 = vmul.f32 %v1321_v12, %v5147_v16  ;;  %v4673_v8 = vmul.f32 %v1325_v19, %v5152_v29  ;;  %v2672_v61 = vmul.f32 0.0, %v4403_v37  ;;  %5160 = vst [vmem:[#allocation29_spill] sm:$0xff] %v4685_v42  ;;  %v5166_v14 = vld [vmem:[#allocation49_spill] sm:$0xff] }
 0x513   :  { %v4682_v16 = vmul.f32 %v1329_v13, %v5157_v15  ;;  %v4689_v29 = vmul.f32 %v1333_v47, %v5161_v36  ;;  %v5168_v15 = vld [vmem:[#allocation51_spill] sm:$0xff]  ;;  %v1354_v13 = vmul.f32 %v1281_v35, %v5169_v49  ;;  %v4700_v42 = vmul.f32 %v1285_v21, %v5170_v55  ;;  %v5174_v49 = vld [vmem:[#allocation56_spill] sm:$0xff]  ;;  %v3348_v55 = vpop.eup %3347 }
 0x514   :  { %v4640_v20 = vpop.permute.xlu1 %2568  ;;  %5148 = vst [vmem:[#allocation24_spill] sm:$0xff] %v4666_v22  ;;  %5153 = vst [vmem:[#allocation26_spill] sm:$0xff] %v4673_v8  ;;  %v5163_v8 = vld [vmem:[#allocation34_spill] sm:$0xff]  ;;  %v2673_v36 = vmul.f32 0.0, %v4417_v40 }
 0x515   :  { %5139 = vst [vmem:[#allocation116_spill] sm:$0xff] %v4640_v20  ;;  %v4660_v20 = vmul.f32 %v1317_v34, %v5144_v50  ;;  %v4676_v30 = vpop.permute.xlu0 %2570  ;;  %v5155_v34 = vld [vmem:[#allocation30_spill] sm:$0xff]  ;;  %5158 = vst [vmem:[#allocation28_spill] sm:$0xff] %v4682_v16  ;;  %v4692_v37 = vmul.f32 %v1333_v47, %v5163_v8  ;;  %v1355_v16 = vmul.f32 %v1281_v35, %v5168_v15 }
 0x516   :  { %5154 = vst [vmem:[#allocation27_spill] sm:$0xff] %v4676_v30  ;;  %v4679_v50 = vmul.f32 %v1325_v19, %v5155_v34  ;;  %5162 = vst [vmem:[#allocation30_spill] sm:$0xff] %v4689_v29  ;;  %v1352_v30 = vmul.f32 %v1277_v48, %v5165_v18  ;;  %v1353_v19 = vmul.f32 %v1277_v48, %v5166_v14  ;;  %v5167_v34 = vld [vmem:[#allocation50_spill] sm:$0xff]  ;;  %v5173_v48 = vld [vmem:[#allocation64_spill] sm:$0xff] }
 0x517   :  { %5164 = vst [vmem:[#allocation31_spill] sm:$0xff] %v4692_v37  ;;  %v5176_v37 = vld [vmem:[#allocation58_spill] sm:$0xff]  ;;  %v5177_v29 = vld [vmem:[#allocation63_spill] sm:$0xff] }
 0x518   :  { %v2513_v17 = vpop.permute.xlu1 %2512  ;;  %5156 = vst [vmem:[#allocation48_spill] sm:$0xff] %v4679_v50  ;;  %v1351_v50 = vmul.f32 %v1273_v39, %v5167_v34  ;;  %v2640_v39 = vsel %vm555_vm9, %v5173_v48, %v4273_v31  ;;  %v1358_v34 = vmul.f32 %v1289_v1, %v5174_v49  ;;  %v2641_v31 = vsel %vm555_vm9, %v5177_v29, %v4285_v32  ;;  %v5178_v48 = vld [vmem:[#allocation87_spill] sm:$0xff]  ;;  %v5181_v32 = vld [vmem:[#allocation60_spill] sm:$0xff] }
 0x519   :  { %v2608_v12 = vsel %vm555_vm9, %v1350_v26, %v2513_v17  ;;  %v5171_v26 = vld [vmem:[#allocation54_spill] sm:$0xff]  ;;  %v2515_v8 = vpop.permute.xlu0 %2514  ;;  %v4736_v29 = vmul.f32 %v4629_v24, %v5181_v32 }
 0x51a   :  { %v2674_v22 = vadd.f32 %v2672_v61, %v2608_v12  ;;  %v1356_v17 = vmul.f32 %v1285_v21, %v5171_v26  ;;  %v5172_v61 = vld [vmem:[#allocation55_spill] sm:$0xff]  ;;  %v2609_v35 = vsel %vm555_vm9, %v1351_v50, %v2515_v8  ;;  %v5175_v26 = vld [vmem:[#allocation57_spill] sm:$0xff]  ;;  %v5179_v50 = vld [vmem:[#allocation66_spill] sm:$0xff]  ;;  %v3350_v8 = vpop.eup %3349 }
 0x51b   :  { %v4706_v12 = vmul.f32 %v1289_v1, %v5172_v61  ;;  %v2675_v21 = vadd.f32 %v2673_v36, %v2609_v35  ;;  %v4718_v61 = vmul.f32 %v1293_v52, %v5176_v37  ;;  %v4728_v35 = vpop.eup %3351 }
 0x51c   :  { %v2685_v47 = vmul.f32 %v2674_v22, %v4463_v11  ;;  %v2517_v18 = vpop.permute.xlu1 %2516  ;;  %v2676_v15 = vmul.f32 %v2674_v22, %v2640_v39  ;;  %v4715_v11 = vmul.f32 %v1293_v52, %v5175_v26  ;;  %v5180_v52 = vld [vmem:[#allocation59_spill] sm:$0xff] }
 0x51d   :  { %v2610_v14 = vsel %vm555_vm9, %v1352_v30, %v2517_v18  ;;  %v2642_v30 = vsel %vm555_vm9, %v5179_v50, %v5178_v48  ;;  %v2677_v1 = vmul.f32 %v2675_v21, %v2641_v31  ;;  %v2686_v22 = vmul.f32 %v2675_v21, %v4476_v10  ;;  %v2519_v36 = vpop.permute.xlu0 %2518  ;;  %v4740_v10 = vpop.eup %3353  ;;  %v5182_v21 = vld [vmem:[#allocation61_spill] sm:$0xff]  ;;  %v5183_v48 = vld [vmem:[#allocation62_spill] sm:$0xff] }
 0x51e   :  { %v2687_v40 = vadd.f32 %v2685_v47, %v2610_v14  ;;  %v4732_v37 = vmul.f32 %v4629_v24, %v5180_v52  ;;  %v2611_v14 = vsel %vm555_vm9, %v1353_v19, %v2519_v36  ;;  %v4748_v50 = vmul.f32 %v4636_v5, %v5183_v48  ;;  %v5185_v24 = vld [vmem:[#allocation65_spill] sm:$0xff]  ;;  %v5187_v36 = vld [vmem:[#allocation68_spill] sm:$0xff] }
 0x51f   :  { %v2688_v26 = vadd.f32 %v2686_v22, %v2611_v14  ;;  %v5186_v19 = vld [vmem:[#allocation89_spill] sm:$0xff]  ;;  %v5189_v14 = vld [vmem:[#allocation35_spill] sm:$0xff] }
 0x520   :  { %v2689_v47 = vmul.f32 %v2687_v40, %v2642_v30  ;;  %v2698_v18 = vmul.f32 %v2687_v40, %v4479_v3  ;;  %v2521_v39 = vpop.permute.xlu1 %2520  ;;  %v4744_v3 = vmul.f32 %v4636_v5, %v5182_v21  ;;  %v2678_v40 = vadd.f32 %v2677_v1, %v2676_v15  ;;  %v5184_v30 = vld [vmem:[#allocation88_spill] sm:$0xff]  ;;  %v5188_v5 = vld [vmem:[#allocation75_spill] sm:$0xff] }
 0x521   :  { %v2612_v49 = vsel %vm555_vm9, %v1354_v13, %v2521_v39  ;;  %v2643_v52 = vsel %vm555_vm9, %v5185_v24, %v5184_v30  ;;  %v2644_v13 = vsel %vm555_vm9, %v5187_v36, %v5186_v19  ;;  %v2454_v39 = vsel %vm555_vm9, %v3350_v8, %v4530_v57  ;;  %v2523_v1 = vpop.permute.xlu0 %2522  ;;  %v5190_v19 = vld [vmem:[#allocation76_spill] sm:$0xff] }
 0x522   :  { %v2700_v31 = vadd.f32 %v2698_v18, %v2612_v49  ;;  %v2679_v32 = vrot.slane %v2678_v40, 4  ;;  %v2690_v21 = vmul.f32 %v2688_v26, %v2643_v52  ;;  %v2699_v15 = vmul.f32 %v2688_v26, %v4488_v43  ;;  %v5191_v36 = vld [vmem:[#allocation36_spill] sm:$0xff]  ;;  %v5192_v52 = vld [vmem:[#allocation67_spill] sm:$0xff] }
 0x523   :  { %v4762_v49 = vsel %vm555_vm9, %v5189_v14, %v5188_v5  ;;  %v2613_v48 = vsel %vm555_vm9, %v1355_v16, %v2523_v1  ;;  %v4769_v57 = vsel %vm555_vm9, %v5191_v36, %v5190_v19  ;;  %v5193_v5 = vld [vmem:[#allocation70_spill] sm:$0xff]  ;;  %v2455_v16 = vsel %vm555_vm9, %v3348_v55, %v4538_v60  ;;  %v5194_v60 = vld [vmem:[#allocation69_spill] sm:$0xff] }
 0x524   :  { %v2702_v22 = vmul.f32 %v2700_v31, %v2644_v13  ;;  %v2525_v18 = vpop.permute.xlu1 %2524  ;;  %v2711_v30 = vmul.f32 %v2700_v31, %v2454_v39  ;;  %v2680_v8 = vadd.f32 %v2679_v32, %v2678_v40  ;;  %v2691_v43 = vadd.f32 %v2690_v21, %v2689_v47 }
 0x525   :  { %v2614_v24 = vsel %vm555_vm9, %v1356_v17, %v2525_v18  ;;  %v2701_v26 = vadd.f32 %v2699_v15, %v2613_v48  ;;  %v2645_v13 = vsel %vm555_vm9, %v5192_v52, %v4320_v59  ;;  %v2646_v14 = vsel %vm555_vm9, %v5193_v5, %v4341_v33  ;;  %v2527_v19 = vpop.permute.xlu0 %2526  ;;  %v5197_v52 = vld [vmem:[#allocation71_spill] sm:$0xff] }
 0x526   :  { %v2713_v17 = vadd.f32 %v2711_v30, %v2614_v24  ;;  %v2681_v31 = vrot.slane %v2680_v8, 2  ;;  %v2692_v39 = vrot.slane %v2691_v43, 4  ;;  %v2615_v47 = vsel %vm555_vm9, %v4700_v42, %v2527_v19  ;;  %v5195_v30 = vld [vmem:[#allocation72_spill] sm:$0xff]  ;;  %v5199_v19 = vld [vmem:[#allocation74_spill] sm:$0xff] }
 0x527   :  { %v2703_v1 = vmul.f32 %v2701_v26, %v2645_v13  ;;  %v2712_v18 = vmul.f32 %v2701_v26, %v2455_v16  ;;  %v2647_v55 = vsel %vm555_vm9, %v5194_v60, %v4322_v58  ;;  %v2648_v24 = vsel %vm555_vm9, %v5195_v30, %v4358_v53  ;;  %v5196_v26 = vld [vmem:[#allocation90_spill] sm:$0xff]  ;;  %v5198_v53 = vld [vmem:[#allocation73_spill] sm:$0xff] }
 0x528   :  { %v2529_v40 = vpop.permute.xlu1 %2528  ;;  %v2715_v32 = vmul.f32 %v2713_v17, %v2646_v14  ;;  %v2724_v59 = vmul.f32 %v2713_v17, %v4491_v63  ;;  %v2682_v15 = vadd.f32 %v2681_v31, %v2680_v8  ;;  %v2693_v33 = vadd.f32 %v2692_v39, %v2691_v43 }
 0x529   :  { %v2616_v21 = vsel %vm555_vm9, %v1358_v34, %v2529_v40  ;;  %v2704_v48 = vadd.f32 %v2703_v1, %v2702_v22  ;;  %v2714_v36 = vadd.f32 %v2712_v18, %v2615_v47  ;;  %v2649_v42 = vsel %vm555_vm9, %v5197_v52, %v5196_v26  ;;  %v2531_v43 = vpop.permute.xlu0 %2530 }
 0x52a   :  { %v2726_v13 = vadd.f32 %v2724_v59, %v2616_v21  ;;  %v2683_v63 = vrot.slane %v2682_v15, 1  ;;  %v2694_v5 = vrot.slane %v2693_v33, 2  ;;  %v2617_v58 = vsel %vm555_vm9, %v4706_v12, %v2531_v43 }
 0x52b   :  { %v2705_v34 = vrot.slane %v2704_v48, 4  ;;  %v2716_v8 = vmul.f32 %v2714_v36, %v2647_v55  ;;  %v2725_v14 = vmul.f32 %v2714_v36, %v4500_v9  ;;  %v2651_v31 = vsel %vm555_vm9, %v5198_v53, %v4360_v54 }
 0x52c   :  { %v2533_v22 = vpop.permute.xlu1 %2532  ;;  %v2728_v16 = vmul.f32 %v2726_v13, %v2648_v24  ;;  %v2737_v17 = vmul.f32 %v2726_v13, %v4541_v62  ;;  %v2695_v39 = vadd.f32 %v2694_v5, %v2693_v33  ;;  %v2650_v40 = vsel %vm555_vm9, %v5199_v19, %v4378_v27 }
 0x52d   :  { %v2706_v1 = vadd.f32 %v2705_v34, %v2704_v48  ;;  %v2717_v18 = vadd.f32 %v2716_v8, %v2715_v32  ;;  %v2727_v47 = vadd.f32 %v2725_v14, %v2617_v58  ;;  %v2618_v9 = vsel %vm555_vm9, %v4718_v61, %v2533_v22  ;;  %v2535_v62 = vpop.permute.xlu0 %2534 }
 0x52e   :  { %v2696_v12 = vrot.slane %v2695_v39, 1  ;;  %v2739_v36 = vadd.f32 %v2737_v17, %v2618_v9  ;;  %v2684_v55 = vadd.f32 %v2683_v63, %v2682_v15  ;;  %v2619_v32 = vsel %vm555_vm9, %v4715_v11, %v2535_v62  ;;  %v5204_v62 = vld [vmem:[#allocation79_spill] sm:$0xff] }
 0x52f   :  { %v2707_v59 = vrot.slane %v2706_v1, 2  ;;  %v2718_v21 = vrot.slane %v2717_v18, 4  ;;  %v2729_v54 = vmul.f32 %v2727_v47, %v2649_v42  ;;  %v2738_v33 = vmul.f32 %v2727_v47, %v4545_v46  ;;  %v5201_v47 = vld [vmem:[#allocation38_spill] sm:$0xff] }
 0x530   :  { %v2537_v60 = vpop.permute.xlu1 %2536  ;;  %v2697_v48 = vadd.f32 %v2696_v12, %v2695_v39  ;;  %v2741_v24 = vmul.f32 %v2739_v36, %v2650_v40  ;;  %v2750_v52 = vmul.f32 %v2739_v36, %v4548_v7  ;;  %v2462_v7 = vsel %vm555_vm9, %v4740_v10, %v4557_v6  ;;  %v5205_v36 = vld [vmem:[#allocation39_spill] sm:$0xff] }
 0x531   :  { %v2708_v27 = vadd.f32 %v2707_v59, %v2706_v1  ;;  %v2719_v30 = vadd.f32 %v2718_v21, %v2717_v18  ;;  %v2730_v26 = vadd.f32 %v2729_v54, %v2728_v16  ;;  %v2740_v61 = vadd.f32 %v2738_v33, %v2619_v32  ;;  %v2539_v15 = vpop.permute.xlu0 %2538  ;;  %v5207_v32 = vld [vmem:[#allocation40_spill] sm:$0xff] }
 0x532   :  { %v2620_v13 = vsel %vm555_vm9, %v4736_v29, %v2537_v60  ;;  %v2881_v46 = vsel %vm2880_vm10, %v2684_v55, %v2697_v48  ;;  %v2621_v43 = vsel %vm555_vm9, %v4732_v37, %v2539_v15  ;;  %v2660_v60 = vsel %vm555_vm9, %v5205_v36, %v5204_v62  ;;  %v5222_v62 = vld [vmem:[#allocation46_spill] sm:$0xff] }
 0x533   :  { %v2709_v5 = vrot.slane %v2708_v27, 1  ;;  %v2720_v34 = vrot.slane %v2719_v30, 2  ;;  %v2731_v63 = vrot.slane %v2730_v26, 4  ;;  %v2742_v11 = vmul.f32 %v2740_v61, %v2651_v31 }
 0x534   :  { %v2541_v42 = vpop.permute.xlu1 %2540  ;;  %v2751_v8 = vmul.f32 %v2740_v61, %v4551_v25  ;;  %v4817_v14 = vadd.f32 %v2750_v52, %v2620_v13  ;;  %v2463_v25 = vsel %vm555_vm9, %v4728_v35, %v4566_v56  ;;  %v5202_v56 = vld [vmem:[#allocation77_spill] sm:$0xff] }
 0x535   :  { %v2710_v22 = vadd.f32 %v2709_v5, %v2708_v27  ;;  %v2721_v29 = vadd.f32 %v2720_v34, %v2719_v30  ;;  %v2732_v58 = vadd.f32 %v2731_v63, %v2730_v26  ;;  %v2743_v16 = vadd.f32 %v2742_v11, %v2741_v24  ;;  %v2543_v31 = vpop.permute.xlu0 %2542  ;;  %v5203_v35 = vld [vmem:[#allocation37_spill] sm:$0xff]  ;;  %v5210_v26 = vld [vmem:[#allocation91_spill] sm:$0xff]  ;;  %v5211_v63 = vld [vmem:[#allocation82_spill] sm:$0xff] }
 0x536   :  { %v4819_v17 = vadd.f32 %v2751_v8, %v2621_v43  ;;  %v2622_v53 = vsel %vm555_vm9, %v4748_v50, %v2541_v42  ;;  %v2763_v39 = vmul.f32 %v4817_v14, %v2462_v7  ;;  %v2623_v40 = vsel %vm555_vm9, %v4744_v3, %v2543_v31  ;;  %v5200_v50 = vld [vmem:[#allocation78_spill] sm:$0xff]  ;;  %v5206_v3 = vld [vmem:[#allocation80_spill] sm:$0xff]  ;;  %v5208_v27 = vld [vmem:[#allocation81_spill] sm:$0xff] }
 0x537   :  { %v2722_v37 = vrot.slane %v2721_v29, 1  ;;  %v2883_v10 = vsel %vm2882_vm11, %v2881_v46, %v2710_v22  ;;  %v2733_v1 = vrot.slane %v2732_v58, 2  ;;  %v2744_v18 = vrot.slane %v2743_v16, 4  ;;  %v5209_v30 = vld [vmem:[#allocation41_spill] sm:$0xff]  ;;  %v5212_v11 = vld [vmem:[#allocation42_spill] sm:$0xff]  ;;  %v5213_v43 = vld [vmem:[#allocation83_spill] sm:$0xff] }
 0x538   :  { %v4827_v6 = vpop.permute.xlu1 %2574  ;;  %v2764_v19 = vmul.f32 %v4819_v17, %v2463_v25  ;;  %v2659_v9 = vsel %vm555_vm9, %v5201_v47, %v5200_v50  ;;  %v2658_v12 = vsel %vm555_vm9, %v5203_v35, %v5202_v56  ;;  %v4839_v21 = vadd.f32 %v2763_v39, %v2622_v53  ;;  %v5214_v7 = vld [vmem:[#allocation43_spill] sm:$0xff]  ;;  %v5218_v31 = vld [vmem:[#allocation45_spill] sm:$0xff] }
 0x539   :  { %v2723_v59 = vadd.f32 %v2722_v37, %v2721_v29  ;;  %v2734_v55 = vadd.f32 %v2733_v1, %v2732_v58  ;;  %v2745_v54 = vadd.f32 %v2744_v18, %v2743_v16  ;;  %v2661_v48 = vsel %vm555_vm9, %v5207_v32, %v5206_v3  ;;  %v4856_v52 = vpop.permute.xlu0 %2572  ;;  %v5217_v37 = vld [vmem:[#allocation85_spill] sm:$0xff]  ;;  %v5225_v3 = vld [vmem:[#allocation108_spill] sm:$0xff] }
 0x53a   :  { %v4844_v33 = vadd.f32 %v2764_v19, %v2623_v40  ;;  %v4852_v24 = vsel %vm555_vm9, %v5209_v30, %v5208_v27  ;;  %v2776_v61 = vmul.f32 %v4839_v21, %v5210_v26  ;;  %v2624_v34 = vsel %vm555_vm9, %v4643_v4, %v4568_v44  ;;  %v5215_v44 = vld [vmem:[#allocation84_spill] sm:$0xff]  ;;  %v5220_v47 = vld [vmem:[#allocation93_spill] sm:$0xff]  ;;  %v5226_v26 = vld [vmem:[#allocation110_spill] sm:$0xff] }
 0x53b   :  { %v2884_v5 = vsel %vm378_vm5, %v2883_v10, %v2723_v59  ;;  %v2735_v15 = vrot.slane %v2734_v55, 1  ;;  %v2746_v42 = vrot.slane %v2745_v54, 2  ;;  %v2662_v8 = vsel %vm555_vm9, %v5212_v11, %v5211_v63  ;;  %v5216_v4 = vld [vmem:[#allocation44_spill] sm:$0xff]  ;;  %v5221_v59 = vld [vmem:[#allocation86_spill] sm:$0xff]  ;;  %v5230_v11 = vld [vmem:[#allocation111_spill] sm:$0xff] }
 0x53c   :  { %v1437_v13 = vpop.permute.xlu1 %1436  ;;  %v2777_v46 = vmul.f32 %v4844_v33, %v4400_v38  ;;  %v4870_v22 = vsel %vm555_vm9, %v5214_v7, %v5213_v43  ;;  %v2625_v29 = vsel %vm555_vm9, %v4632_v23, %v4571_v51  ;;  %v2778_v58 = vadd.f32 %v2776_v61, %v2624_v34  ;;  %v5219_v23 = vld [vmem:[#allocation92_spill] sm:$0xff]  ;;  %v5228_v34 = vld [vmem:[#allocation23_spill] sm:$0xff]  ;;  %v5231_v43 = vld [vmem:[#allocation25_spill] sm:$0xff] }
 0x53d   :  { %v4878_v16 = vsel %vm555_vm9, %v5216_v4, %v5215_v44  ;;  %v2736_v38 = vadd.f32 %v2735_v15, %v2734_v55  ;;  %v2747_v53 = vadd.f32 %v2746_v42, %v2745_v54  ;;  %v4883_v39 = vsel %vm555_vm9, %v5218_v31, %v5217_v37  ;;  %v1433_v18 = vpop.permute.xlu0 %1432  ;;  %v5229_v42 = vld [vmem:[#allocation94_spill] sm:$0xff]  ;;  %v5233_v4 = vld [vmem:[#allocation113_spill] sm:$0xff] }
 0x53e   :  { %v2779_v25 = vadd.f32 %v2777_v46, %v2625_v29  ;;  %v2626_v10 = vsel %vm555_vm9, %v4649_v2, %v4573_v45  ;;  %v2780_v51 = vmul.f32 %v2778_v58, %v4762_v49  ;;  %v2789_v1 = vmul.f32 %v2778_v58, %v5219_v23  ;;  %v5223_v45 = vld [vmem:[#allocation106_spill] sm:$0xff]  ;;  %v5224_v49 = vld [vmem:[#allocation107_spill] sm:$0xff] }
 0x53f   :  { %v2748_v40 = vrot.slane %v2747_v53, 1  ;;  %v2885_v35 = vsel %vm98_vm0, %v2884_v5, %v2736_v38  ;;  %v4898_v36 = vsel %vm555_vm9, %v5222_v62, %v5221_v59  ;;  %v2627_v2 = vsel %vm555_vm9, %v4646_v0, %v5223_v45  ;;  %v5227_v5 = vld [vmem:[#allocation109_spill] sm:$0xff]  ;;  %v5232_v29 = vld [vmem:[#allocation95_spill] sm:$0xff]  ;;  %v5234_v38 = vld [vmem:[#allocation24_spill] sm:$0xff] }
 0x540   :  { %v4890_v19 = vpop.permute.xlu1 %1500  ;;  %v2781_v50 = vmul.f32 %v2779_v25, %v4769_v57  ;;  %v2790_v56 = vmul.f32 %v2779_v25, %v5220_v47  ;;  %v2628_v55 = vsel %vm555_vm9, %v4657_v41, %v5224_v49  ;;  %v2791_v54 = vadd.f32 %v2789_v1, %v2626_v10  ;;  %v5236_v25 = vld [vmem:[#allocation48_spill] sm:$0xff]  ;;  %v5237_v1 = vld [vmem:[#allocation115_spill] sm:$0xff]  ;;  %v5241_v45 = vld [vmem:[#allocation98_spill] sm:$0xff] }
 0x541   :  { %v2629_v57 = vsel %vm555_vm9, %v4654_v28, %v5225_v3  ;;  %v2749_v30 = vadd.f32 %v2748_v40, %v2747_v53  ;;  %v2631_v61 = vsel %vm555_vm9, %v4660_v20, %v5226_v26  ;;  %v2630_v0 = vsel %vm555_vm9, %v5228_v34, %v5227_v5  ;;  %v1497_v41 = vpop.permute.xlu0 %1496  ;;  %v5235_v53 = vld [vmem:[#allocation114_spill] sm:$0xff]  ;;  %v5239_v47 = vld [vmem:[#allocation116_spill] sm:$0xff] }
 0x542   :  { %v2792_v32 = vadd.f32 %v2790_v56, %v2627_v2  ;;  %v2782_v27 = vadd.f32 %v2781_v50, %v2780_v51  ;;  %v2793_v15 = vmul.f32 %v2791_v54, %v2658_v12  ;;  %v2802_v46 = vmul.f32 %v2791_v54, %v5229_v42  ;;  %v5238_v40 = vld [vmem:[#allocation26_spill] sm:$0xff]  ;;  %v5240_v56 = vld [vmem:[#allocation29_spill] sm:$0xff]  ;;  %v5242_v54 = vld [vmem:[#allocation99_spill] sm:$0xff] }
 0x543   :  { %v2632_v28 = vsel %vm555_vm9, %v5231_v43, %v5230_v11  ;;  %v2633_v20 = vsel %vm555_vm9, %v5234_v38, %v5233_v4  ;;  %v2634_v12 = vsel %vm555_vm9, %v5236_v25, %v5235_v53  ;;  %v4927_v31 = vsel %vm495_vm8, %v2885_v35, %v2749_v30  ;;  %v5246_v43 = vld [vmem:[#allocation30_spill] sm:$0xff]  ;;  %v5248_v38 = vld [vmem:[#allocation97_spill] sm:$0xff] }
 0x544   :  { %v2247_v63 = vpop.permute.xlu1 %2246  ;;  %v2794_v7 = vmul.f32 %v2792_v32, %v2659_v9  ;;  %v2803_v58 = vmul.f32 %v2792_v32, %v5232_v29  ;;  %v2783_v44 = vrot.slane %v2782_v27, 4  ;;  %v2804_v37 = vadd.f32 %v2802_v46, %v2628_v55 }
 0x545   :  { %v2653_v9 = vsel %vm555_vm9, %v1437_v13, %v2247_v63  ;;  %v2635_v50 = vsel %vm555_vm9, %v5238_v40, %v5237_v1  ;;  %v4936_v59 = vsel %vm555_vm9, %v5240_v56, %v5239_v47  ;;  %v2243_v49 = vpop.permute.xlu0 %2242  ;;  %v5243_v13 = vld [vmem:[#allocation27_spill] sm:$0xff] }
 0x546   :  { %v2805_v10 = vadd.f32 %v2803_v58, %v2629_v57  ;;  %v2784_v51 = vadd.f32 %v2783_v44, %v2782_v27  ;;  %v2795_v23 = vadd.f32 %v2794_v7, %v2793_v15  ;;  %v2806_v62 = vmul.f32 %v2804_v37, %v2660_v60  ;;  %v5244_v27 = vld [vmem:[#allocation28_spill] sm:$0xff] }
 0x547   :  { %v2815_v2 = vmul.f32 %v2804_v37, %v5241_v45  ;;  %v4943_v30 = vsel %vm555_vm9, %v5244_v27, %v5243_v13  ;;  %v2652_v5 = vsel %vm555_vm9, %v1433_v18, %v2243_v49  ;;  %v2755_v34 = vmul.f32 %v4819_v17, %v2653_v9  ;;  %v5247_v17 = vld [vmem:[#allocation31_spill] sm:$0xff]  ;;  %v5249_v9 = vld [vmem:[#allocation100_spill] sm:$0xff]  ;;  %v5250_v49 = vld [vmem:[#allocation101_spill] sm:$0xff] }
 0x548   :  { %v2311_v35 = vpop.permute.xlu1 %2310  ;;  %v2807_v55 = vmul.f32 %v2805_v10, %v2661_v48  ;;  %v2816_v3 = vmul.f32 %v2805_v10, %v5242_v54  ;;  %v2785_v57 = vrot.slane %v2784_v51, 2  ;;  %v2796_v32 = vrot.slane %v2795_v23, 4  ;;  %v5245_v48 = vld [vmem:[#allocation96_spill] sm:$0xff] }
 0x549   :  { %v2817_v26 = vadd.f32 %v2815_v2, %v2630_v0  ;;  %v4951_v7 = vsel %vm555_vm9, %v5246_v43, %v4827_v6  ;;  %v2754_v29 = vmul.f32 %v4817_v14, %v2652_v5  ;;  %v2307_v58 = vpop.permute.xlu0 %2306  ;;  %v2638_v4 = vsel %vm555_vm9, %v5247_v17, %v4856_v52 }
 0x54a   :  { %v2786_v60 = vadd.f32 %v2785_v57, %v2784_v51  ;;  %v2797_v15 = vadd.f32 %v2796_v32, %v2795_v23  ;;  %v2808_v42 = vadd.f32 %v2807_v55, %v2806_v62  ;;  %v2818_v46 = vadd.f32 %v2816_v3, %v2631_v61  ;;  %v5251_v32 = vld [vmem:[#allocation102_spill] sm:$0xff] }
 0x54b   :  { %v2819_v63 = vmul.f32 %v2817_v26, %v2662_v8  ;;  %v2828_v11 = vmul.f32 %v2817_v26, %v5245_v48  ;;  %v2756_v25 = vadd.f32 %v2755_v34, %v2754_v29  ;;  %v2669_v6 = vsel %vm555_vm9, %v4890_v19, %v2311_v35 }
 0x54c   :  { %v1445_v0 = vpop.permute.xlu1 %1444  ;;  %v2798_v44 = vrot.slane %v2797_v15, 2  ;;  %v2809_v18 = vrot.slane %v2808_v42, 4  ;;  %v2820_v61 = vmul.f32 %v2818_v46, %v4852_v24  ;;  %v2829_v53 = vmul.f32 %v2818_v46, %v5248_v38  ;;  %v5252_v46 = vld [vmem:[#allocation103_spill] sm:$0xff] }
 0x54d   :  { %v2830_v8 = vadd.f32 %v2828_v11, %v2632_v28  ;;  %v2787_v37 = vrot.slane %v2786_v60, 1  ;;  %v2757_v47 = vrot.slane %v2756_v25, 4  ;;  %v1441_v52 = vpop.permute.xlu0 %1440  ;;  %v2668_v62 = vsel %vm555_vm9, %v1497_v41, %v2307_v58 }
 0x54e   :  { %v2799_v10 = vadd.f32 %v2798_v44, %v2797_v15  ;;  %v2810_v14 = vadd.f32 %v2809_v18, %v2808_v42  ;;  %v2821_v51 = vadd.f32 %v2820_v61, %v2819_v63  ;;  %v2831_v40 = vadd.f32 %v2829_v53, %v2633_v20 }
 0x54f   :  { %v2832_v23 = vmul.f32 %v2830_v8, %v4878_v16  ;;  %v2841_v1 = vmul.f32 %v2830_v8, %v5249_v9  ;;  %v2758_v55 = vadd.f32 %v2757_v47, %v2756_v25  ;;  %v2788_v54 = vadd.f32 %v2787_v37, %v2786_v60  ;;  %v5254_v25 = vld [vmem:[#allocation104_spill] sm:$0xff] }
 0x550   :  { %v1509_v56 = vpop.permute.xlu1 %1508  ;;  %v2800_v24 = vrot.slane %v2799_v10, 1  ;;  %v2811_v28 = vrot.slane %v2810_v14, 2  ;;  %v2822_v45 = vrot.slane %v2821_v51, 4  ;;  %v2833_v19 = vmul.f32 %v2831_v40, %v4870_v22 }
 0x551   :  { %v2843_v2 = vadd.f32 %v2841_v1, %v2634_v12  ;;  %v2842_v35 = vmul.f32 %v2831_v40, %v5250_v49  ;;  %v1505_v5 = vpop.permute.xlu0 %1504  ;;  %v2759_v41 = vrot.slane %v2758_v55, 2 }
 0x552   :  { %v2801_v3 = vadd.f32 %v2800_v24, %v2799_v10  ;;  %v2812_v16 = vadd.f32 %v2811_v28, %v2810_v14  ;;  %v2823_v57 = vadd.f32 %v2822_v45, %v2821_v51  ;;  %v2834_v27 = vadd.f32 %v2833_v19, %v2832_v23 }
 0x553   :  { %v2845_v20 = vmul.f32 %v2843_v2, %v4898_v36  ;;  %v2854_v13 = vmul.f32 %v2843_v2, %v5251_v32  ;;  %v2844_v26 = vadd.f32 %v2842_v35, %v2635_v50  ;;  %v2760_v36 = vadd.f32 %v2759_v41, %v2758_v55  ;;  %v5253_v50 = vld [vmem:[#allocation105_spill] sm:$0xff]  ;;  %v5255_v2 = vld [vmem:[#allocation22_spill] sm:$0xff] }
 0x554   :  { %v2255_v34 = vpop.permute.xlu1 %2254  ;;  %v2813_v15 = vrot.slane %v2812_v16, 1  ;;  %v2824_v22 = vrot.slane %v2823_v57, 2  ;;  %v2835_v29 = vrot.slane %v2834_v27, 4  ;;  %v2933_v19 = vadd.f32 1.0, %v5255_v2 }
 0x555   :  { %v2655_v12 = vsel %vm555_vm9, %v1445_v0, %v2255_v34  ;;  %v2856_v42 = vadd.f32 %v2854_v13, %v4936_v59  ;;  %v2846_v60 = vmul.f32 %v2844_v26, %v4883_v39  ;;  %v2855_v63 = vmul.f32 %v2844_v26, %v5252_v46  ;;  %v2251_v17 = vpop.permute.xlu0 %2250 }
 0x556   :  { %v2768_v48 = vmul.f32 %v4844_v33, %v2655_v12  ;;  %v2814_v11 = vadd.f32 %v2813_v15, %v2812_v16  ;;  %v2825_v43 = vadd.f32 %v2824_v22, %v2823_v57  ;;  %v2761_v8 = vrot.slane %v2760_v36, 1  ;;  %v5256_v57 = vld [vmem:[#allocation112_spill] sm:$0xff] }
 0x557   :  { %v2867_v58 = vmul.f32 %v2856_v42, %v5253_v50  ;;  %v2847_v44 = vadd.f32 %v2846_v60, %v2845_v20  ;;  %v2857_v18 = vadd.f32 %v2855_v63, %v4943_v30  ;;  %v2858_v0 = vmul.f32 %v2856_v42, %v2668_v62 }
 0x558   :  { %v2319_v61 = vpop.permute.xlu1 %2318  ;;  %v2654_v59 = vsel %vm555_vm9, %v1441_v52, %v2251_v17  ;;  %v2826_v38 = vrot.slane %v2825_v43, 1  ;;  %v2762_v51 = vadd.f32 %v2761_v8, %v2760_v36  ;;  %v2836_v9 = vadd.f32 %v2835_v29, %v2834_v27  ;;  %v5258_v8 = vld [vmem:[#allocation15_spill] sm:$0xff] }
 0x559   :  { %v2671_v39 = vsel %vm555_vm9, %v1509_v56, %v2319_v61  ;;  %v2869_v53 = vadd.f32 %v2867_v58, %v2638_v4  ;;  %v2848_v33 = vrot.slane %v2847_v44, 4  ;;  %v2868_v37 = vmul.f32 %v2857_v18, %v5254_v25  ;;  %v2315_v40 = vpop.permute.xlu0 %2314 }
 0x55a   :  { %v2859_v10 = vmul.f32 %v2857_v18, %v2669_v6  ;;  %v2767_v14 = vmul.f32 %v4839_v21, %v2654_v59  ;;  %v2827_v23 = vadd.f32 %v2826_v38, %v2825_v43  ;;  %v2889_v52 = vsel %vm2880_vm10, %v2788_v54, %v2801_v3  ;;  %v5259_v38 = vld [vmem:[#allocation17_spill] sm:$0xff] }
 0x55b   :  { %v2870_v30 = vadd.f32 %v2868_v37, %v4951_v7  ;;  %v2849_v47 = vadd.f32 %v2848_v33, %v2847_v44  ;;  %v2670_v56 = vsel %vm555_vm9, %v1505_v5, %v2315_v40  ;;  %v2887_v4 = vsel %vm459_vm7, %v4927_v31, %v2762_v51 }
 0x55c   :  { %v2860_v1 = vadd.f32 %v2859_v10, %v2858_v0  ;;  %v2769_v24 = vadd.f32 %v2768_v48, %v2767_v14  ;;  %v2837_v28 = vrot.slane %v2836_v9, 2  ;;  %v2871_v62 = vmul.f32 %v2869_v53, %v2670_v56  ;;  %v5257_v0 = vld [vmem:[#allocation16_spill] sm:$0xff]  ;;  %v3052_v10 = vld [vmem:[#allocation5 + $0x9] ss:$0 sm:$0xff]  ;;  %v5260_v14 = vld [vmem:[#allocation18_spill] sm:$0xff] }
 0x55d   :  { %v2872_v21 = vmul.f32 %v2870_v30, %v2671_v39  ;;  %v2850_v45 = vrot.slane %v2849_v47, 2  ;;  %v2890_v35 = vsel %vm2882_vm11, %v2889_v52, %v2814_v11  ;;  %3355 = vrcp.f32 %v5256_v57  ;;  %v3051_v39 = vld [vmem:[#allocation5 + $0x8] ss:$0 sm:$0xff]  ;;  %v2947_v25 = vpop.permute.xlu0 %2946  ;;  %v2949_v30 = vpop.permute.xlu1 %2948 }
 0x55e   :  { %v2861_v6 = vrot.slane %v2860_v1, 4  ;;  %v2770_v49 = vrot.slane %v2769_v24, 4  ;;  %v2838_v7 = vadd.f32 %v2837_v28, %v2836_v9  ;;  %v2891_v3 = vsel %vm378_vm5, %v2890_v35, %v2827_v23  ;;  %v5261_v56 = vld [vmem:[#allocation19_spill] sm:$0xff] }
 0x55f   :  { %v2873_v16 = vadd.f32 %v2872_v21, %v2871_v62  ;;  %v2851_v54 = vadd.f32 %v2850_v45, %v2849_v47  ;;  %3357 = vrcp.f32 %v2933_v19  ;;  %v2910_v53 = vmul.f32 %v3051_v39, %v5259_v38  ;;  %v5262_v21 = vld [vmem:[#allocation20_spill] sm:$0xff] }
 0x560   :  { %v2862_v55 = vadd.f32 %v2861_v6, %v2860_v1  ;;  %v2771_v20 = vadd.f32 %v2770_v49, %v2769_v24  ;;  %v2839_v31 = vrot.slane %v2838_v7, 1  ;;  %v2911_v51 = vmul.f32 %v3051_v39, %v5260_v14 }
 0x561   :  { %v2874_v13 = vrot.slane %v2873_v16, 4  ;;  %v2852_v27 = vrot.slane %v2851_v54, 1  ;;  %v2913_v45 = vmul.f32 %v3051_v39, %v5262_v21 }
 0x562   :  { %v2863_v32 = vrot.slane %v2862_v55, 2  ;;  %v2772_v26 = vrot.slane %v2771_v20, 2  ;;  %v2840_v5 = vadd.f32 %v2839_v31, %v2838_v7 }
 0x563   :  { %v2875_v41 = vadd.f32 %v2874_v13, %v2873_v16  ;;  %v2853_v12 = vadd.f32 %v2852_v27, %v2851_v54 }
 0x564   :  { %v2864_v34 = vadd.f32 %v2863_v32, %v2862_v55  ;;  %v2773_v15 = vadd.f32 %v2772_v26, %v2771_v20  ;;  %v2892_v22 = vsel %vm98_vm0, %v2891_v3, %v2840_v5  ;;  %v5263_v3 = vlaneseq  ;;  %v5264_v32 = vld [vmem:[#allocation21_spill] sm:$0xff] }
 0x565   :  { %v2876_v60 = vrot.slane %v2875_v41, 2  ;;  %v2893_v46 = vsel %vm495_vm8, %v2892_v22, %v2853_v12 }
 0x566   :  { %v2865_v42 = vrot.slane %v2864_v34, 1  ;;  %v2774_v63 = vrot.slane %v2773_v15, 1  ;;  %v2987_v57 = vand.u32 127, %v5263_v3 }
 0x567   :  { %v2877_v48 = vadd.f32 %v2876_v60, %v2875_v41  ;;  %v3356_v50 = vpop.eup %3355 }
 0x568   :  { %v2866_v36 = vadd.f32 %v2865_v42, %v2864_v34  ;;  %v2775_v11 = vadd.f32 %v2774_v63, %v2773_v15  ;;  %v2940_v17 = vmul.f32 %v3356_v50, %v5257_v0  ;;  %v2992_v20 = vadd.s32 4294967288, %v2987_v57 }
 0x569   :  { %v2878_v43 = vrot.slane %v2877_v48, 1  ;;  %v3358_v18 = vpop.eup %3357  ;;  %v2990_v5 = vsub.s32 %v2987_v57, %v5264_v32 }
 0x56a   :  { %v2894_v29 = vsel %vm459_vm7, %v2893_v46, %v2866_v36  ;;  %v2888_v58 = vsel %vm423_vm6, %v2887_v4, %v2775_v11  ;;  %v2941_v59 = vmul.f32 %v3358_v18, %v5258_v8  ;;  %v2912_v4 = vmul.f32 %v3051_v39, %v5261_v56 }
 0x56b   :  { %v2879_v44 = vadd.f32 %v2878_v43, %v2877_v48  ;;  %2898 = vrot.lane.b32.xlu0 %v2888_v58, %s3487_s4  ;;  %v2914_v33 = vadd.f32 %v2910_v53, %v2888_v58  ;;  %v2995_v13 = vsub.s32 %v2992_v20, %v5264_v32 }
 0x56d   :  { %v2895_v61 = vsel %vm423_vm6, %v2894_v29, %v2879_v44  ;;  %v2958_v37 = vmul.f32 %v2947_v25, %v2914_v33 }
 0x56e   :  { %2900 = vrot.lane.b32.xlu1 %v2895_v61, %s3487_s4  ;;  %v2915_v9 = vadd.f32 %v2911_v51, %v2895_v61 }
 0x56f   :  { %2950 = vrot.lane.b32.xlu0 %v2940_v17, %s3487_s4  ;;  %v2966_v23 = vmul.f32 %v3052_v10, %v2958_v37 }
 0x570   :  { %v2959_v1 = vmul.f32 %v2949_v30, %v2915_v9 }
 0x571   :  { %v2970_v40 = vsel %vm555_vm9, %v2966_v23, 0.0 }
 0x572   :  { %2952 = vrot.lane.b32.xlu1 %v2941_v59, %s3487_s4  ;;  %v2967_v47 = vmul.f32 %v3052_v10, %v2959_v1 }
 0x574   :  { %v2973_v52 = vsel %vm555_vm9, %v2967_v47, 0.0 }
 0x58e   :  { %2971 = vadd.xlane.f32.xlu0 %v2970_v40 }
 0x596   :  { %2974 = vadd.xlane.f32.xlu1 %v2973_v52 }
 0x5dd   :  { %v2899_v24 = vpop.permute.xlu0 %2898 }
 0x5de   :  { %v2916_v28 = vadd.f32 %v2912_v4, %v2899_v24 }
 0x5e0   :  { %v2901_v6 = vpop.permute.xlu1 %2900 }
 0x5e1   :  { %v2951_v62 = vpop.permute.xlu0 %2950  ;;  %v2917_v19 = vadd.f32 %v2913_v45, %v2901_v6 }
 0x5e2   :  { %v2960_v2 = vmul.f32 %v2951_v62, %v2916_v28 }
 0x5e4   :  { %v2968_v49 = vmul.f32 %v3052_v10, %v2960_v2  ;;  %v2953_v7 = vpop.permute.xlu1 %2952 }
 0x5e5   :  { %v2961_v35 = vmul.f32 %v2953_v7, %v2917_v19 }
 0x5e6   :  { %v2976_v55 = vsel %vm555_vm9, %v2968_v49, 0.0 }
 0x5e7   :  { %v2969_v16 = vmul.f32 %v3052_v10, %v2961_v35  ;;  %2977 = vadd.xlane.f32.xlu0 %v2976_v55 }
 0x5e9   :  { %v2979_v54 = vsel %vm555_vm9, %v2969_v16, 0.0 }
 0x5eb   :  { %2980 = vadd.xlane.f32.xlu0 %v2979_v54 }
 0x61b   :  { %v2972_v31 = vpop.xlane.xlu0 %2971 }
 0x61c   :  { %v2991_v12 = vrot.slane %v2972_v31, %v2990_v5 }
 0x623   :  { %v2975_v27 = vpop.xlane.xlu1 %2974 }
 0x624   :  { %v2996_v34 = vrot.slane %v2975_v27, %v2995_v13 }
 0x626   :  { %v2998_v42 = vsel %vm2997_vm12, %v2996_v34, %v2991_v12 }
 0x674   :  { %v2978_v26 = vpop.xlane.xlu0 %2977 }
 0x675   :  { %v3002_v15 = vrot.slane %v2978_v26, %v2990_v5 }
 0x678   :  { %v2981_v41 = vpop.xlane.xlu0 %2980 }
 0x679   :  { %v3006_v22 = vrot.slane %v2981_v41, %v2995_v13 }
 0x67b   :  { %v3007_v60 = vsel %vm2997_vm12, %v3006_v22, %v3002_v15 }
 0x67c   :  { %v3009_v46 = vsel %vm3008_vm13, %v3007_v60, %v2998_v42 }
 0x67d   :  { %3012 = vst.msk [vmem:[#allocation10] sm:$0x3] %vm3011_vm14, %v3009_v46 }
 0x67e   :  { %3460 = shalt.err (!%p3457_p8)
}
 0x67f   :  { %s3461_s21 = scalar_lea.hbm %s5028_s6, 32 }
 0x680   :  { %p3462_p9 = scmp.ne.s32.totalorder %s5028_s6, %s3461_s21  ;;  %p3465_p10 = scmp.lt.u32.totalorder %s3461_s21, %s5028_s6 }
 0x682   :  { %p3467_p11 = pnand %p3465_p10, %p3462_p9 }
 0x684   :  { %3470 = shalt.err (!%p3467_p11)
}
 0x685   :  { %3022 = dma.vmem_to_hbm [thread:$0]  %s3020_s19, 32, %s5028_s6, [#allocation4]  }
 0x686   :  { %3477 = dma.done.wait [#allocation4], 32  }
 0x687   :  { %3478 = vsyncadd [#allocation4], 4294967264 }
 0x688   :  { %3026 = vsyncpa [#allocation3], 1 }
 0x689   :  { %3027 = vsyncpa [#allocation6], 1 }
 0x68a   :  { %3028 = vsyncpa [#allocation9], 1 }
 0x68b   :  { %3029 = vsyncpa [#allocation4], 1 }

</bundles_post_ra>
